<compile_context>
chip_gen: v6e
topology: v6e:2x2x1
jax: 0.10.0
libtpu: 0.0.40
codegen_flags: <defaults>
</compile_context>

<pallas_src>
import jax
import jax.numpy as jnp
from jax.experimental import pallas as pl
from jax.experimental.pallas import tpu as pltpu


def fused_add_conv_bn_kernel(a_ref, b_ref, w_ref, gb_ref, o_ref):
    # a_ref, b_ref : (Cin, M)      channel-major flattened activations (same block
    #                              every grid step -> DMA'd once, held resident)
    # w_ref        : (TCout, Cin)  1x1 conv weight rows for this Cout block
    # gb_ref       : (TCout, 2)    packed BN params: col 0 = gamma, col 1 = beta
    # o_ref        : (TCout, M)    BN-normalized conv output block
    eps = 0.001
    m = o_ref.shape[1]                      # static Python int (N*H*W)
    inv_m = 1.0 / m

    # elementwise residual add; bf16 MXU operands, fp32 accumulation
    x = (a_ref[...] + b_ref[...]).astype(jnp.bfloat16)           # (Cin, M)
    w = w_ref[...].astype(jnp.bfloat16)                           # (TCout, Cin)

    # 1x1 conv == matmul on the MXU
    y = jnp.dot(w, x, preferred_element_type=jnp.float32)         # (TCout, M) f32

    # BatchNorm2d (training mode) batch statistics per output channel.
    # Keep the big M-axis reductions off the XLU: ones-vector matmuls on the MXU.
    ones_m = jnp.ones((m, 1), dtype=jnp.float32)                  # (M, 1)
    s = jnp.dot(y, ones_m, preferred_element_type=jnp.float32)    # (TCout, 1)
    mean = s * inv_m
    yc = y - mean                                                 # mean-centered
    sq = jnp.dot(yc * yc, ones_m, preferred_element_type=jnp.float32)
    var = sq * inv_m                                              # biased var (fwd pass)
    inv_std = jax.lax.rsqrt(var + eps)                            # EUP rsqrt

    gamma = gb_ref[:, 0:1]                                        # (TCout, 1)
    beta = gb_ref[:, 1:2]                                         # (TCout, 1)
    o_ref[...] = yc * (gamma * inv_std) + beta


def add_conv_bn(x351, x336, weight, gamma, beta, *, cout_block=528):
    """x351, x336: (1, C_in, H, W) float32 (NCHW). weight: (C_out, C_in, 1, 1).
    gamma, beta: (C_out,). Returns (1, C_out, H, W) float32 (NCHW)."""
    N, Cin, H, W = x351.shape
    assert N == 1, "channel-major free reshape relies on N == 1"
    Cout = weight.shape[0]
    M = N * H * W
    assert Cout % cout_block == 0 and cout_block % 8 == 0

    # Free reshapes (no transposes): NCHW with N=1 -> (Cin, M)
    a = x351.reshape(Cin, M)
    b = x336.reshape(Cin, M)
    w = weight.reshape(Cout, Cin)
    gb = jnp.stack([gamma, beta], axis=1)          # (Cout, 2): one contiguous DMA

    grid = (Cout // cout_block,)

    flops = 2 * Cout * Cin * M + 4 * Cout * M      # conv + two stat matmuls
    bytes_accessed = (2 * Cin * M + Cout * Cin + 2 * Cout + Cout * M) * 4

    out = pl.pallas_call(
        fused_add_conv_bn_kernel,
        out_shape=jax.ShapeDtypeStruct((Cout, M), jnp.float32),
        grid_spec=pltpu.PrefetchScalarGridSpec(
            num_scalar_prefetch=0,
            grid=grid,
            in_specs=[
                pl.BlockSpec((Cin, M), lambda i: (0, 0)),           # a (resident)
                pl.BlockSpec((Cin, M), lambda i: (0, 0)),           # b (resident)
                pl.BlockSpec((cout_block, Cin), lambda i: (i, 0)),  # weight block
                pl.BlockSpec((cout_block, 2), lambda i: (i, 0)),    # gamma/beta block
            ],
            out_specs=pl.BlockSpec((cout_block, M), lambda i: (i, 0)),
        ),
        compiler_params=pltpu.CompilerParams(
            dimension_semantics=("parallel",),       # shards blocks across v7x's 2 TCs
            vmem_limit_bytes=16 << 20,
        ),
        cost_estimate=pl.CostEstimate(
            flops=flops, transcendentals=Cout, bytes_accessed=bytes_accessed
        ),
    )(a, b, w, gb)

    # (Cout, M) -> (1, Cout, H, W): free reshape, no transpose
    return out.reshape(N, Cout, H, W)


if __name__ == "__main__":
    key = jax.random.PRNGKey(0)
    k1, k2, k3 = jax.random.split(key, 3)

    N, Cin, H, W = 1, 176, 14, 14
    Cout = 1056

    x351 = jax.random.normal(k1, (N, Cin, H, W), dtype=jnp.float32)
    x336 = jax.random.normal(k2, (N, Cin, H, W), dtype=jnp.float32)

    # Deterministic parameter init (PyTorch defaults: conv kaiming-uniform-ish,
    # BN gamma=1, beta=0). Exact conv init distribution is irrelevant to semantics.
    fan_in = Cin * 1 * 1
    bound = (1.0 / fan_in) ** 0.5
    weight = jax.random.uniform(
        k3, (Cout, Cin, 1, 1), minval=-bound, maxval=bound, dtype=jnp.float32
    )
    gamma = jnp.ones((Cout,), dtype=jnp.float32)
    beta = jnp.zeros((Cout,), dtype=jnp.float32)

    out = add_conv_bn(x351, x336, weight, gamma, beta)
    out = jax.block_until_ready(out)

    # Sanity check against a pure-JAX fp32 reference (HIGHEST precision matmul).
    xs = x351 + x336
    ref = jnp.einsum(
        "nchw,oc->nohw", xs, weight.reshape(Cout, Cin),
        precision=jax.lax.Precision.HIGHEST,
    )
    mean = jnp.mean(ref, axis=(0, 2, 3), keepdims=True)
    var = jnp.mean((ref - mean) ** 2, axis=(0, 2, 3), keepdims=True)
    ref = (ref - mean) * jax.lax.rsqrt(var + 0.001)
    ref = ref * gamma.reshape(1, Cout, 1, 1) + beta.reshape(1, Cout, 1, 1)
    assert out.shape == (N, Cout, H, W)
    # Tolerance 3e-2: kernel uses bf16 MXU operands with fp32 accumulation; output
    # is BN-normalized to unit variance, so this is ~1-2% relative error, within
    # expected bf16 mixed-precision bounds (same bound as the previous passing run).
    assert jnp.max(jnp.abs(out - ref)) < 3e-2

    print("KERNEL_OK")
</pallas_src>

<mosaic_0001>
module attributes {stable_mosaic.version = 11 : i64} {
  func.func @fused_add_conv_bn_kernel(%arg0: i32, %arg1: memref<176x196xf32, #tpu.memory_space<vmem>>, %arg2: memref<176x196xf32, #tpu.memory_space<vmem>>, %arg3: memref<528x176xf32, #tpu.memory_space<vmem>>, %arg4: memref<528x2xf32, #tpu.memory_space<vmem>>, %arg5: memref<528x196xf32, #tpu.memory_space<vmem>>) attributes {dimension_semantics = [#tpu.dimension_semantics<parallel>], iteration_bounds = array<i64: 2>, scalar_prefetch = 0 : i64, scratch_operands = 0 : i64, tpu.core_type = #tpu.core_type<tc>, window_params = [{pipeline_mode = #tpu.pipeline_mode<synchronous>, transform_indices = @transform_0, window_bounds = array<i64: 176, 196>}, {pipeline_mode = #tpu.pipeline_mode<synchronous>, transform_indices = @transform_1, window_bounds = array<i64: 176, 196>}, {transform_indices = @transform_2, window_bounds = array<i64: 528, 176>}, {transform_indices = @transform_3, window_bounds = array<i64: 528, 2>}, {transform_indices = @transform_4, window_bounds = array<i64: 528, 196>}]} {
    %c0 = arith.constant 0 : index
    %c0_0 = arith.constant 0 : index
    %0 = vector.load %arg1[%c0, %c0_0] : memref<176x196xf32, #tpu.memory_space<vmem>>, vector<176x196xf32>
    %c0_1 = arith.constant 0 : index
    %c0_2 = arith.constant 0 : index
    %1 = vector.load %arg2[%c0_1, %c0_2] : memref<176x196xf32, #tpu.memory_space<vmem>>, vector<176x196xf32>
    %2 = arith.addf %0, %1 : vector<176x196xf32>
    %3 = arith.truncf %2 : vector<176x196xf32> to vector<176x196xbf16>
    %c0_3 = arith.constant 0 : index
    %c0_4 = arith.constant 0 : index
    %4 = vector.load %arg3[%c0_3, %c0_4] : memref<528x176xf32, #tpu.memory_space<vmem>>, vector<528x176xf32>
    %5 = arith.truncf %4 : vector<528x176xf32> to vector<528x176xbf16>
    %cst = arith.constant dense<0.000000e+00> : vector<528x196xf32>
    %6 = tpu.matmul %5, %3, %cst {dimension_numbers = #tpu.dot_dimension_numbers<[1], [0], [0], [1], [0, 0, 1, 1], [], []>} : vector<528x176xbf16>, vector<176x196xbf16>, vector<528x196xf32> -> vector<528x196xf32>
    %cst_5 = arith.constant 1.000000e+00 : f32
    %7 = vector.broadcast %cst_5 : f32 to vector<196x1xf32>
    %cst_6 = arith.constant dense<0.000000e+00> : vector<528x1xf32>
    %8 = tpu.matmul %6, %7, %cst_6 {dimension_numbers = #tpu.dot_dimension_numbers<[1], [0], [0], [1], [0, 0, 1, 1], [], []>} : vector<528x196xf32>, vector<196x1xf32>, vector<528x1xf32> -> vector<528x1xf32>
    %cst_7 = arith.constant 0.00510204071 : f32
    %9 = vector.broadcast %cst_7 : f32 to vector<528x1xf32>
    %10 = arith.mulf %8, %9 : vector<528x1xf32>
    %11 = vector.broadcast %10 : vector<528x1xf32> to vector<528x196xf32>
    %12 = arith.subf %6, %11 : vector<528x196xf32>
    %13 = arith.mulf %12, %12 : vector<528x196xf32>
    %cst_8 = arith.constant dense<0.000000e+00> : vector<528x1xf32>
    %14 = tpu.matmul %13, %7, %cst_8 {dimension_numbers = #tpu.dot_dimension_numbers<[1], [0], [0], [1], [0, 0, 1, 1], [], []>} : vector<528x196xf32>, vector<196x1xf32>, vector<528x1xf32> -> vector<528x1xf32>
    %cst_9 = arith.constant 0.00510204071 : f32
    %15 = vector.broadcast %cst_9 : f32 to vector<528x1xf32>
    %16 = arith.mulf %14, %15 : vector<528x1xf32>
    %cst_10 = arith.constant 1.000000e-03 : f32
    %17 = vector.broadcast %cst_10 : f32 to vector<528x1xf32>
    %18 = arith.addf %16, %17 : vector<528x1xf32>
    %19 = math.rsqrt %18 : vector<528x1xf32>
    %c0_11 = arith.constant 0 : index
    %c0_12 = arith.constant 0 : index
    %20 = vector.load %arg4[%c0_11, %c0_12] : memref<528x2xf32, #tpu.memory_space<vmem>>, vector<528x1xf32>
    %c0_13 = arith.constant 0 : index
    %c1 = arith.constant 1 : index
    %21 = vector.load %arg4[%c0_13, %c1] : memref<528x2xf32, #tpu.memory_space<vmem>>, vector<528x1xf32>
    %22 = arith.mulf %20, %19 : vector<528x1xf32>
    %23 = vector.broadcast %22 : vector<528x1xf32> to vector<528x196xf32>
    %24 = arith.mulf %12, %23 : vector<528x196xf32>
    %25 = vector.broadcast %21 : vector<528x1xf32> to vector<528x196xf32>
    %26 = arith.addf %24, %25 : vector<528x196xf32>
    %c0_14 = arith.constant 0 : index
    %c0_15 = arith.constant 0 : index
    %27 = vector.load %arg5[%c0_14, %c0_15] : memref<528x196xf32, #tpu.memory_space<vmem>>, vector<528x196xf32>
    tpu.vector_store %arg5[%c0_14, %c0_15], %26 {strides = array<i32>} : memref<528x196xf32, #tpu.memory_space<vmem>>, vector<528x196xf32>,
    return
  }
  func.func @transform_0(%arg0: i32) -> (i32, i32) {
    %c0_i32 = arith.constant 0 : i32
    %c0_i32_0 = arith.constant 0 : i32
    %c0_i32_1 = arith.constant 0 : i32
    return %c0_i32, %c0_i32_0 : i32, i32
  }
  func.func @transform_1(%arg0: i32) -> (i32, i32) {
    %c0_i32 = arith.constant 0 : i32
    %c0_i32_0 = arith.constant 0 : i32
    %c0_i32_1 = arith.constant 0 : i32
    return %c0_i32, %c0_i32_0 : i32, i32
  }
  func.func @transform_2(%arg0: i32) -> (i32, i32) {
    %c0_i32 = arith.constant 0 : i32
    %c0_i32_0 = arith.constant 0 : i32
    return %arg0, %c0_i32 : i32, i32
  }
  func.func @transform_3(%arg0: i32) -> (i32, i32) {
    %c0_i32 = arith.constant 0 : i32
    %c0_i32_0 = arith.constant 0 : i32
    return %arg0, %c0_i32 : i32, i32
  }
  func.func @transform_4(%arg0: i32) -> (i32, i32) {
    %c0_i32 = arith.constant 0 : i32
    %c0_i32_0 = arith.constant 0 : i32
    return %arg0, %c0_i32 : i32, i32
  }
}

</mosaic_0001>

<bundles_post_ra>
// kernel: tpu_custom_call.1
= control target key start
LH: loop header
LB: loop body
LE: loop exit
PB: predicated region body
PF: predicated region fallthrough
CT: control target
= control target key end

     0   :  { %s4821_s15 = smov 0   ;;  %s7513_s0 = inlined_call_operand.vmem [shape: f32[176,196], index: 0, kind: input, shape index: {}]   ;;  %s7514_s1 = inlined_call_operand.vmem [shape: f32[176,196], index: 1, kind: input, shape index: {}]   ;;  %s7515_s2 = inlined_call_operand.vmem [shape: f32[1056,176], index: 2, kind: input, shape index: {}]   ;;  %s7516_s3 = inlined_call_operand.vmem [shape: f32[1056,2], index: 3, kind: input, shape index: {}]   ;;  %s7517_s4 = inlined_call_operand.vmem [shape: f32[1056,196], index: 4, kind: output, shape index: {}]  }
   0x1 LB: > { %s4351_s16 = sadd.s32 4294967295, %s4790_s15   ;;  %p4355_p0 = scmp.ge.s32.totalorder %s4790_s15, 1  ;;  %s4790_s15 = sphi %s4821_s15, %s14_s15  }
   0x2   : > { %p175_p1 = scmp.lt.s32.totalorder %s4790_s15, 3 }
   0x4   : > { %p176_p2 = pnand %p4355_p0, %p175_p1 }
   0x6   : > { %179 = sbr.rel (%p176_p2) target bundleno = 1188 (0x4a4), region = 36 }
   0xb   : > { %v258_v0 = vld [vmem:[%s7513_s0 + $0xe8] sm:$0xff]  ;;  %v260_v1 = vld [vmem:[%s7513_s0 + $0xf8] sm:$0xff]  ;;  %v257_v5 = vld [vmem:[%s7513_s0 + $0xe0] sm:$0xff]  ;;  %s4939_s17 = smul.u32 66, %s4351_s16  ;;  %vm581_vm0 = vcmask 392192   ;;  %vm1243_vm1 = vcmask 1043456  }
   0xc   : > { %v302_v2 = vld [vmem:[%s7514_s1 + $0xe8] sm:$0xff]  ;;  %v304_v3 = vld [vmem:[%s7514_s1 + $0xf8] sm:$0xff]  ;;  %v259_v6 = vld [vmem:[%s7513_s0 + $0xf0] sm:$0xff]  ;;  %vm1044_vm2 = vcmask 556032  }
   0xd   : > { %v346_v4 = vadd.f32 %v302_v2, %v258_v0  ;;  %v348_v7 = vadd.f32 %v304_v3, %v260_v1  ;;  %v301_v8 = vld [vmem:[%s7514_s1 + $0xe0] sm:$0xff]  ;;  %v303_v9 = vld [vmem:[%s7514_s1 + $0xf0] sm:$0xff]  ;;  %v254_v10 = vld [vmem:[%s7513_s0 + $0xc8] sm:$0xff]  ;;  %p209_p3 = scmp.lt.s32.totalorder %s4939_s17, 131 }
   0xe   : > { %v345_v11 = vadd.f32 %v301_v8, %v257_v5  ;;  %v347_v12 = vadd.f32 %v303_v9, %v259_v6  ;;  %v256_v13 = vld [vmem:[%s7513_s0 + $0xd8] sm:$0xff]  ;;  %v298_v14 = vld [vmem:[%s7514_s1 + $0xc8] sm:$0xff]  ;;  %v253_v19 = vld [vmem:[%s7513_s0 + $0xc0] sm:$0xff] }
   0xf   : > { %v300_v15 = vld [vmem:[%s7514_s1 + $0xd8] sm:$0xff]  ;;  %v376_v16 = vpack.c.bf16 %v348_v7, %v346_v4  ;;  %v342_v17 = vadd.f32 %v298_v14, %v254_v10  ;;  %v255_v20 = vld [vmem:[%s7513_s0 + $0xd0] sm:$0xff]  ;;  %v297_v21 = vld [vmem:[%s7514_s1 + $0xc0] sm:$0xff]  ;;  %s8239_s17 = smov (!%p209_p3, %s4939_s17), 131 }
  0x10   : > { %v344_v18 = vadd.f32 %v300_v15, %v256_v13  ;;  %v375_v22 = vpack.c.bf16 %v347_v12, %v345_v11  ;;  %v299_v23 = vld [vmem:[%s7514_s1 + $0xd0] sm:$0xff]  ;;  %v341_v24 = vadd.f32 %v297_v21, %v253_v19  ;;  %v250_v25 = vld [vmem:[%s7513_s0 + $0xa8] sm:$0xff]  ;;  %v252_v26 = vld [vmem:[%s7513_s0 + $0xb8] sm:$0xff]  ;;  %s4530_s22 = sshll.u32 %s8239_s17, 4 }
  0x11   : > { %681 = vmatprep.subr.bf16.mxu0 %v376_v16  ;;  %v343_v28 = vadd.f32 %v299_v23, %v255_v20  ;;  %v294_v29 = vld [vmem:[%s7514_s1 + $0xa8] sm:$0xff]  ;;  %v296_v30 = vld [vmem:[%s7514_s1 + $0xb8] sm:$0xff]  ;;  %v249_v31 = vld [vmem:[%s7513_s0 + $0xa0] sm:$0xff]  ;;  %4532 = vmatprep.subr.bf16.mxu1 %v376_v16  ;;  %s5052_s12 = scalar_lea.vmem %s7515_s2, %s4530_s22  ;;  %s7028_s11 = scalar_lea.vmem %s7517_s4, %s4530_s22 }
  0x12   : > { %v374_v27 = vpack.c.bf16 %v344_v18, %v342_v17  ;;  %682 = vmatpush1.bf16.msra.mxu0 %v375_v22  ;;  %v338_v32 = vadd.f32 %v294_v29, %v250_v25  ;;  %v340_v33 = vadd.f32 %v296_v30, %v252_v26  ;;  %v251_v34 = vld [vmem:[%s7513_s0 + $0xb0] sm:$0xff]  ;;  %v293_v35 = vld [vmem:[%s7514_s1 + $0xa0] sm:$0xff]  ;;  %4543 = vmatpush1.bf16.msra.mxu1 %v375_v22  ;;  %v246_v40 = vld [vmem:[%s7513_s0 + $0x88] sm:$0xff] }
  0x13   : > { %v295_v36 = vld [vmem:[%s7514_s1 + $0xb0] sm:$0xff]  ;;  %v373_v37 = vpack.c.bf16 %v343_v28, %v341_v24  ;;  %v337_v38 = vadd.f32 %v293_v35, %v249_v31  ;;  %v248_v41 = vld [vmem:[%s7513_s0 + $0x98] sm:$0xff]  ;;  %v290_v42 = vld [vmem:[%s7514_s1 + $0x88] sm:$0xff] }
  0x14   : > { %683 = vmatprep.subr.bf16.mxu0 %v374_v27  ;;  %v339_v39 = vadd.f32 %v295_v36, %v251_v34  ;;  %4533 = vmatprep.subr.bf16.mxu1 %v374_v27  ;;  %v372_v43 = vpack.c.bf16 %v340_v33, %v338_v32  ;;  %v292_v44 = vld [vmem:[%s7514_s1 + $0x98] sm:$0xff]  ;;  %v334_v45 = vadd.f32 %v290_v42, %v246_v40  ;;  %v245_v46 = vld [vmem:[%s7513_s0 + $0x80] sm:$0xff]  ;;  %v247_v47 = vld [vmem:[%s7513_s0 + $0x90] sm:$0xff] }
  0x15   : > { %v336_v48 = vadd.f32 %v292_v44, %v248_v41  ;;  %v289_v49 = vld [vmem:[%s7514_s1 + $0x80] sm:$0xff]  ;;  %v291_v50 = vld [vmem:[%s7514_s1 + $0x90] sm:$0xff]  ;;  %v242_v51 = vld [vmem:[%s7513_s0 + $0x68] sm:$0xff] }
  0x16   : > { %684 = vmatpush1.bf16.msra.mxu0 %v373_v37  ;;  %v371_v52 = vpack.c.bf16 %v339_v39, %v337_v38  ;;  %v333_v53 = vadd.f32 %v289_v49, %v245_v46  ;;  %v335_v54 = vadd.f32 %v291_v50, %v247_v47  ;;  %v244_v55 = vld [vmem:[%s7513_s0 + $0x78] sm:$0xff]  ;;  %v286_v56 = vld [vmem:[%s7514_s1 + $0x68] sm:$0xff]  ;;  %4544 = vmatpush1.bf16.msra.mxu1 %v373_v37  ;;  %v241_v61 = vld [vmem:[%s7513_s0 + $0x60] sm:$0xff] }
  0x17   : > { %v288_v57 = vld [vmem:[%s7514_s1 + $0x78] sm:$0xff]  ;;  %685 = vmatprep.subr.bf16.mxu0 %v372_v43  ;;  %v370_v58 = vpack.c.bf16 %v336_v48, %v334_v45  ;;  %v330_v59 = vadd.f32 %v286_v56, %v242_v51  ;;  %v243_v62 = vld [vmem:[%s7513_s0 + $0x70] sm:$0xff]  ;;  %v285_v63 = vld [vmem:[%s7514_s1 + $0x60] sm:$0xff]  ;;  %4534 = vmatprep.subr.bf16.mxu1 %v372_v43 }
  0x18   : > { %v332_v60 = vadd.f32 %v288_v57, %v244_v55  ;;  %v287_v0 = vld [vmem:[%s7514_s1 + $0x70] sm:$0xff]  ;;  %v238_v1 = vld [vmem:[%s7513_s0 + $0x48] sm:$0xff]  ;;  %v240_v2 = vld [vmem:[%s7513_s0 + $0x58] sm:$0xff]  ;;  %v369_v5 = vpack.c.bf16 %v335_v54, %v333_v53  ;;  %v329_v6 = vadd.f32 %v285_v63, %v241_v61 }
  0x19   : > { %v282_v3 = vld [vmem:[%s7514_s1 + $0x48] sm:$0xff]  ;;  %v284_v4 = vld [vmem:[%s7514_s1 + $0x58] sm:$0xff]  ;;  %v331_v7 = vadd.f32 %v287_v0, %v243_v62  ;;  %v237_v8 = vld [vmem:[%s7513_s0 + $0x40] sm:$0xff] }
  0x1a   : > { %686 = vmatpush1.bf16.msra.mxu0 %v371_v52  ;;  %v239_v9 = vld [vmem:[%s7513_s0 + $0x50] sm:$0xff]  ;;  %4545 = vmatpush1.bf16.msra.mxu1 %v371_v52  ;;  %v368_v10 = vpack.c.bf16 %v332_v60, %v330_v59  ;;  %v326_v11 = vadd.f32 %v282_v3, %v238_v1  ;;  %v328_v12 = vadd.f32 %v284_v4, %v240_v2  ;;  %v281_v13 = vld [vmem:[%s7514_s1 + $0x40] sm:$0xff]  ;;  %v234_v15 = vld [vmem:[%s7513_s0 + $0x28] sm:$0xff] }
  0x1b   : > { %687 = vmatprep.subr.bf16.mxu0 %v370_v58  ;;  %v283_v14 = vld [vmem:[%s7514_s1 + $0x50] sm:$0xff]  ;;  %4535 = vmatprep.subr.bf16.mxu1 %v370_v58  ;;  %v236_v16 = vld [vmem:[%s7513_s0 + $0x38] sm:$0xff]  ;;  %v278_v17 = vld [vmem:[%s7514_s1 + $0x28] sm:$0xff]  ;;  %v367_v19 = vpack.c.bf16 %v331_v7, %v329_v6  ;;  %v325_v20 = vadd.f32 %v281_v13, %v237_v8 }
  0x1c   : > { %v280_v18 = vld [vmem:[%s7514_s1 + $0x38] sm:$0xff]  ;;  %v327_v21 = vadd.f32 %v283_v14, %v239_v9  ;;  %v233_v22 = vld [vmem:[%s7513_s0 + $0x20] sm:$0xff]  ;;  %v235_v23 = vld [vmem:[%s7513_s0 + $0x30] sm:$0xff]  ;;  %v366_v24 = vpack.c.bf16 %v328_v12, %v326_v11  ;;  %v322_v25 = vadd.f32 %v278_v17, %v234_v15 }
  0x1d   : > { %v324_v26 = vadd.f32 %v280_v18, %v236_v16  ;;  %v277_v27 = vld [vmem:[%s7514_s1 + $0x20] sm:$0xff]  ;;  %v279_v28 = vld [vmem:[%s7514_s1 + $0x30] sm:$0xff]  ;;  %v230_v29 = vld [vmem:[%s7513_s0 + $0x8] sm:$0xff] }
  0x1e   : > { %688 = vmatpush1.bf16.msra.mxu0 %v369_v5  ;;  %4546 = vmatpush1.bf16.msra.mxu1 %v369_v5  ;;  %v232_v30 = vld [vmem:[%s7513_s0 + $0x18] sm:$0xff]  ;;  %v274_v31 = vld [vmem:[%s7514_s1 + $0x8] sm:$0xff]  ;;  %v365_v33 = vpack.c.bf16 %v327_v21, %v325_v20  ;;  %v321_v34 = vadd.f32 %v277_v27, %v233_v22  ;;  %v323_v35 = vadd.f32 %v279_v28, %v235_v23  ;;  %v229_v36 = vld [vmem:[%s7513_s0] sm:$0xff] }
  0x1f   : > { %689 = vmatprep.subr.bf16.mxu0 %v368_v10  ;;  %4536 = vmatprep.subr.bf16.mxu1 %v368_v10  ;;  %v276_v32 = vld [vmem:[%s7514_s1 + $0x18] sm:$0xff]  ;;  %v231_v37 = vld [vmem:[%s7513_s0 + $0x10] sm:$0xff]  ;;  %v364_v38 = vpack.c.bf16 %v324_v26, %v322_v25  ;;  %v318_v39 = vadd.f32 %v274_v31, %v230_v29  ;;  %v273_v41 = vld [vmem:[%s7514_s1] sm:$0xff] }
  0x20   : > { %v320_v40 = vadd.f32 %v276_v32, %v232_v30  ;;  %v275_v42 = vld [vmem:[%s7514_s1 + $0x10] sm:$0xff]  ;;  %v270_v43 = vld [vmem:[%s7513_s0 + $0x148] sm:$0xff]  ;;  %v272_v44 = vld [vmem:[%s7513_s0 + $0x158] sm:$0xff]  ;;  %v363_v48 = vpack.c.bf16 %v323_v35, %v321_v34  ;;  %v317_v49 = vadd.f32 %v273_v41, %v229_v36 }
  0x21   : > { %v314_v45 = vld [vmem:[%s7514_s1 + $0x148] sm:$0xff]  ;;  %v316_v46 = vld [vmem:[%s7514_s1 + $0x158] sm:$0xff]  ;;  %v269_v47 = vld [vmem:[%s7513_s0 + $0x140] sm:$0xff]  ;;  %v319_v50 = vadd.f32 %v275_v42, %v231_v37 }
  0x22   : > { %690 = vmatpush1.bf16.msra.mxu0 %v367_v19  ;;  %4547 = vmatpush1.bf16.msra.mxu1 %v367_v19  ;;  %v271_v51 = vld [vmem:[%s7513_s0 + $0x150] sm:$0xff]  ;;  %v313_v52 = vld [vmem:[%s7514_s1 + $0x140] sm:$0xff]  ;;  %v362_v54 = vpack.c.bf16 %v320_v40, %v318_v39  ;;  %v358_v55 = vadd.f32 %v314_v45, %v270_v43  ;;  %v360_v56 = vadd.f32 %v316_v46, %v272_v44  ;;  %v266_v57 = vld [vmem:[%s7513_s0 + $0x128] sm:$0xff]  ;;  %v4792_v43 = vmov 0.0  }
  0x23   : > { %691 = vmatprep.subr.bf16.mxu0 %v366_v24  ;;  %4537 = vmatprep.subr.bf16.mxu1 %v366_v24  ;;  %v315_v53 = vld [vmem:[%s7514_s1 + $0x150] sm:$0xff]  ;;  %v268_v58 = vld [vmem:[%s7513_s0 + $0x138] sm:$0xff]  ;;  %v310_v59 = vld [vmem:[%s7514_s1 + $0x128] sm:$0xff]  ;;  %v361_v0 = vpack.c.bf16 %v319_v50, %v317_v49  ;;  %v357_v1 = vadd.f32 %v313_v52, %v269_v47 }
  0x24   : > { %v312_v60 = vld [vmem:[%s7514_s1 + $0x138] sm:$0xff]  ;;  %v384_v61 = vld [vmem:[%s5052_s12 + $0x8] sm:$0xff]  ;;  %v359_v2 = vadd.f32 %v315_v53, %v271_v51  ;;  %v265_v3 = vld [vmem:[%s7513_s0 + $0x120] sm:$0xff]  ;;  %v382_v5 = vpack.c.bf16 %v360_v56, %v358_v55  ;;  %v354_v6 = vadd.f32 %v310_v59, %v266_v57 }
  0x25   : > { %v386_v62 = vld [vmem:[%s5052_s12 + $0x18] sm:$0xff]  ;;  %v267_v4 = vld [vmem:[%s7513_s0 + $0x130] sm:$0xff]  ;;  %v356_v7 = vadd.f32 %v312_v60, %v268_v58  ;;  %v309_v8 = vld [vmem:[%s7514_s1 + $0x120] sm:$0xff] }
  0x26   : > { %692 = vmatpush1.bf16.msra.mxu0 %v365_v33  ;;  %4548 = vmatpush1.bf16.msra.mxu1 %v365_v33  ;;  %v516_v63 = vpack.c.bf16 %v386_v62, %v384_v61  ;;  %v311_v9 = vld [vmem:[%s7514_s1 + $0x130] sm:$0xff]  ;;  %v262_v10 = vld [vmem:[%s7513_s0 + $0x108] sm:$0xff]  ;;  %v264_v11 = vld [vmem:[%s7513_s0 + $0x118] sm:$0xff]  ;;  %v381_v14 = vpack.c.bf16 %v359_v2, %v357_v1  ;;  %v353_v15 = vadd.f32 %v309_v8, %v265_v3 }
  0x27   : > { %693 = vmatprep.subr.bf16.mxu0 %v364_v38  ;;  %4538 = vmatprep.subr.bf16.mxu1 %v364_v38  ;;  %v306_v12 = vld [vmem:[%s7514_s1 + $0x108] sm:$0xff]  ;;  %v308_v13 = vld [vmem:[%s7514_s1 + $0x118] sm:$0xff]  ;;  %v355_v16 = vadd.f32 %v311_v9, %v267_v4  ;;  %v261_v17 = vld [vmem:[%s7513_s0 + $0x100] sm:$0xff]  ;;  %v380_v18 = vpack.c.bf16 %v356_v7, %v354_v6 }
  0x28   : > { %4361 = vmatprep.mubr.msk.bf16.mxu0 %vm581_vm0, %v516_v63  ;;  %v350_v19 = vadd.f32 %v306_v12, %v262_v10  ;;  %v352_v20 = vadd.f32 %v308_v13, %v264_v11  ;;  %v263_v21 = vld [vmem:[%s7513_s0 + $0x110] sm:$0xff]  ;;  %v305_v22 = vld [vmem:[%s7514_s1 + $0x100] sm:$0xff]  ;;  %v452_v28 = vld [vmem:[%s5052_s12 + $0x228] sm:$0xff] }
  0x29   : > { %v307_v23 = vld [vmem:[%s7514_s1 + $0x110] sm:$0xff]  ;;  %v379_v24 = vpack.c.bf16 %v355_v16, %v353_v15  ;;  %v349_v25 = vadd.f32 %v305_v22, %v261_v17  ;;  %v454_v29 = vld [vmem:[%s5052_s12 + $0x238] sm:$0xff]  ;;  %v383_v31 = vld [vmem:[%s5052_s12] sm:$0xff] }
  0x2a   : > { %694 = vmatpush1.bf16.msra.mxu0 %v363_v48  ;;  %4549 = vmatpush1.bf16.msra.mxu1 %v363_v48  ;;  %v351_v26 = vadd.f32 %v307_v23, %v263_v21  ;;  %v378_v27 = vpack.c.bf16 %v352_v20, %v350_v19  ;;  %v550_v30 = vpack.c.bf16 %v454_v29, %v452_v28  ;;  %v385_v33 = vld [vmem:[%s5052_s12 + $0x10] sm:$0xff]  ;;  %v451_v34 = vld [vmem:[%s5052_s12 + $0x220] sm:$0xff]  ;;  %v388_v36 = vld [vmem:[%s5052_s12 + $0x28] sm:$0xff]  ;;  %v4793_v48 = vmov 1.0  }
  0x2b   : > { %695 = vmatprep.subr.bf16.mxu0 %v362_v54  ;;  %4539 = vmatprep.subr.bf16.mxu1 %v362_v54  ;;  %v453_v35 = vld [vmem:[%s5052_s12 + $0x230] sm:$0xff]  ;;  %v390_v37 = vld [vmem:[%s5052_s12 + $0x38] sm:$0xff]  ;;  %v456_v38 = vld [vmem:[%s5052_s12 + $0x248] sm:$0xff]  ;;  %v515_v40 = vpack.c.bf16 %v385_v33, %v383_v31 }
  0x2c   : > { %v377_v32 = vpack.c.bf16 %v351_v26, %v349_v25  ;;  %4378 = vmatprep.mubr.msk.bf16.mxu1 %vm581_vm0, %v550_v30  ;;  %v458_v39 = vld [vmem:[%s5052_s12 + $0x258] sm:$0xff]  ;;  %v549_v41 = vpack.c.bf16 %v453_v35, %v451_v34  ;;  %v518_v42 = vpack.c.bf16 %v390_v37, %v388_v36  ;;  %v387_v45 = vld [vmem:[%s5052_s12 + $0x20] sm:$0xff]  ;;  %v389_v46 = vld [vmem:[%s5052_s12 + $0x30] sm:$0xff] }
  0x2d   : > { %v552_v44 = vpack.c.bf16 %v458_v39, %v456_v38  ;;  %v392_v47 = vld [vmem:[%s5052_s12 + $0x48] sm:$0xff]  ;;  %v455_v49 = vld [vmem:[%s5052_s12 + $0x240] sm:$0xff]  ;;  %v457_v50 = vld [vmem:[%s5052_s12 + $0x250] sm:$0xff]  ;;  %v517_v54 = vpack.c.bf16 %v389_v46, %v387_v45 }
  0x2e   : > { %696 = vmatpush1.bf16.msra.mxu0 %v361_v0  ;;  %4550 = vmatpush1.bf16.msra.mxu1 %v361_v0  ;;  %v394_v51 = vld [vmem:[%s5052_s12 + $0x58] sm:$0xff]  ;;  %v460_v52 = vld [vmem:[%s5052_s12 + $0x268] sm:$0xff]  ;;  %v551_v55 = vpack.c.bf16 %v457_v50, %v455_v49  ;;  %v391_v58 = vld [vmem:[%s5052_s12 + $0x40] sm:$0xff] }
  0x2f   : > { %707 = vmatprep.subr.bf16.mxu0 %v382_v5  ;;  %4540 = vmatprep.subr.bf16.mxu1 %v382_v5  ;;  %v462_v53 = vld [vmem:[%s5052_s12 + $0x278] sm:$0xff]  ;;  %v520_v56 = vpack.c.bf16 %v394_v51, %v392_v47  ;;  %v393_v59 = vld [vmem:[%s5052_s12 + $0x50] sm:$0xff]  ;;  %v396_v60 = vld [vmem:[%s5052_s12 + $0x68] sm:$0xff] }
  0x30   : > { %v554_v57 = vpack.c.bf16 %v462_v53, %v460_v52  ;;  %v459_v61 = vld [vmem:[%s5052_s12 + $0x260] sm:$0xff]  ;;  %v461_v62 = vld [vmem:[%s5052_s12 + $0x270] sm:$0xff]  ;;  %v398_v63 = vld [vmem:[%s5052_s12 + $0x78] sm:$0xff]  ;;  %v519_v2 = vpack.c.bf16 %v393_v59, %v391_v58 }
  0x31   : > { %v464_v0 = vld [vmem:[%s5052_s12 + $0x288] sm:$0xff]  ;;  %v466_v1 = vld [vmem:[%s5052_s12 + $0x298] sm:$0xff]  ;;  %v553_v3 = vpack.c.bf16 %v461_v62, %v459_v61  ;;  %v522_v4 = vpack.c.bf16 %v398_v63, %v396_v60  ;;  %v395_v6 = vld [vmem:[%s5052_s12 + $0x60] sm:$0xff] }
  0x32   : > { %708 = vmatpush2.bf16.msra.mxu0 %v381_v14  ;;  %4551 = vmatpush2.bf16.msra.mxu1 %v381_v14  ;;  %v556_v5 = vpack.c.bf16 %v466_v1, %v464_v0  ;;  %v397_v7 = vld [vmem:[%s5052_s12 + $0x70] sm:$0xff]  ;;  %v400_v8 = vld [vmem:[%s5052_s12 + $0x88] sm:$0xff]  ;;  %v463_v9 = vld [vmem:[%s5052_s12 + $0x280] sm:$0xff] }
  0x33   : > { %709 = vmatprep.subr.bf16.mxu0 %v380_v18  ;;  %4541 = vmatprep.subr.bf16.mxu1 %v380_v18  ;;  %v465_v10 = vld [vmem:[%s5052_s12 + $0x290] sm:$0xff]  ;;  %v402_v11 = vld [vmem:[%s5052_s12 + $0x98] sm:$0xff]  ;;  %v468_v12 = vld [vmem:[%s5052_s12 + $0x2a8] sm:$0xff]  ;;  %v521_v14 = vpack.c.bf16 %v397_v7, %v395_v6 }
  0x34   : > { %v470_v13 = vld [vmem:[%s5052_s12 + $0x2b8] sm:$0xff]  ;;  %v555_v15 = vpack.c.bf16 %v465_v10, %v463_v9  ;;  %v524_v16 = vpack.c.bf16 %v402_v11, %v400_v8  ;;  %v399_v18 = vld [vmem:[%s5052_s12 + $0x80] sm:$0xff]  ;;  %v401_v19 = vld [vmem:[%s5052_s12 + $0x90] sm:$0xff] }
  0x35   : > { %v558_v17 = vpack.c.bf16 %v470_v13, %v468_v12  ;;  %v404_v20 = vld [vmem:[%s5052_s12 + $0xa8] sm:$0xff]  ;;  %v467_v21 = vld [vmem:[%s5052_s12 + $0x2a0] sm:$0xff]  ;;  %v469_v22 = vld [vmem:[%s5052_s12 + $0x2b0] sm:$0xff]  ;;  %v523_v26 = vpack.c.bf16 %v401_v19, %v399_v18 }
  0x36   : > { %710 = vmatpush2.bf16.msra.mxu0 %v379_v24  ;;  %4552 = vmatpush2.bf16.msra.mxu1 %v379_v24  ;;  %v406_v23 = vld [vmem:[%s5052_s12 + $0xb8] sm:$0xff]  ;;  %v472_v24 = vld [vmem:[%s5052_s12 + $0x2c8] sm:$0xff]  ;;  %v403_v30 = vld [vmem:[%s5052_s12 + $0xa0] sm:$0xff] }
  0x37   : > { %711 = vmatprep.subr.bf16.mxu0 %v378_v27  ;;  %4542 = vmatprep.subr.bf16.mxu1 %v378_v27  ;;  %v474_v25 = vld [vmem:[%s5052_s12 + $0x2d8] sm:$0xff]  ;;  %v557_v27 = vpack.c.bf16 %v469_v22, %v467_v21  ;;  %v526_v28 = vpack.c.bf16 %v406_v23, %v404_v20  ;;  %v405_v31 = vld [vmem:[%s5052_s12 + $0xb0] sm:$0xff]  ;;  %v471_v33 = vld [vmem:[%s5052_s12 + $0x2c0] sm:$0xff] }
  0x38   : > { %v560_v29 = vpack.c.bf16 %v474_v25, %v472_v24  ;;  %v473_v34 = vld [vmem:[%s5052_s12 + $0x2d0] sm:$0xff]  ;;  %v410_v35 = vld [vmem:[%s5052_s12 + $0xd8] sm:$0xff]  ;;  %v476_v36 = vld [vmem:[%s5052_s12 + $0x2e8] sm:$0xff]  ;;  %v525_v38 = vpack.c.bf16 %v405_v31, %v403_v30 }
  0x39   : > { %v478_v37 = vld [vmem:[%s5052_s12 + $0x2f8] sm:$0xff]  ;;  %v559_v39 = vpack.c.bf16 %v473_v34, %v471_v33  ;;  %v412_v45 = vld [vmem:[%s5052_s12 + $0xe8] sm:$0xff]  ;;  %v475_v46 = vld [vmem:[%s5052_s12 + $0x2e0] sm:$0xff] }
  0x3a   : > { %712 = vmatpush2.bf16.msra.mxu0 %v377_v32  ;;  %4553 = vmatpush2.bf16.msra.mxu1 %v377_v32  ;;  %v408_v32 = vld [vmem:[%s5052_s12 + $0xc8] sm:$0xff]  ;;  %v477_v47 = vld [vmem:[%s5052_s12 + $0x2f0] sm:$0xff]  ;;  %v414_v49 = vld [vmem:[%s5052_s12 + $0xf8] sm:$0xff] }
  0x3b   : > { %1247 = vmatprep.subr.mxu1 %v4792_v43  ;;  %2500 = vmatprep.subr.mxu0 %v4792_v43  ;;  %v480_v50 = vld [vmem:[%s5052_s12 + $0x308] sm:$0xff]  ;;  %v482_v51 = vld [vmem:[%s5052_s12 + $0x318] sm:$0xff]  ;;  %v561_v53 = vpack.c.bf16 %v477_v47, %v475_v46  ;;  %v479_v59 = vld [vmem:[%s5052_s12 + $0x300] sm:$0xff] }
  0x3c   : > { %v416_v58 = vld [vmem:[%s5052_s12 + $0x108] sm:$0xff]  ;;  %v481_v60 = vld [vmem:[%s5052_s12 + $0x310] sm:$0xff]  ;;  %v418_v61 = vld [vmem:[%s5052_s12 + $0x118] sm:$0xff] }
  0x3d   : > { %714 = vmatmul.mubr.bf16.vlgmr.msra.gmra.mxu0 %v515_v40  ;;  %884 = vmatmul.mubr.bf16.vlgmr.msra.gmra.mxu1 %v549_v41  ;;  %v528_v40 = vpack.c.bf16 %v410_v35, %v408_v32  ;;  %v562_v41 = vpack.c.bf16 %v478_v37, %v476_v36  ;;  %v484_v62 = vld [vmem:[%s5052_s12 + $0x328] sm:$0xff]  ;;  %v486_v63 = vld [vmem:[%s5052_s12 + $0x338] sm:$0xff]  ;;  %v563_v1 = vpack.c.bf16 %v481_v60, %v479_v59  ;;  %v483_v7 = vld [vmem:[%s5052_s12 + $0x320] sm:$0xff] }
  0x3e   : > { %4362 = vmatprep.mubr.msk.bf16.mxu0 %vm581_vm0, %v518_v42  ;;  %1248 = vmatpush1.msra.mxu1 %v4793_v48  ;;  %v407_v42 = vld [vmem:[%s5052_s12 + $0xc0] sm:$0xff]  ;;  %v420_v6 = vld [vmem:[%s5052_s12 + $0x128] sm:$0xff]  ;;  %v485_v8 = vld [vmem:[%s5052_s12 + $0x330] sm:$0xff] }
  0x3f   : > { %4379 = vmatprep.mubr.msk.bf16.mxu1 %vm581_vm0, %v552_v44  ;;  %1249 = vmatprep.subr.mxu1 %v4792_v43  ;;  %v409_v44 = vld [vmem:[%s5052_s12 + $0xd0] sm:$0xff]  ;;  %v422_v9 = vld [vmem:[%s5052_s12 + $0x138] sm:$0xff]  ;;  %v488_v10 = vld [vmem:[%s5052_s12 + $0x348] sm:$0xff]  ;;  %v565_v13 = vpack.c.bf16 %v485_v8, %v483_v7 }
  0x40   : > { %1250 = vmatpush1.msra.mxu1 %v4793_v48  ;;  %2501 = vmatpush1.msra.mxu0 %v4793_v48  ;;  %v527_v52 = vpack.c.bf16 %v409_v44, %v407_v42  ;;  %v490_v11 = vld [vmem:[%s5052_s12 + $0x358] sm:$0xff]  ;;  %v424_v18 = vld [vmem:[%s5052_s12 + $0x148] sm:$0xff]  ;;  %v487_v19 = vld [vmem:[%s5052_s12 + $0x340] sm:$0xff] }
  0x41   : > { %1251 = vmatprep.subr.mxu1 %v4792_v43  ;;  %2502 = vmatprep.subr.mxu0 %v4792_v43  ;;  %v489_v20 = vld [vmem:[%s5052_s12 + $0x350] sm:$0xff]  ;;  %v426_v21 = vld [vmem:[%s5052_s12 + $0x158] sm:$0xff]  ;;  %v492_v22 = vld [vmem:[%s5052_s12 + $0x368] sm:$0xff] }
  0x42   : > { %1252 = vmatpush1.msra.mxu1 %v4793_v48  ;;  %2503 = vmatpush1.msra.mxu0 %v4793_v48  ;;  %v494_v23 = vld [vmem:[%s5052_s12 + $0x378] sm:$0xff]  ;;  %v567_v25 = vpack.c.bf16 %v489_v20, %v487_v19  ;;  %v428_v30 = vld [vmem:[%s5052_s12 + $0x168] sm:$0xff]  ;;  %v491_v31 = vld [vmem:[%s5052_s12 + $0x360] sm:$0xff] }
  0x43   : > { %1253 = vmatprep.subr.mxu1 %v4792_v43  ;;  %2504 = vmatprep.subr.mxu0 %v4792_v43  ;;  %v493_v32 = vld [vmem:[%s5052_s12 + $0x370] sm:$0xff]  ;;  %v430_v33 = vld [vmem:[%s5052_s12 + $0x178] sm:$0xff]  ;;  %v496_v34 = vld [vmem:[%s5052_s12 + $0x388] sm:$0xff] }
  0x44   : > { %1254 = vmatpush1.msra.mxu1 %v4793_v48  ;;  %2505 = vmatpush1.msra.mxu0 %v4793_v48  ;;  %v498_v35 = vld [vmem:[%s5052_s12 + $0x398] sm:$0xff]  ;;  %v569_v37 = vpack.c.bf16 %v493_v32, %v491_v31  ;;  %v432_v42 = vld [vmem:[%s5052_s12 + $0x188] sm:$0xff]  ;;  %v495_v44 = vld [vmem:[%s5052_s12 + $0x380] sm:$0xff] }
  0x45   : > { %724 = vmatmul.mubr.bf16.gmra.mxu0 %v517_v54  ;;  %894 = vmatmul.mubr.bf16.gmra.mxu1 %v551_v55  ;;  %v530_v54 = vpack.c.bf16 %v414_v49, %v412_v45  ;;  %v564_v55 = vpack.c.bf16 %v482_v51, %v480_v50  ;;  %v497_v45 = vld [vmem:[%s5052_s12 + $0x390] sm:$0xff]  ;;  %v434_v46 = vld [vmem:[%s5052_s12 + $0x198] sm:$0xff]  ;;  %v500_v47 = vld [vmem:[%s5052_s12 + $0x3a8] sm:$0xff] }
  0x46   : > { %4363 = vmatprep.mubr.msk.bf16.mxu0 %vm581_vm0, %v520_v56  ;;  %4380 = vmatprep.mubr.msk.bf16.mxu1 %vm581_vm0, %v554_v57  ;;  %v411_v56 = vld [vmem:[%s5052_s12 + $0xe0] sm:$0xff]  ;;  %v413_v57 = vld [vmem:[%s5052_s12 + $0xf0] sm:$0xff]  ;;  %v502_v49 = vld [vmem:[%s5052_s12 + $0x3b8] sm:$0xff]  ;;  %v571_v51 = vpack.c.bf16 %v497_v45, %v495_v44 }
  0x47   : > { %1255 = vmatprep.subr.mxu1 %v4792_v43  ;;  %2506 = vmatprep.subr.mxu0 %v4792_v43  ;;  %v529_v0 = vpack.c.bf16 %v413_v57, %v411_v56  ;;  %v436_v56 = vld [vmem:[%s5052_s12 + $0x1a8] sm:$0xff]  ;;  %v499_v57 = vld [vmem:[%s5052_s12 + $0x3a0] sm:$0xff]  ;;  %v438_v59 = vld [vmem:[%s5052_s12 + $0x1b8] sm:$0xff] }
  0x48   : > { %1256 = vmatpush1.msra.mxu1 %v4793_v48  ;;  %2507 = vmatpush1.msra.mxu0 %v4793_v48  ;;  %v504_v60 = vld [vmem:[%s5052_s12 + $0x3c8] sm:$0xff]  ;;  %v442_v7 = vld [vmem:[%s5052_s12 + $0x1d8] sm:$0xff] }
  0x49   : > { %1257 = vmatprep.subr.mxu1 %v4792_v43  ;;  %2508 = vmatprep.subr.mxu0 %v4792_v43  ;;  %v508_v8 = vld [vmem:[%s5052_s12 + $0x3e8] sm:$0xff]  ;;  %v446_v19 = vld [vmem:[%s5052_s12 + $0x1f8] sm:$0xff] }
  0x4a   : > { %1258 = vmatpush1.msra.mxu1 %v4793_v48  ;;  %2509 = vmatpush1.msra.mxu0 %v4793_v48  ;;  %v512_v20 = vld [vmem:[%s5052_s12 + $0x408] sm:$0xff]  ;;  %v450_v31 = vld [vmem:[%s5052_s12 + $0x218] sm:$0xff] }
  0x4b   : > { %1259 = vmatprep.subr.mxu1 %v4792_v43  ;;  %2510 = vmatprep.subr.mxu0 %v4792_v43 }
  0x4c   : > { %1260 = vmatpush1.msra.mxu1 %v4793_v48  ;;  %2511 = vmatpush1.msra.mxu0 %v4793_v48 }
  0x4d   : > { %734 = vmatmul.mubr.bf16.gmra.mxu0 %v519_v2  ;;  %904 = vmatmul.mubr.bf16.gmra.mxu1 %v553_v3  ;;  %v532_v2 = vpack.c.bf16 %v418_v61, %v416_v58  ;;  %v566_v3 = vpack.c.bf16 %v486_v63, %v484_v62  ;;  %v501_v58 = vld [vmem:[%s5052_s12 + $0x3b0] sm:$0xff]  ;;  %v506_v61 = vld [vmem:[%s5052_s12 + $0x3d8] sm:$0xff] }
  0x4e   : > { %4364 = vmatprep.mubr.msk.bf16.mxu0 %vm581_vm0, %v522_v4  ;;  %4381 = vmatprep.mubr.msk.bf16.mxu1 %vm581_vm0, %v556_v5  ;;  %v415_v4 = vld [vmem:[%s5052_s12 + $0x100] sm:$0xff]  ;;  %v417_v5 = vld [vmem:[%s5052_s12 + $0x110] sm:$0xff]  ;;  %v573_v63 = vpack.c.bf16 %v501_v58, %v499_v57 }
  0x4f   : > { %1261 = vmatprep.subr.mxu1 %v4792_v43  ;;  %2512 = vmatprep.subr.mxu0 %v4792_v43  ;;  %v531_v12 = vpack.c.bf16 %v417_v5, %v415_v4  ;;  %v440_v4 = vld [vmem:[%s5052_s12 + $0x1c8] sm:$0xff]  ;;  %v503_v5 = vld [vmem:[%s5052_s12 + $0x3c0] sm:$0xff] }
  0x50   : > { %1262 = vmatpush1.msra.mxu1 %v4793_v48  ;;  %2513 = vmatpush1.msra.mxu0 %v4793_v48 }
  0x51   : > { %1263 = vmatprep.subr.mxu1 %v4792_v43  ;;  %2514 = vmatprep.subr.mxu0 %v4792_v43 }
  0x52   : > { %1264 = vmatpush1.msra.mxu1 %v4793_v48  ;;  %2515 = vmatpush1.msra.mxu0 %v4793_v48 }
  0x53   : > { %1265 = vmatprep.subr.mxu1 %v4792_v43  ;;  %2516 = vmatprep.subr.mxu0 %v4792_v43 }
  0x54   : > { %1266 = vmatpush1.msra.mxu1 %v4793_v48  ;;  %2517 = vmatpush1.msra.mxu0 %v4793_v48 }
  0x55   : > { %744 = vmatmul.mubr.bf16.gmra.mxu0 %v521_v14  ;;  %914 = vmatmul.mubr.bf16.gmra.mxu1 %v555_v15  ;;  %v534_v14 = vpack.c.bf16 %v422_v9, %v420_v6  ;;  %v568_v15 = vpack.c.bf16 %v490_v11, %v488_v10  ;;  %v505_v6 = vld [vmem:[%s5052_s12 + $0x3d0] sm:$0xff]  ;;  %v510_v9 = vld [vmem:[%s5052_s12 + $0x3f8] sm:$0xff] }
  0x56   : > { %4365 = vmatprep.mubr.msk.bf16.mxu0 %vm581_vm0, %v524_v16  ;;  %4382 = vmatprep.mubr.msk.bf16.mxu1 %vm581_vm0, %v558_v17  ;;  %v419_v16 = vld [vmem:[%s5052_s12 + $0x120] sm:$0xff]  ;;  %v421_v17 = vld [vmem:[%s5052_s12 + $0x130] sm:$0xff]  ;;  %v575_v11 = vpack.c.bf16 %v505_v6, %v503_v5 }
  0x57   : > { %1267 = vmatprep.subr.mxu1 %v4792_v43  ;;  %2518 = vmatprep.subr.mxu0 %v4792_v43  ;;  %v533_v24 = vpack.c.bf16 %v421_v17, %v419_v16  ;;  %v444_v16 = vld [vmem:[%s5052_s12 + $0x1e8] sm:$0xff]  ;;  %v507_v17 = vld [vmem:[%s5052_s12 + $0x3e0] sm:$0xff] }
  0x58   : > { %1268 = vmatpush1.msra.mxu1 %v4793_v48  ;;  %2519 = vmatpush1.msra.mxu0 %v4793_v48 }
  0x59   : > { %1269 = vmatprep.subr.mxu1 %v4792_v43  ;;  %2520 = vmatprep.subr.mxu0 %v4792_v43 }
  0x5a   : > { %1270 = vmatpush1.msra.mxu1 %v4793_v48  ;;  %2521 = vmatpush1.msra.mxu0 %v4793_v48 }
  0x5b   : > { %1271 = vmatprep.subr.mxu1 %v4792_v43  ;;  %2522 = vmatprep.subr.mxu0 %v4792_v43 }
  0x5c   : > { %1272 = vmatpush1.msra.mxu1 %v4793_v48  ;;  %2523 = vmatpush1.msra.mxu0 %v4793_v48 }
  0x5d   : > { %754 = vmatmul.mubr.bf16.gmra.mxu0 %v523_v26  ;;  %924 = vmatmul.mubr.bf16.gmra.mxu1 %v557_v27  ;;  %v536_v26 = vpack.c.bf16 %v426_v21, %v424_v18  ;;  %v570_v27 = vpack.c.bf16 %v494_v23, %v492_v22  ;;  %v509_v18 = vld [vmem:[%s5052_s12 + $0x3f0] sm:$0xff]  ;;  %v514_v21 = vld [vmem:[%s5052_s12 + $0x418] sm:$0xff] }
  0x5e   : > { %4366 = vmatprep.mubr.msk.bf16.mxu0 %vm581_vm0, %v526_v28  ;;  %4383 = vmatprep.mubr.msk.bf16.mxu1 %vm581_vm0, %v560_v29  ;;  %v423_v28 = vld [vmem:[%s5052_s12 + $0x140] sm:$0xff]  ;;  %v425_v29 = vld [vmem:[%s5052_s12 + $0x150] sm:$0xff]  ;;  %v577_v23 = vpack.c.bf16 %v509_v18, %v507_v17 }
  0x5f   : > { %1273 = vmatprep.subr.mxu1 %v4792_v43  ;;  %2524 = vmatprep.subr.mxu0 %v4792_v43  ;;  %v535_v36 = vpack.c.bf16 %v425_v29, %v423_v28  ;;  %v511_v28 = vld [vmem:[%s5052_s12 + $0x400] sm:$0xff]  ;;  %v513_v29 = vld [vmem:[%s5052_s12 + $0x410] sm:$0xff] }
  0x60   : > { %1274 = vmatpush1.msra.mxu1 %v4793_v48  ;;  %2525 = vmatpush1.msra.mxu0 %v4793_v48 }
  0x61   : > { %1275 = vmatprep.subr.mxu1 %v4792_v43  ;;  %2526 = vmatprep.subr.mxu0 %v4792_v43 }
  0x62   : > { %1276 = vmatpush1.msra.mxu1 %v4793_v48  ;;  %2527 = vmatpush1.msra.mxu0 %v4793_v48 }
  0x63   : > { %1277 = vmatprep.subr.mxu1 %v4792_v43  ;;  %2528 = vmatprep.subr.mxu0 %v4792_v43 }
  0x64   : > { %1278 = vmatpush1.msra.mxu1 %v4793_v48  ;;  %2529 = vmatpush1.msra.mxu0 %v4793_v48 }
  0x65   : > { %764 = vmatmul.mubr.bf16.gmra.mxu0 %v525_v38  ;;  %934 = vmatmul.mubr.bf16.gmra.mxu1 %v559_v39  ;;  %v538_v38 = vpack.c.bf16 %v430_v33, %v428_v30  ;;  %v572_v39 = vpack.c.bf16 %v498_v35, %v496_v34  ;;  %v448_v30 = vld [vmem:[%s5052_s12 + $0x208] sm:$0xff]  ;;  %v579_v33 = vpack.c.bf16 %v513_v29, %v511_v28  ;;  %v447_v35 = vld [vmem:[%s5052_s12 + $0x200] sm:$0xff] }
  0x66   : > { %4367 = vmatprep.mubr.msk.bf16.mxu0 %vm581_vm0, %v528_v40  ;;  %4384 = vmatprep.mubr.msk.bf16.mxu1 %vm581_vm0, %v562_v41  ;;  %v427_v40 = vld [vmem:[%s5052_s12 + $0x160] sm:$0xff]  ;;  %v429_v41 = vld [vmem:[%s5052_s12 + $0x170] sm:$0xff]  ;;  %v548_v34 = vpack.c.bf16 %v450_v31, %v448_v30 }
  0x67   : > { %1293 = vmatprep.subr.mxu1 %v4792_v43  ;;  %2530 = vmatprep.subr.mxu0 %v4792_v43  ;;  %v537_v50 = vpack.c.bf16 %v429_v41, %v427_v40 }
  0x68   : > { %4394 = vmatpush2.msk.msra.mxu1 %vm1243_vm1, %v4793_v48  ;;  %2531 = vmatpush1.msra.mxu0 %v4793_v48 }
  0x69   : > { %1295 = vmatprep.subr.mxu1 %v4792_v43  ;;  %2546 = vmatprep.subr.mxu0 %v4792_v43 }
  0x6a   : > { %1296 = vmatpush2.msra.mxu1 %v4793_v48  ;;  %4461 = vmatpush2.msk.msra.mxu0 %vm1243_vm1, %v4793_v48 }
  0x6b   : > { %1297 = vmatprep.subr.mxu1 %v4792_v43  ;;  %2548 = vmatprep.subr.mxu0 %v4792_v43 }
  0x6c   : > { %1298 = vmatpush2.msra.mxu1 %v4793_v48  ;;  %2549 = vmatpush2.msra.mxu0 %v4793_v48 }
  0x6d   : > { %774 = vmatmul.mubr.bf16.gmra.mxu0 %v527_v52  ;;  %944 = vmatmul.mubr.bf16.gmra.mxu1 %v561_v53  ;;  %v540_v52 = vpack.c.bf16 %v434_v46, %v432_v42  ;;  %v574_v53 = vpack.c.bf16 %v502_v49, %v500_v47 }
  0x6e   : > { %4368 = vmatprep.mubr.msk.bf16.mxu0 %vm581_vm0, %v530_v54  ;;  %4385 = vmatprep.mubr.msk.bf16.mxu1 %vm581_vm0, %v564_v55  ;;  %v431_v54 = vld [vmem:[%s5052_s12 + $0x180] sm:$0xff]  ;;  %v433_v55 = vld [vmem:[%s5052_s12 + $0x190] sm:$0xff] }
  0x6f   : > { %1299 = vmatprep.subr.mxu1 %v4792_v43  ;;  %2550 = vmatprep.subr.mxu0 %v4792_v43  ;;  %v539_v62 = vpack.c.bf16 %v433_v55, %v431_v54 }
  0x70   : > { %1300 = vmatpush2.msra.mxu1 %v4793_v48  ;;  %2551 = vmatpush2.msra.mxu0 %v4793_v48 }
  0x71   : > { %1301 = vmatprep.subr.mxu1 %v4792_v43  ;;  %2552 = vmatprep.subr.mxu0 %v4792_v43 }
  0x72   : > { %1302 = vmatpush2.msra.mxu1 %v4793_v48  ;;  %2553 = vmatpush2.msra.mxu0 %v4793_v48 }
  0x73   : > { %1303 = vmatprep.subr.mxu1 %v4792_v43  ;;  %2554 = vmatprep.subr.mxu0 %v4792_v43 }
  0x74   : > { %1304 = vmatpush2.msra.mxu1 %v4793_v48  ;;  %2555 = vmatpush2.msra.mxu0 %v4793_v48 }
  0x75   : > { %784 = vmatmul.mubr.bf16.gmra.mxu0 %v529_v0  ;;  %954 = vmatmul.mubr.bf16.gmra.mxu1 %v563_v1  ;;  %v542_v0 = vpack.c.bf16 %v438_v59, %v436_v56  ;;  %v576_v1 = vpack.c.bf16 %v506_v61, %v504_v60 }
  0x76   : > { %4369 = vmatprep.mubr.msk.bf16.mxu0 %vm581_vm0, %v532_v2  ;;  %4386 = vmatprep.mubr.msk.bf16.mxu1 %vm581_vm0, %v566_v3  ;;  %v435_v2 = vld [vmem:[%s5052_s12 + $0x1a0] sm:$0xff]  ;;  %v437_v3 = vld [vmem:[%s5052_s12 + $0x1b0] sm:$0xff] }
  0x77   : > { %1305 = vmatprep.subr.mxu1 %v4792_v43  ;;  %2556 = vmatprep.subr.mxu0 %v4792_v43  ;;  %v541_v10 = vpack.c.bf16 %v437_v3, %v435_v2 }
  0x78   : > { %1306 = vmatpush2.msra.mxu1 %v4793_v48  ;;  %2557 = vmatpush2.msra.mxu0 %v4793_v48 }
  0x79   : > { %1307 = vmatprep.subr.mxu1 %v4792_v43  ;;  %2558 = vmatprep.subr.mxu0 %v4792_v43 }
  0x7a   : > { %1308 = vmatpush2.msra.mxu1 %v4793_v48  ;;  %2559 = vmatpush2.msra.mxu0 %v4793_v48 }
  0x7b   : > { %1309 = vmatprep.subr.mxu1 %v4792_v43  ;;  %2560 = vmatprep.subr.mxu0 %v4792_v43 }
  0x7c   : > { %1310 = vmatpush2.msra.mxu1 %v4793_v48  ;;  %2561 = vmatpush2.msra.mxu0 %v4793_v48 }
  0x7d   : > { %794 = vmatmul.mubr.bf16.gmra.mxu0 %v531_v12  ;;  %964 = vmatmul.mubr.bf16.gmra.mxu1 %v565_v13  ;;  %v544_v12 = vpack.c.bf16 %v442_v7, %v440_v4  ;;  %v578_v13 = vpack.c.bf16 %v510_v9, %v508_v8 }
  0x7e   : > { %4370 = vmatprep.mubr.msk.bf16.mxu0 %vm581_vm0, %v534_v14  ;;  %4387 = vmatprep.mubr.msk.bf16.mxu1 %vm581_vm0, %v568_v15  ;;  %v439_v14 = vld [vmem:[%s5052_s12 + $0x1c0] sm:$0xff]  ;;  %v441_v15 = vld [vmem:[%s5052_s12 + $0x1d0] sm:$0xff] }
  0x7f   : > { %4554 = vmatprep.subr.mxu1 %v4792_v43  ;;  %2562 = vmatprep.subr.mxu0 %v4792_v43  ;;  %v543_v22 = vpack.c.bf16 %v441_v15, %v439_v14 }
  0x80   : > { %2563 = vmatpush2.msra.mxu0 %v4793_v48 }
  0x85   : > { %804 = vmatmul.mubr.bf16.gmra.mxu0 %v533_v24  ;;  %974 = vmatmul.mubr.bf16.gmra.mxu1 %v567_v25  ;;  %v546_v24 = vpack.c.bf16 %v446_v19, %v444_v16  ;;  %v580_v25 = vpack.c.bf16 %v514_v21, %v512_v20 }
  0x86   : > { %4371 = vmatprep.mubr.msk.bf16.mxu0 %vm581_vm0, %v536_v26  ;;  %4388 = vmatprep.mubr.msk.bf16.mxu1 %vm581_vm0, %v570_v27  ;;  %v443_v26 = vld [vmem:[%s5052_s12 + $0x1e0] sm:$0xff]  ;;  %v445_v27 = vld [vmem:[%s5052_s12 + $0x1f0] sm:$0xff] }
  0x87   : > { %v545_v32 = vpack.c.bf16 %v445_v27, %v443_v26 }
  0x8d   : > { %814 = vmatmul.mubr.bf16.gmra.mxu0 %v535_v36  ;;  %984 = vmatmul.mubr.bf16.gmra.mxu1 %v569_v37  ;;  %v449_v36 = vld [vmem:[%s5052_s12 + $0x210] sm:$0xff]  ;;  %s4358_s12 = sshll.u32 %s8239_s17, 3 }
  0x8e   : > { %4372 = vmatprep.mubr.msk.bf16.mxu0 %vm581_vm0, %v538_v38  ;;  %4389 = vmatprep.mubr.msk.bf16.mxu1 %vm581_vm0, %v572_v39  ;;  %v547_v37 = vpack.c.bf16 %v449_v36, %v447_v35  ;;  %s6266_s8 = scalar_lea.vmem %s7516_s3, %s4358_s12 }
  0x95   : > { %824 = vmatmul.mubr.bf16.gmra.mxu0 %v537_v50  ;;  %994 = vmatmul.mubr.bf16.gmra.mxu1 %v571_v51 }
  0x96   : > { %4373 = vmatprep.mubr.msk.bf16.mxu0 %vm581_vm0, %v540_v52  ;;  %4390 = vmatprep.mubr.msk.bf16.mxu1 %vm581_vm0, %v574_v53 }
  0x9d   : > { %834 = vmatmul.mubr.bf16.gmra.mxu0 %v539_v62  ;;  %1004 = vmatmul.mubr.bf16.gmra.mxu1 %v573_v63 }
  0x9e   : > { %4374 = vmatprep.mubr.msk.bf16.mxu0 %vm581_vm0, %v542_v0  ;;  %4391 = vmatprep.mubr.msk.bf16.mxu1 %vm581_vm0, %v576_v1 }
  0xa5   : > { %844 = vmatmul.mubr.bf16.gmra.mxu0 %v541_v10  ;;  %1014 = vmatmul.mubr.bf16.gmra.mxu1 %v575_v11 }
  0xa6   : > { %4375 = vmatprep.mubr.msk.bf16.mxu0 %vm581_vm0, %v544_v12  ;;  %4392 = vmatprep.mubr.msk.bf16.mxu1 %vm581_vm0, %v578_v13 }
  0xad   : > { %854 = vmatmul.mubr.bf16.gmra.mxu0 %v543_v22  ;;  %1024 = vmatmul.mubr.bf16.gmra.mxu1 %v577_v23 }
  0xae   : > { %4376 = vmatprep.mubr.msk.bf16.mxu0 %vm581_vm0, %v546_v24  ;;  %4393 = vmatprep.mubr.msk.bf16.mxu1 %vm581_vm0, %v580_v25 }
  0xb5   : > { %864 = vmatmul.mubr.bf16.gmra.mxu0 %v545_v32  ;;  %1034 = vmatmul.mubr.bf16.gmra.mxu1 %v579_v33 }
  0xb6   : > { %4377 = vmatprep.mubr.msk.bf16.mxu0 %vm581_vm0, %v548_v34 }
  0xbd   : > { %874 = vmatmul.mubr.bf16.gmra.mxu0 %v547_v37 }
  0xfd   : > { %v5379_v38 = vpop.f32.mrf.mxu0  ;;  %v5381_v39 = vpop.f32.mrf.mxu1 }
  0xff   : > { %v5383_v40 = vpop.f32.mrf.mxu0  ;;  %v5385_v41 = vpop.f32.mrf.mxu1 }
 0x100   : > { %7760 = vst [vmem:[#allocation2_spill] sm:$0xff] %v5385_v41  ;;  %4395 = vmatprep.mubr.msk.f32.mxu1 %vm1044_vm2, %v5383_v40 }
 0x101   : > { %v5389_v42 = vpop.f32.mrf.mxu0  ;;  %1312 = vmatmul.mubr.f32.vlgmr.msra.gmra.mxu1 %v5379_v38  ;;  %v5392_v44 = vpop.f32.mrf.mxu1 }
 0x102   : > { %4579 = vmatpush1.msra.mxu1 %v4793_v48 }
 0x103   : > { %v5395_v45 = vpop.f32.mrf.mxu0  ;;  %v5397_v46 = vpop.f32.mrf.mxu1  ;;  %4555 = vmatprep.subr.mxu1 %v4792_v43 }
 0x104   : > { %7761 = vst [vmem:[#allocation3_spill] sm:$0xff] %v5397_v46  ;;  %4396 = vmatprep.mubr.msk.f32.mxu1 %vm1044_vm2, %v5395_v45  ;;  %4580 = vmatpush1.msra.mxu1 %v4793_v48 }
 0x105   : > { %v5403_v47 = vpop.f32.mrf.mxu0  ;;  %1317 = vmatmul.mubr.f32.gmra.mxu1 %v5389_v42  ;;  %v5406_v49 = vpop.f32.mrf.mxu1  ;;  %4556 = vmatprep.subr.mxu1 %v4792_v43 }
 0x106   : > { %4581 = vmatpush1.msra.mxu1 %v4793_v48 }
 0x107   : > { %v5410_v50 = vpop.f32.mrf.mxu0  ;;  %v5412_v51 = vpop.f32.mrf.mxu1  ;;  %4557 = vmatprep.subr.mxu1 %v4792_v43 }
 0x108   : > { %7762 = vst [vmem:[#allocation4_spill] sm:$0xff] %v5412_v51  ;;  %4397 = vmatprep.mubr.msk.f32.mxu1 %vm1044_vm2, %v5410_v50  ;;  %4582 = vmatpush1.msra.mxu1 %v4793_v48 }
 0x109   : > { %v5418_v52 = vpop.f32.mrf.mxu0  ;;  %1322 = vmatmul.mubr.f32.gmra.mxu1 %v5403_v47  ;;  %v5421_v53 = vpop.f32.mrf.mxu1  ;;  %4558 = vmatprep.subr.mxu1 %v4792_v43 }
 0x10a   : > { %4583 = vmatpush1.msra.mxu1 %v4793_v48 }
 0x10b   : > { %v5425_v54 = vpop.f32.mrf.mxu0  ;;  %v5427_v55 = vpop.f32.mrf.mxu1  ;;  %4559 = vmatprep.subr.mxu1 %v4792_v43 }
 0x10c   : > { %7763 = vst [vmem:[#allocation5_spill] sm:$0xff] %v5427_v55  ;;  %4398 = vmatprep.mubr.msk.f32.mxu1 %vm1044_vm2, %v5425_v54  ;;  %4584 = vmatpush1.msra.mxu1 %v4793_v48 }
 0x10d   : > { %v5433_v56 = vpop.f32.mrf.mxu0  ;;  %1327 = vmatmul.mubr.f32.gmra.mxu1 %v5418_v52  ;;  %v5436_v57 = vpop.f32.mrf.mxu1  ;;  %4560 = vmatprep.subr.mxu1 %v4792_v43 }
 0x10e   : > { %4585 = vmatpush1.msra.mxu1 %v4793_v48 }
 0x10f   : > { %v5440_v58 = vpop.f32.mrf.mxu0  ;;  %v5442_v59 = vpop.f32.mrf.mxu1  ;;  %4561 = vmatprep.subr.mxu1 %v4792_v43 }
 0x110   : > { %7764 = vst [vmem:[#allocation6_spill] sm:$0xff] %v5440_v58  ;;  %7765 = vst [vmem:[#allocation7_spill] sm:$0xff] %v5442_v59  ;;  %4399 = vmatprep.mubr.msk.f32.mxu1 %vm1044_vm2, %v5440_v58  ;;  %4586 = vmatpush1.msra.mxu1 %v4793_v48 }
 0x111   : > { %v5448_v60 = vpop.f32.mrf.mxu0  ;;  %1332 = vmatmul.mubr.f32.gmra.mxu1 %v5433_v56  ;;  %v5451_v61 = vpop.f32.mrf.mxu1  ;;  %4562 = vmatprep.subr.mxu1 %v4792_v43 }
 0x112   : > { %7766 = vst [vmem:[#allocation8_spill] sm:$0xff] %v5448_v60  ;;  %4587 = vmatpush1.msra.mxu1 %v4793_v48 }
 0x113   : > { %v5455_v62 = vpop.f32.mrf.mxu0  ;;  %v5457_v63 = vpop.f32.mrf.mxu1  ;;  %4563 = vmatprep.subr.mxu1 %v4792_v43 }
 0x114   : > { %7767 = vst [vmem:[#allocation9_spill] sm:$0xff] %v5455_v62  ;;  %7768 = vst [vmem:[#allocation10_spill] sm:$0xff] %v5457_v63  ;;  %4400 = vmatprep.mubr.msk.f32.mxu1 %vm1044_vm2, %v5455_v62  ;;  %4588 = vmatpush1.msra.mxu1 %v4793_v48 }
 0x115   : > { %v5463_v0 = vpop.f32.mrf.mxu0  ;;  %1337 = vmatmul.mubr.f32.gmra.mxu1 %v5448_v60  ;;  %v5466_v1 = vpop.f32.mrf.mxu1  ;;  %4564 = vmatprep.subr.mxu1 %v4792_v43 }
 0x116   : > { %7769 = vst [vmem:[#allocation11_spill] sm:$0xff] %v5463_v0  ;;  %4589 = vmatpush1.msra.mxu1 %v4793_v48 }
 0x117   : > { %v5470_v2 = vpop.f32.mrf.mxu0  ;;  %v5472_v3 = vpop.f32.mrf.mxu1  ;;  %4565 = vmatprep.subr.mxu1 %v4792_v43 }
 0x118   : > { %7770 = vst [vmem:[#allocation12_spill] sm:$0xff] %v5470_v2  ;;  %7771 = vst [vmem:[#allocation13_spill] sm:$0xff] %v5472_v3  ;;  %4401 = vmatprep.mubr.msk.f32.mxu1 %vm1044_vm2, %v5470_v2  ;;  %4590 = vmatpush1.msra.mxu1 %v4793_v48 }
 0x119   : > { %v5478_v4 = vpop.f32.mrf.mxu0  ;;  %1342 = vmatmul.mubr.f32.gmra.mxu1 %v5463_v0  ;;  %v5481_v5 = vpop.f32.mrf.mxu1  ;;  %4566 = vmatprep.subr.mxu1 %v4792_v43 }
 0x11a   : > { %7772 = vst [vmem:[#allocation14_spill] sm:$0xff] %v5478_v4  ;;  %4591 = vmatpush1.msra.mxu1 %v4793_v48 }
 0x11b   : > { %v5485_v6 = vpop.f32.mrf.mxu0  ;;  %v5487_v7 = vpop.f32.mrf.mxu1  ;;  %4567 = vmatprep.subr.mxu1 %v4792_v43 }
 0x11c   : > { %7773 = vst [vmem:[#allocation15_spill] sm:$0xff] %v5485_v6  ;;  %7774 = vst [vmem:[#allocation16_spill] sm:$0xff] %v5487_v7  ;;  %4402 = vmatprep.mubr.msk.f32.mxu1 %vm1044_vm2, %v5485_v6  ;;  %4592 = vmatpush1.msra.mxu1 %v4793_v48 }
 0x11d   : > { %v5493_v8 = vpop.f32.mrf.mxu0  ;;  %1347 = vmatmul.mubr.f32.gmra.mxu1 %v5478_v4  ;;  %v5496_v9 = vpop.f32.mrf.mxu1  ;;  %4568 = vmatprep.subr.mxu1 %v4792_v43 }
 0x11e   : > { %7775 = vst [vmem:[#allocation17_spill] sm:$0xff] %v5493_v8  ;;  %4593 = vmatpush1.msra.mxu1 %v4793_v48 }
 0x11f   : > { %v5500_v10 = vpop.f32.mrf.mxu0  ;;  %v5502_v11 = vpop.f32.mrf.mxu1  ;;  %4569 = vmatprep.subr.mxu1 %v4792_v43 }
 0x120   : > { %7776 = vst [vmem:[#allocation18_spill] sm:$0xff] %v5500_v10  ;;  %7777 = vst [vmem:[#allocation19_spill] sm:$0xff] %v5502_v11  ;;  %4403 = vmatprep.mubr.msk.f32.mxu1 %vm1044_vm2, %v5500_v10  ;;  %4594 = vmatpush1.msra.mxu1 %v4793_v48 }
 0x121   : > { %v5508_v12 = vpop.f32.mrf.mxu0  ;;  %1352 = vmatmul.mubr.f32.gmra.mxu1 %v5493_v8  ;;  %v5511_v13 = vpop.f32.mrf.mxu1  ;;  %4570 = vmatprep.subr.mxu1 %v4792_v43 }
 0x122   : > { %7778 = vst [vmem:[#allocation20_spill] sm:$0xff] %v5508_v12  ;;  %7779 = vst [vmem:[#allocation21_spill] sm:$0xff] %v5511_v13  ;;  %4595 = vmatpush2.msk.msra.mxu1 %vm1243_vm1, %v4793_v48 }
 0x123   : > { %v5516_v14 = vpop.f32.mrf.mxu0  ;;  %v5518_v15 = vpop.f32.mrf.mxu1  ;;  %4571 = vmatprep.subr.mxu1 %v4792_v43 }
 0x124   : > { %7780 = vst [vmem:[#allocation22_spill] sm:$0xff] %v5516_v14  ;;  %7781 = vst [vmem:[#allocation23_spill] sm:$0xff] %v5518_v15  ;;  %4404 = vmatprep.mubr.msk.f32.mxu1 %vm1044_vm2, %v5516_v14  ;;  %4596 = vmatpush2.msra.mxu1 %v4793_v48 }
 0x125   : > { %v5524_v16 = vpop.f32.mrf.mxu0  ;;  %1357 = vmatmul.mubr.f32.gmra.mxu1 %v5508_v12  ;;  %v5527_v17 = vpop.f32.mrf.mxu1  ;;  %4572 = vmatprep.subr.mxu1 %v4792_v43 }
 0x126   : > { %7782 = vst [vmem:[#allocation24_spill] sm:$0xff] %v5524_v16  ;;  %7783 = vst [vmem:[#allocation25_spill] sm:$0xff] %v5527_v17  ;;  %4597 = vmatpush2.msra.mxu1 %v4793_v48 }
 0x127   : > { %v5531_v18 = vpop.f32.mrf.mxu0  ;;  %v5533_v19 = vpop.f32.mrf.mxu1  ;;  %4573 = vmatprep.subr.mxu1 %v4792_v43 }
 0x128   : > { %7784 = vst [vmem:[#allocation26_spill] sm:$0xff] %v5531_v18  ;;  %7785 = vst [vmem:[#allocation27_spill] sm:$0xff] %v5533_v19  ;;  %4405 = vmatprep.mubr.msk.f32.mxu1 %vm1044_vm2, %v5531_v18  ;;  %4598 = vmatpush2.msra.mxu1 %v4793_v48 }
 0x129   : > { %v5539_v20 = vpop.f32.mrf.mxu0  ;;  %1362 = vmatmul.mubr.f32.gmra.mxu1 %v5524_v16  ;;  %v5542_v21 = vpop.f32.mrf.mxu1  ;;  %4574 = vmatprep.subr.mxu1 %v4792_v43 }
 0x12a   : > { %7786 = vst [vmem:[#allocation28_spill] sm:$0xff] %v5539_v20  ;;  %7787 = vst [vmem:[#allocation29_spill] sm:$0xff] %v5542_v21  ;;  %4599 = vmatpush2.msra.mxu1 %v4793_v48 }
 0x12b   : > { %v5546_v22 = vpop.f32.mrf.mxu0  ;;  %v5548_v23 = vpop.f32.mrf.mxu1  ;;  %4575 = vmatprep.subr.mxu1 %v4792_v43 }
 0x12c   : > { %7788 = vst [vmem:[#allocation30_spill] sm:$0xff] %v5546_v22  ;;  %7789 = vst [vmem:[#allocation31_spill] sm:$0xff] %v5548_v23  ;;  %4406 = vmatprep.mubr.msk.f32.mxu1 %vm1044_vm2, %v5546_v22  ;;  %4600 = vmatpush2.msra.mxu1 %v4793_v48 }
 0x12d   : > { %v5554_v24 = vpop.f32.mrf.mxu0  ;;  %1367 = vmatmul.mubr.f32.gmra.mxu1 %v5539_v20  ;;  %v5557_v25 = vpop.f32.mrf.mxu1  ;;  %4576 = vmatprep.subr.mxu1 %v4792_v43 }
 0x12e   : > { %7790 = vst [vmem:[#allocation32_spill] sm:$0xff] %v5554_v24  ;;  %7791 = vst [vmem:[#allocation33_spill] sm:$0xff] %v5557_v25  ;;  %4601 = vmatpush2.msra.mxu1 %v4793_v48 }
 0x12f   : > { %v5561_v26 = vpop.f32.mrf.mxu0  ;;  %v5563_v27 = vpop.f32.mrf.mxu1  ;;  %4577 = vmatprep.subr.mxu1 %v4792_v43 }
 0x130   : > { %7792 = vst [vmem:[#allocation34_spill] sm:$0xff] %v5561_v26  ;;  %7793 = vst [vmem:[#allocation35_spill] sm:$0xff] %v5563_v27  ;;  %4407 = vmatprep.mubr.msk.f32.mxu1 %vm1044_vm2, %v5561_v26  ;;  %4602 = vmatpush2.msra.mxu1 %v4793_v48 }
 0x131   : > { %v5569_v28 = vpop.f32.mrf.mxu0  ;;  %1372 = vmatmul.mubr.f32.gmra.mxu1 %v5554_v24  ;;  %v5572_v29 = vpop.f32.mrf.mxu1  ;;  %4578 = vmatprep.subr.mxu1 %v4792_v43 }
 0x132   : > { %7794 = vst [vmem:[#allocation36_spill] sm:$0xff] %v5569_v28  ;;  %7795 = vst [vmem:[#allocation37_spill] sm:$0xff] %v5572_v29  ;;  %4603 = vmatpush2.msra.mxu1 %v4793_v48 }
 0x133   : > { %v5576_v30 = vpop.f32.mrf.mxu0  ;;  %v5578_v31 = vpop.f32.mrf.mxu1 }
 0x134   : > { %7796 = vst [vmem:[#allocation38_spill] sm:$0xff] %v5576_v30  ;;  %7797 = vst [vmem:[#allocation39_spill] sm:$0xff] %v5578_v31  ;;  %4408 = vmatprep.mubr.msk.f32.mxu1 %vm1044_vm2, %v5576_v30 }
 0x135   : > { %v5582_v32 = vpop.f32.mrf.mxu0  ;;  %1377 = vmatmul.mubr.f32.gmra.mxu1 %v5569_v28  ;;  %v5585_v33 = vpop.f32.mrf.mxu1 }
 0x136   : > { %7798 = vst [vmem:[#allocation40_spill] sm:$0xff] %v5582_v32 }
 0x137   : > { %v5587_v34 = vpop.f32.mrf.mxu0  ;;  %v5589_v35 = vpop.f32.mrf.mxu1 }
 0x138   : > { %7799 = vst [vmem:[#allocation41_spill] sm:$0xff] %v5587_v34  ;;  %7800 = vst [vmem:[#allocation42_spill] sm:$0xff] %v5589_v35  ;;  %4409 = vmatprep.mubr.msk.f32.mxu1 %vm1044_vm2, %v5587_v34 }
 0x139   : > { %v5593_v43 = vpop.f32.mrf.mxu0  ;;  %1382 = vmatmul.mubr.f32.gmra.mxu1 %v5582_v32  ;;  %v5598_v36 = vpop.f32.mrf.mxu1 }
 0x13a   : > { %7801 = vst [vmem:[#allocation43_spill] sm:$0xff] %v5593_v43 }
 0x13b   : > { %v5596_v48 = vpop.f32.mrf.mxu0  ;;  %v5607_v28 = vpop.f32.mrf.mxu1 }
 0x13c   : > { %7802 = vst [vmem:[#allocation44_spill] sm:$0xff] %v5596_v48  ;;  %4410 = vmatprep.mubr.msk.f32.mxu1 %vm1044_vm2, %v5596_v48  ;;  %v7529_v48 = vmov 0  }
 0x13d   : > { %v5602_v37 = vpop.f32.mrf.mxu0  ;;  %1387 = vmatmul.mubr.f32.gmra.mxu1 %v5593_v43  ;;  %v5616_v26 = vpop.f32.mrf.mxu1  ;;  %4616 = vset.pattern.permute.xlu0 %v7529_v48 }
 0x13e   : > { %7803 = vst [vmem:[#allocation45_spill] sm:$0xff] %v5602_v37  ;;  %4617 = vset.pattern.permute.xlu1 %v7529_v48 }
 0x13f   : > { %v5605_v30 = vpop.f32.mrf.mxu0  ;;  %v5627_v24 = vpop.f32.mrf.mxu1 }
 0x140   : > { %7804 = vst [vmem:[#allocation46_spill] sm:$0xff] %v5605_v30  ;;  %4411 = vmatprep.mubr.msk.f32.mxu1 %vm1044_vm2, %v5605_v30 }
 0x141   : > { %v5611_v34 = vpop.f32.mrf.mxu0  ;;  %1392 = vmatmul.mubr.f32.gmra.mxu1 %v5602_v37  ;;  %v5636_v48 = vpop.f32.mrf.mxu1 }
 0x142   : > { %7805 = vst [vmem:[#allocation47_spill] sm:$0xff] %v5611_v34 }
 0x143   : > { %v5614_v32 = vpop.f32.mrf.mxu0  ;;  %v5645_v20 = vpop.f32.mrf.mxu1 }
 0x144   : > { %7806 = vst [vmem:[#allocation48_spill] sm:$0xff] %v5614_v32  ;;  %4412 = vmatprep.mubr.msk.f32.mxu1 %vm1044_vm2, %v5614_v32 }
 0x145   : > { %v5622_v43 = vpop.f32.mrf.mxu0  ;;  %1397 = vmatmul.mubr.f32.gmra.mxu1 %v5611_v34  ;;  %v5654_v18 = vpop.f32.mrf.mxu1 }
 0x146   : > { %7807 = vst [vmem:[#allocation49_spill] sm:$0xff] %v5622_v43 }
 0x147   : > { %v5625_v30 = vpop.f32.mrf.mxu0  ;;  %v5663_v16 = vpop.f32.mrf.mxu1 }
 0x148   : > { %7808 = vst [vmem:[#allocation50_spill] sm:$0xff] %v5625_v30  ;;  %4413 = vmatprep.mubr.msk.f32.mxu1 %vm1044_vm2, %v5625_v30 }
 0x149   : > { %v5631_v37 = vpop.f32.mrf.mxu0  ;;  %1402 = vmatmul.mubr.f32.gmra.mxu1 %v5622_v43  ;;  %v5672_v14 = vpop.f32.mrf.mxu1 }
 0x14a   : > { %7809 = vst [vmem:[#allocation51_spill] sm:$0xff] %v5631_v37 }
 0x14b   : > { %v5634_v22 = vpop.f32.mrf.mxu0  ;;  %v5681_v12 = vpop.f32.mrf.mxu1 }
 0x14c   : > { %7810 = vst [vmem:[#allocation52_spill] sm:$0xff] %v5634_v22  ;;  %4414 = vmatprep.mubr.msk.f32.mxu1 %vm1044_vm2, %v5634_v22 }
 0x14d   : > { %v5640_v32 = vpop.f32.mrf.mxu0  ;;  %1407 = vmatmul.mubr.f32.gmra.mxu1 %v5631_v37  ;;  %v5690_v10 = vpop.f32.mrf.mxu1 }
 0x14e   : > { %7811 = vst [vmem:[#allocation53_spill] sm:$0xff] %v5640_v32 }
 0x14f   : > { %v5643_v34 = vpop.f32.mrf.mxu0  ;;  %v5699_v8 = vpop.f32.mrf.mxu1 }
 0x150   : > { %7812 = vst [vmem:[#allocation54_spill] sm:$0xff] %v5643_v34  ;;  %4415 = vmatprep.mubr.msk.f32.mxu1 %vm1044_vm2, %v5643_v34 }
 0x151   : > { %v5649_v30 = vpop.f32.mrf.mxu0  ;;  %1412 = vmatmul.mubr.f32.gmra.mxu1 %v5640_v32  ;;  %v5708_v6 = vpop.f32.mrf.mxu1 }
 0x152   : > { %7813 = vst [vmem:[#allocation55_spill] sm:$0xff] %v5649_v30 }
 0x153   : > { %v5652_v43 = vpop.f32.mrf.mxu0  ;;  %v5717_v4 = vpop.f32.mrf.mxu1 }
 0x154   : > { %7814 = vst [vmem:[#allocation56_spill] sm:$0xff] %v5652_v43  ;;  %4416 = vmatprep.mubr.msk.f32.mxu1 %vm1044_vm2, %v5652_v43 }
 0x155   : > { %v5658_v22 = vpop.f32.mrf.mxu0  ;;  %1417 = vmatmul.mubr.f32.gmra.mxu1 %v5649_v30  ;;  %v5726_v2 = vpop.f32.mrf.mxu1 }
 0x156   : > { %7815 = vst [vmem:[#allocation57_spill] sm:$0xff] %v5658_v22 }
 0x157   : > { %v5661_v37 = vpop.f32.mrf.mxu0  ;;  %v5735_v0 = vpop.f32.mrf.mxu1 }
 0x158   : > { %7816 = vst [vmem:[#allocation58_spill] sm:$0xff] %v5661_v37  ;;  %4417 = vmatprep.mubr.msk.f32.mxu1 %vm1044_vm2, %v5661_v37 }
 0x159   : > { %v5667_v34 = vpop.f32.mrf.mxu0  ;;  %1422 = vmatmul.mubr.f32.gmra.mxu1 %v5658_v22  ;;  %v5744_v62 = vpop.f32.mrf.mxu1 }
 0x15a   : > { %7817 = vst [vmem:[#allocation59_spill] sm:$0xff] %v5667_v34 }
 0x15b   : > { %v5670_v32 = vpop.f32.mrf.mxu0  ;;  %v5753_v60 = vpop.f32.mrf.mxu1 }
 0x15c   : > { %7818 = vst [vmem:[#allocation60_spill] sm:$0xff] %v5670_v32  ;;  %4418 = vmatprep.mubr.msk.f32.mxu1 %vm1044_vm2, %v5670_v32 }
 0x15d   : > { %v5676_v43 = vpop.f32.mrf.mxu0  ;;  %1427 = vmatmul.mubr.f32.gmra.mxu1 %v5667_v34  ;;  %v5762_v58 = vpop.f32.mrf.mxu1 }
 0x15e   : > { %7819 = vst [vmem:[#allocation61_spill] sm:$0xff] %v5676_v43 }
 0x15f   : > { %v5679_v30 = vpop.f32.mrf.mxu0 }
 0x160   : > { %7820 = vst [vmem:[#allocation62_spill] sm:$0xff] %v5679_v30  ;;  %4419 = vmatprep.mubr.msk.f32.mxu1 %vm1044_vm2, %v5679_v30 }
 0x161   : > { %v5685_v37 = vpop.f32.mrf.mxu0  ;;  %1432 = vmatmul.mubr.f32.gmra.mxu1 %v5676_v43 }
 0x162   : > { %7821 = vst [vmem:[#allocation63_spill] sm:$0xff] %v5685_v37 }
 0x163   : > { %v5688_v22 = vpop.f32.mrf.mxu0 }
 0x164   : > { %7822 = vst [vmem:[#allocation64_spill] sm:$0xff] %v5688_v22  ;;  %4420 = vmatprep.mubr.msk.f32.mxu1 %vm1044_vm2, %v5688_v22 }
 0x165   : > { %v5694_v32 = vpop.f32.mrf.mxu0  ;;  %1437 = vmatmul.mubr.f32.gmra.mxu1 %v5685_v37 }
 0x166   : > { %7823 = vst [vmem:[#allocation65_spill] sm:$0xff] %v5694_v32 }
 0x167   : > { %v5697_v34 = vpop.f32.mrf.mxu0 }
 0x168   : > { %7824 = vst [vmem:[#allocation66_spill] sm:$0xff] %v5697_v34  ;;  %4421 = vmatprep.mubr.msk.f32.mxu1 %vm1044_vm2, %v5697_v34 }
 0x169   : > { %v5703_v30 = vpop.f32.mrf.mxu0  ;;  %1442 = vmatmul.mubr.f32.gmra.mxu1 %v5694_v32 }
 0x16a   : > { %7825 = vst [vmem:[#allocation67_spill] sm:$0xff] %v5703_v30 }
 0x16b   : > { %v5706_v43 = vpop.f32.mrf.mxu0 }
 0x16c   : > { %7826 = vst [vmem:[#allocation68_spill] sm:$0xff] %v5706_v43  ;;  %4422 = vmatprep.mubr.msk.f32.mxu1 %vm1044_vm2, %v5706_v43 }
 0x16d   : > { %v5712_v22 = vpop.f32.mrf.mxu0  ;;  %1447 = vmatmul.mubr.f32.gmra.mxu1 %v5703_v30 }
 0x16e   : > { %7827 = vst [vmem:[#allocation69_spill] sm:$0xff] %v5712_v22 }
 0x16f   : > { %v5715_v37 = vpop.f32.mrf.mxu0 }
 0x170   : > { %7828 = vst [vmem:[#allocation70_spill] sm:$0xff] %v5715_v37  ;;  %4423 = vmatprep.mubr.msk.f32.mxu1 %vm1044_vm2, %v5715_v37 }
 0x171   : > { %v5721_v34 = vpop.f32.mrf.mxu0  ;;  %1452 = vmatmul.mubr.f32.gmra.mxu1 %v5712_v22 }
 0x172   : > { %7829 = vst [vmem:[#allocation71_spill] sm:$0xff] %v5721_v34 }
 0x173   : > { %v5724_v32 = vpop.f32.mrf.mxu0 }
 0x174   : > { %7830 = vst [vmem:[#allocation72_spill] sm:$0xff] %v5724_v32  ;;  %4424 = vmatprep.mubr.msk.f32.mxu1 %vm1044_vm2, %v5724_v32 }
 0x175   : > { %v5730_v43 = vpop.f32.mrf.mxu0  ;;  %1457 = vmatmul.mubr.f32.gmra.mxu1 %v5721_v34 }
 0x176   : > { %7831 = vst [vmem:[#allocation73_spill] sm:$0xff] %v5730_v43 }
 0x177   : > { %v5733_v30 = vpop.f32.mrf.mxu0 }
 0x178   : > { %7832 = vst [vmem:[#allocation74_spill] sm:$0xff] %v5733_v30  ;;  %4425 = vmatprep.mubr.msk.f32.mxu1 %vm1044_vm2, %v5733_v30 }
 0x179   : > { %v5739_v37 = vpop.f32.mrf.mxu0  ;;  %1462 = vmatmul.mubr.f32.gmra.mxu1 %v5730_v43 }
 0x17b   : > { %v5742_v22 = vpop.f32.mrf.mxu0 }
 0x17c   : > { %7833 = vst [vmem:[#allocation75_spill] sm:$0xff] %v5742_v22  ;;  %4426 = vmatprep.mubr.msk.f32.mxu1 %vm1044_vm2, %v5742_v22  ;;  %v5769_v22 = vpop.f32.mrf.mxu1 }
 0x17d   : > { %v5748_v32 = vpop.f32.mrf.mxu0  ;;  %1467 = vmatmul.mubr.f32.gmra.mxu1 %v5739_v37 }
 0x17f   : > { %v5751_v34 = vpop.f32.mrf.mxu0 }
 0x180   : > { %7834 = vst [vmem:[#allocation76_spill] sm:$0xff] %v5751_v34  ;;  %4427 = vmatprep.mubr.msk.f32.mxu1 %vm1044_vm2, %v5751_v34  ;;  %v5774_v34 = vpop.f32.mrf.mxu1 }
 0x181   : > { %v5757_v30 = vpop.f32.mrf.mxu0  ;;  %1472 = vmatmul.mubr.f32.gmra.mxu1 %v5748_v32 }
 0x183   : > { %v5760_v43 = vpop.f32.mrf.mxu0 }
 0x184   : > { %7835 = vst [vmem:[#allocation77_spill] sm:$0xff] %v5760_v43  ;;  %4428 = vmatprep.mubr.msk.f32.mxu1 %vm1044_vm2, %v5760_v43  ;;  %v5779_v43 = vpop.f32.mrf.mxu1 }
 0x185   : > { %1477 = vmatmul.mubr.f32.gmra.mxu1 %v5757_v30 }
 0x186   : > { %4429 = vmatprep.mubr.msk.f32.mxu1 %vm1044_vm2, %v5385_v41  ;;  %v5784_v41 = vpop.f32.mrf.mxu1 }
 0x189   : > { %1482 = vmatmul.mubr.f32.gmra.mxu1 %v5381_v39 }
 0x18a   : > { %4430 = vmatprep.mubr.msk.f32.mxu1 %vm1044_vm2, %v5397_v46  ;;  %v5789_v46 = vpop.f32.mrf.mxu1 }
 0x18d   : > { %1487 = vmatmul.mubr.f32.gmra.mxu1 %v5392_v44 }
 0x18e   : > { %4431 = vmatprep.mubr.msk.f32.mxu1 %vm1044_vm2, %v5412_v51  ;;  %v5794_v51 = vpop.f32.mrf.mxu1 }
 0x191   : > { %1492 = vmatmul.mubr.f32.gmra.mxu1 %v5406_v49 }
 0x192   : > { %4432 = vmatprep.mubr.msk.f32.mxu1 %vm1044_vm2, %v5427_v55  ;;  %v5799_v55 = vpop.f32.mrf.mxu1 }
 0x195   : > { %1497 = vmatmul.mubr.f32.gmra.mxu1 %v5421_v53 }
 0x196   : > { %4433 = vmatprep.mubr.msk.f32.mxu1 %vm1044_vm2, %v5442_v59  ;;  %v5804_v59 = vpop.f32.mrf.mxu1 }
 0x197   : > { %7836 = vst [vmem:[#allocation78_spill] sm:$0xff] %v5804_v59 }
 0x199   : > { %1502 = vmatmul.mubr.f32.gmra.mxu1 %v5436_v57 }
 0x19a   : > { %4434 = vmatprep.mubr.msk.f32.mxu1 %vm1044_vm2, %v5457_v63  ;;  %v5809_v63 = vpop.f32.mrf.mxu1 }
 0x19b   : > { %7837 = vst [vmem:[#allocation79_spill] sm:$0xff] %v5809_v63 }
 0x19d   : > { %1507 = vmatmul.mubr.f32.gmra.mxu1 %v5451_v61 }
 0x19e   : > { %4435 = vmatprep.mubr.msk.f32.mxu1 %vm1044_vm2, %v5472_v3  ;;  %v5814_v3 = vpop.f32.mrf.mxu1 }
 0x19f   : > { %7838 = vst [vmem:[#allocation80_spill] sm:$0xff] %v5814_v3 }
 0x1a1   : > { %1512 = vmatmul.mubr.f32.gmra.mxu1 %v5466_v1 }
 0x1a2   : > { %4436 = vmatprep.mubr.msk.f32.mxu1 %vm1044_vm2, %v5487_v7  ;;  %v5819_v7 = vpop.f32.mrf.mxu1 }
 0x1a3   : > { %7839 = vst [vmem:[#allocation81_spill] sm:$0xff] %v5819_v7 }
 0x1a5   : > { %1517 = vmatmul.mubr.f32.gmra.mxu1 %v5481_v5 }
 0x1a6   : > { %4437 = vmatprep.mubr.msk.f32.mxu1 %vm1044_vm2, %v5502_v11  ;;  %v5824_v11 = vpop.f32.mrf.mxu1 }
 0x1a7   : > { %7840 = vst [vmem:[#allocation82_spill] sm:$0xff] %v5824_v11 }
 0x1a9   : > { %1522 = vmatmul.mubr.f32.gmra.mxu1 %v5496_v9 }
 0x1aa   : > { %4438 = vmatprep.mubr.msk.f32.mxu1 %vm1044_vm2, %v5518_v15  ;;  %v5829_v15 = vpop.f32.mrf.mxu1 }
 0x1ab   : > { %7841 = vst [vmem:[#allocation83_spill] sm:$0xff] %v5829_v15 }
 0x1ad   : > { %1527 = vmatmul.mubr.f32.gmra.mxu1 %v5511_v13 }
 0x1ae   : > { %4439 = vmatprep.mubr.msk.f32.mxu1 %vm1044_vm2, %v5533_v19  ;;  %v5834_v19 = vpop.f32.mrf.mxu1 }
 0x1af   : > { %7842 = vst [vmem:[#allocation84_spill] sm:$0xff] %v5834_v19 }
 0x1b1   : > { %1532 = vmatmul.mubr.f32.gmra.mxu1 %v5527_v17 }
 0x1b2   : > { %4440 = vmatprep.mubr.msk.f32.mxu1 %vm1044_vm2, %v5548_v23  ;;  %v5839_v23 = vpop.f32.mrf.mxu1 }
 0x1b3   : > { %7843 = vst [vmem:[#allocation85_spill] sm:$0xff] %v5839_v23 }
 0x1b5   : > { %1537 = vmatmul.mubr.f32.gmra.mxu1 %v5542_v21 }
 0x1b6   : > { %4441 = vmatprep.mubr.msk.f32.mxu1 %vm1044_vm2, %v5563_v27 }
 0x1b9   : > { %1542 = vmatmul.mubr.f32.gmra.mxu1 %v5557_v25 }
 0x1ba   : > { %4442 = vmatprep.mubr.msk.f32.mxu1 %vm1044_vm2, %v5578_v31 }
 0x1bd   : > { %1547 = vmatmul.mubr.f32.gmra.mxu1 %v5572_v29 }
 0x1be   : > { %4443 = vmatprep.mubr.msk.f32.mxu1 %vm1044_vm2, %v5589_v35 }
 0x1c1   : > { %v1313_v21 = vpop.f32.mrf.mxu1  ;;  %1552 = vmatmul.mubr.f32.gmra.mxu1 %v5585_v33 }
 0x1c2   : > { %v1642_v27 = vmul.f32 0.0051020407, %v1313_v21  ;;  %4444 = vmatprep.mubr.msk.f32.mxu1 %vm1044_vm2, %v5607_v28 }
 0x1c3   : > { %v1315_v25 = vpop.f32.mrf.mxu1 }
 0x1c4   : > { %1710 = vperm.xlu0 %4616, %v1642_v27  }
 0x1c5   : > { %v1318_v17 = vpop.f32.mrf.mxu1  ;;  %1557 = vmatmul.mubr.f32.gmra.mxu1 %v5598_v36 }
 0x1c6   : > { %v1643_v31 = vmul.f32 0.0051020407, %v1318_v17  ;;  %4445 = vmatprep.mubr.msk.f32.mxu1 %vm1044_vm2, %v5627_v24 }
 0x1c7   : > { %v1320_v29 = vpop.f32.mrf.mxu1 }
 0x1c8   : > { %1715 = vperm.xlu0 %4616, %v1643_v31  }
 0x1c9   : > { %v1323_v35 = vpop.f32.mrf.mxu1  ;;  %1562 = vmatmul.mubr.f32.gmra.mxu1 %v5616_v26 }
 0x1ca   : > { %v1644_v13 = vmul.f32 0.0051020407, %v1323_v35  ;;  %4446 = vmatprep.mubr.msk.f32.mxu1 %vm1044_vm2, %v5645_v20 }
 0x1cb   : > { %v1325_v21 = vpop.f32.mrf.mxu1 }
 0x1cc   : > { %1720 = vperm.xlu1 %4617, %v1644_v13  }
 0x1cd   : > { %v1328_v25 = vpop.f32.mrf.mxu1  ;;  %1567 = vmatmul.mubr.f32.gmra.mxu1 %v5636_v48 }
 0x1ce   : > { %v1645_v27 = vmul.f32 0.0051020407, %v1328_v25  ;;  %4447 = vmatprep.mubr.msk.f32.mxu1 %vm1044_vm2, %v5663_v16 }
 0x1cf   : > { %v1330_v17 = vpop.f32.mrf.mxu1 }
 0x1d0   : > { %1725 = vperm.xlu1 %4617, %v1645_v27  }
 0x1d1   : > { %v1333_v29 = vpop.f32.mrf.mxu1  ;;  %1572 = vmatmul.mubr.f32.gmra.mxu1 %v5654_v18 }
 0x1d2   : > { %v1646_v31 = vmul.f32 0.0051020407, %v1333_v29  ;;  %4448 = vmatprep.mubr.msk.f32.mxu1 %vm1044_vm2, %v5681_v12 }
 0x1d3   : > { %v1335_v35 = vpop.f32.mrf.mxu1 }
 0x1d4   : > { %1730 = vperm.xlu0 %4616, %v1646_v31  }
 0x1d5   : > { %v1338_v21 = vpop.f32.mrf.mxu1  ;;  %1577 = vmatmul.mubr.f32.gmra.mxu1 %v5672_v14 }
 0x1d6   : > { %v1647_v13 = vmul.f32 0.0051020407, %v1338_v21  ;;  %4449 = vmatprep.mubr.msk.f32.mxu1 %vm1044_vm2, %v5699_v8 }
 0x1d7   : > { %v1340_v25 = vpop.f32.mrf.mxu1 }
 0x1d8   : > { %1735 = vperm.xlu1 %4617, %v1647_v13  }
 0x1d9   : > { %v1343_v17 = vpop.f32.mrf.mxu1  ;;  %1582 = vmatmul.mubr.f32.gmra.mxu1 %v5690_v10 }
 0x1da   : > { %v1648_v27 = vmul.f32 0.0051020407, %v1343_v17  ;;  %4450 = vmatprep.mubr.msk.f32.mxu1 %vm1044_vm2, %v5717_v4 }
 0x1db   : > { %v1345_v29 = vpop.f32.mrf.mxu1 }
 0x1dc   : > { %1740 = vperm.xlu0 %4616, %v1648_v27  }
 0x1dd   : > { %v1348_v35 = vpop.f32.mrf.mxu1  ;;  %1587 = vmatmul.mubr.f32.gmra.mxu1 %v5708_v6 }
 0x1de   : > { %v1649_v31 = vmul.f32 0.0051020407, %v1348_v35  ;;  %4451 = vmatprep.mubr.msk.f32.mxu1 %vm1044_vm2, %v5735_v0 }
 0x1df   : > { %v1350_v21 = vpop.f32.mrf.mxu1 }
 0x1e0   : > { %1745 = vperm.xlu1 %4617, %v1649_v31  }
 0x1e1   : > { %v1353_v25 = vpop.f32.mrf.mxu1  ;;  %1592 = vmatmul.mubr.f32.gmra.mxu1 %v5726_v2 }
 0x1e2   : > { %v1650_v13 = vmul.f32 0.0051020407, %v1353_v25  ;;  %4452 = vmatprep.mubr.msk.f32.mxu1 %vm1044_vm2, %v5753_v60 }
 0x1e3   : > { %v1355_v17 = vpop.f32.mrf.mxu1 }
 0x1e4   : > { %1750 = vperm.xlu0 %4616, %v1650_v13  }
 0x1e5   : > { %v1358_v29 = vpop.f32.mrf.mxu1  ;;  %1597 = vmatmul.mubr.f32.gmra.mxu1 %v5744_v62 }
 0x1e6   : > { %v1651_v27 = vmul.f32 0.0051020407, %v1358_v29  ;;  %4453 = vmatprep.mubr.msk.f32.mxu1 %vm1044_vm2, %v5769_v22 }
 0x1e7   : > { %v1360_v35 = vpop.f32.mrf.mxu1 }
 0x1e8   : > { %1755 = vperm.xlu1 %4617, %v1651_v27  }
 0x1e9   : > { %v1363_v21 = vpop.f32.mrf.mxu1  ;;  %1602 = vmatmul.mubr.f32.gmra.mxu1 %v5762_v58 }
 0x1ea   : > { %v1652_v31 = vmul.f32 0.0051020407, %v1363_v21  ;;  %4454 = vmatprep.mubr.msk.f32.mxu1 %vm1044_vm2, %v5779_v43 }
 0x1eb   : > { %v1365_v25 = vpop.f32.mrf.mxu1 }
 0x1ec   : > { %1760 = vperm.xlu0 %4616, %v1652_v31  }
 0x1ed   : > { %v1368_v17 = vpop.f32.mrf.mxu1  ;;  %1607 = vmatmul.mubr.f32.gmra.mxu1 %v5774_v34 }
 0x1ee   : > { %v1653_v13 = vmul.f32 0.0051020407, %v1368_v17  ;;  %4455 = vmatprep.mubr.msk.f32.mxu1 %vm1044_vm2, %v5789_v46 }
 0x1ef   : > { %v1370_v29 = vpop.f32.mrf.mxu1 }
 0x1f0   : > { %1765 = vperm.xlu1 %4617, %v1653_v13  }
 0x1f1   : > { %v1373_v35 = vpop.f32.mrf.mxu1  ;;  %1612 = vmatmul.mubr.f32.gmra.mxu1 %v5784_v41 }
 0x1f2   : > { %v1654_v27 = vmul.f32 0.0051020407, %v1373_v35  ;;  %4456 = vmatprep.mubr.msk.f32.mxu1 %vm1044_vm2, %v5799_v55 }
 0x1f3   : > { %v1375_v21 = vpop.f32.mrf.mxu1 }
 0x1f4   : > { %1770 = vperm.xlu0 %4616, %v1654_v27  }
 0x1f5   : > { %v1378_v25 = vpop.f32.mrf.mxu1  ;;  %1617 = vmatmul.mubr.f32.gmra.mxu1 %v5794_v51 }
 0x1f6   : > { %v1655_v31 = vmul.f32 0.0051020407, %v1378_v25  ;;  %4457 = vmatprep.mubr.msk.f32.mxu1 %vm1044_vm2, %v5809_v63 }
 0x1f7   : > { %v1380_v17 = vpop.f32.mrf.mxu1 }
 0x1f8   : > { %1775 = vperm.xlu1 %4617, %v1655_v31  }
 0x1f9   : > { %v1383_v29 = vpop.f32.mrf.mxu1  ;;  %1622 = vmatmul.mubr.f32.gmra.mxu1 %v5804_v59 }
 0x1fa   : > { %v1656_v13 = vmul.f32 0.0051020407, %v1383_v29  ;;  %4458 = vmatprep.mubr.msk.f32.mxu1 %vm1044_vm2, %v5819_v7 }
 0x1fb   : > { %v1385_v35 = vpop.f32.mrf.mxu1 }
 0x1fc   : > { %1780 = vperm.xlu0 %4616, %v1656_v13  }
 0x1fd   : > { %v1388_v21 = vpop.f32.mrf.mxu1  ;;  %1627 = vmatmul.mubr.f32.gmra.mxu1 %v5814_v3 }
 0x1fe   : > { %v1657_v27 = vmul.f32 0.0051020407, %v1388_v21  ;;  %4459 = vmatprep.mubr.msk.f32.mxu1 %vm1044_vm2, %v5829_v15 }
 0x1ff   : > { %v1390_v25 = vpop.f32.mrf.mxu1 }
 0x200   : > { %1785 = vperm.xlu1 %4617, %v1657_v27  }
 0x201   : > { %v1393_v17 = vpop.f32.mrf.mxu1  ;;  %1632 = vmatmul.mubr.f32.gmra.mxu1 %v5824_v11 }
 0x202   : > { %v1658_v31 = vmul.f32 0.0051020407, %v1393_v17  ;;  %4460 = vmatprep.mubr.msk.f32.mxu1 %vm1044_vm2, %v5839_v23 }
 0x203   : > { %v1395_v29 = vpop.f32.mrf.mxu1 }
 0x204   : > { %1790 = vperm.xlu0 %4616, %v1658_v31  }
 0x205   : > { %v1398_v35 = vpop.f32.mrf.mxu1  ;;  %1637 = vmatmul.mubr.f32.gmra.mxu1 %v5834_v19 }
 0x206   : > { %v1659_v13 = vmul.f32 0.0051020407, %v1398_v35 }
 0x207   : > { %v1400_v7 = vpop.f32.mrf.mxu1 }
 0x208   : > { %1795 = vperm.xlu1 %4617, %v1659_v13  }
 0x209   : > { %v1403_v21 = vpop.f32.mrf.mxu1 }
 0x20a   : > { %v1660_v3 = vmul.f32 0.0051020407, %v1403_v21 }
 0x20b   : > { %v1405_v15 = vpop.f32.mrf.mxu1 }
 0x20c   : > { %1800 = vperm.xlu0 %4616, %v1660_v3  }
 0x20d   : > { %v1408_v27 = vpop.f32.mrf.mxu1 }
 0x20e   : > { %v1661_v25 = vmul.f32 0.0051020407, %v1408_v27 }
 0x20f   : > { %v1410_v63 = vpop.f32.mrf.mxu1 }
 0x210   : > { %1805 = vperm.xlu1 %4617, %v1661_v25  }
 0x211   : > { %v1413_v17 = vpop.f32.mrf.mxu1 }
 0x212   : > { %v1662_v11 = vmul.f32 0.0051020407, %v1413_v17 }
 0x213   : > { %v1415_v59 = vpop.f32.mrf.mxu1 }
 0x214   : > { %1810 = vperm.xlu0 %4616, %v1662_v11  }
 0x215   : > { %v1418_v29 = vpop.f32.mrf.mxu1 }
 0x216   : > { %v1663_v31 = vmul.f32 0.0051020407, %v1418_v29 }
 0x217   : > { %v1420_v23 = vpop.f32.mrf.mxu1 }
 0x218   : > { %1815 = vperm.xlu1 %4617, %v1663_v31  }
 0x219   : > { %v1423_v19 = vpop.f32.mrf.mxu1 }
 0x21a   : > { %v1664_v35 = vmul.f32 0.0051020407, %v1423_v19 }
 0x21b   : > { %v1425_v7 = vpop.f32.mrf.mxu1 }
 0x21c   : > { %1820 = vperm.xlu0 %4616, %v1664_v35  }
 0x21d   : > { %v1428_v13 = vpop.f32.mrf.mxu1 }
 0x21e   : > { %v1665_v21 = vmul.f32 0.0051020407, %v1428_v13 }
 0x21f   : > { %v1430_v15 = vpop.f32.mrf.mxu1 }
 0x220   : > { %1825 = vperm.xlu1 %4617, %v1665_v21  }
 0x221   : > { %v1433_v3 = vpop.f32.mrf.mxu1 }
 0x222   : > { %v1666_v27 = vmul.f32 0.0051020407, %v1433_v3 }
 0x223   : > { %v1435_v63 = vpop.f32.mrf.mxu1 }
 0x224   : > { %1830 = vperm.xlu0 %4616, %v1666_v27  }
 0x225   : > { %v1438_v25 = vpop.f32.mrf.mxu1 }
 0x226   : > { %v1667_v17 = vmul.f32 0.0051020407, %v1438_v25 }
 0x227   : > { %v1440_v59 = vpop.f32.mrf.mxu1 }
 0x228   : > { %1835 = vperm.xlu1 %4617, %v1667_v17  }
 0x229   : > { %v1443_v11 = vpop.f32.mrf.mxu1 }
 0x22a   : > { %v1668_v29 = vmul.f32 0.0051020407, %v1443_v11 }
 0x22b   : > { %v1445_v23 = vpop.f32.mrf.mxu1 }
 0x22c   : > { %1840 = vperm.xlu0 %4616, %v1668_v29  }
 0x22d   : > { %v1448_v31 = vpop.f32.mrf.mxu1 }
 0x22e   : > { %v1669_v19 = vmul.f32 0.0051020407, %v1448_v31 }
 0x22f   : > { %v1450_v7 = vpop.f32.mrf.mxu1 }
 0x230   : > { %1845 = vperm.xlu1 %4617, %v1669_v19  }
 0x231   : > { %v1453_v35 = vpop.f32.mrf.mxu1 }
 0x232   : > { %v1670_v13 = vmul.f32 0.0051020407, %v1453_v35 }
 0x233   : > { %v1455_v15 = vpop.f32.mrf.mxu1 }
 0x234   : > { %1850 = vperm.xlu0 %4616, %v1670_v13  }
 0x235   : > { %v1458_v21 = vpop.f32.mrf.mxu1 }
 0x236   : > { %v1671_v3 = vmul.f32 0.0051020407, %v1458_v21 }
 0x237   : > { %v1460_v63 = vpop.f32.mrf.mxu1 }
 0x238   : > { %1855 = vperm.xlu1 %4617, %v1671_v3  }
 0x239   : > { %v1463_v27 = vpop.f32.mrf.mxu1 }
 0x23a   : > { %v1672_v25 = vmul.f32 0.0051020407, %v1463_v27 }
 0x23b   : > { %v1465_v59 = vpop.f32.mrf.mxu1 }
 0x23c   : > { %1860 = vperm.xlu0 %4616, %v1672_v25  }
 0x23d   : > { %v1468_v17 = vpop.f32.mrf.mxu1 }
 0x23e   : > { %v1673_v11 = vmul.f32 0.0051020407, %v1468_v17 }
 0x23f   : > { %v1711_v23 = vpop.permute.xlu0 %1710  ;;  %v1470_v29 = vpop.f32.mrf.mxu1 }
 0x240   : > { %v5894_v31 = vsub.f32 %v5379_v38, %v1711_v23  ;;  %v5897_v19 = vsub.f32 %v5383_v40, %v1711_v23  ;;  %1865 = vperm.xlu1 %4617, %v1673_v11  }
 0x241   : > { %v1473_v7 = vpop.f32.mrf.mxu1 }
 0x242   : > { %7844 = vst [vmem:[#allocation86_spill] sm:$0xff] %v5894_v31  ;;  %7845 = vst [vmem:[#allocation87_spill] sm:$0xff] %v5897_v19  ;;  %v2170_v35 = vmul.f32 %v5894_v31, %v5894_v31  ;;  %v2171_v13 = vmul.f32 %v5897_v19, %v5897_v19  ;;  %v1674_v15 = vmul.f32 0.0051020407, %v1473_v7  ;;  %v6537_v31 = vld [vmem:[%s6266_s8 + $0xe8] sm:$0xff] }
 0x243   : > { %v1716_v21 = vpop.permute.xlu0 %1715  ;;  %v1475_v3 = vpop.f32.mrf.mxu1  ;;  %8016 = vst [vmem:[#allocation108_spill] sm:$0xff] %v6537_v31 }
 0x244   : > { %v5904_v63 = vsub.f32 %v5389_v42, %v1716_v21  ;;  %v5907_v38 = vsub.f32 %v5395_v45, %v1716_v21  ;;  %4462 = vmatprep.mubr.msk.f32.mxu0 %vm1044_vm2, %v2171_v13  ;;  %1870 = vperm.xlu0 %4616, %v1674_v15  }
 0x245   : > { %v1478_v40 = vpop.f32.mrf.mxu1  ;;  %2565 = vmatmul.mubr.f32.vlgmr.msra.gmra.mxu0 %v2170_v35 }
 0x246   : > { %7846 = vst [vmem:[#allocation88_spill] sm:$0xff] %v5904_v63  ;;  %7847 = vst [vmem:[#allocation89_spill] sm:$0xff] %v5907_v38  ;;  %v2173_v27 = vmul.f32 %v5907_v38, %v5907_v38  ;;  %v1675_v25 = vmul.f32 0.0051020407, %v1478_v40  ;;  %v2172_v59 = vmul.f32 %v5904_v63, %v5904_v63  ;;  %v6499_v63 = vld [vmem:[%s6266_s8 + $0xc8] sm:$0xff] }
 0x247   : > { %v1721_v17 = vpop.permute.xlu1 %1720  ;;  %v1480_v11 = vpop.f32.mrf.mxu1 }
 0x248   : > { %v5915_v42 = vsub.f32 %v5403_v47, %v1721_v17  ;;  %v5918_v45 = vsub.f32 %v5410_v50, %v1721_v17  ;;  %4463 = vmatprep.mubr.msk.f32.mxu0 %vm1044_vm2, %v2173_v27  ;;  %1875 = vperm.xlu1 %4617, %v1675_v25   ;;  %v7853_v17 = vld [vmem:[#allocation6_spill] sm:$0xff] }
 0x249   : > { %v1483_v23 = vpop.f32.mrf.mxu1  ;;  %2570 = vmatmul.mubr.f32.gmra.mxu0 %v2172_v59 }
 0x24a   : > { %7848 = vst [vmem:[#allocation90_spill] sm:$0xff] %v5915_v42  ;;  %7849 = vst [vmem:[#allocation91_spill] sm:$0xff] %v5918_v45  ;;  %v2175_v29 = vmul.f32 %v5918_v45, %v5918_v45  ;;  %v1676_v7 = vmul.f32 0.0051020407, %v1483_v23  ;;  %v2174_v35 = vmul.f32 %v5915_v42, %v5915_v42  ;;  %v6518_v42 = vld [vmem:[%s6266_s8 + $0xd8] sm:$0xff] }
 0x24b   : > { %v1726_v13 = vpop.permute.xlu1 %1725  ;;  %v1485_v15 = vpop.f32.mrf.mxu1  ;;  %8011 = vst [vmem:[#allocation107_spill] sm:$0xff] %v6518_v42 }
 0x24c   : > { %v5926_v47 = vsub.f32 %v5418_v52, %v1726_v13  ;;  %v5929_v50 = vsub.f32 %v5425_v54, %v1726_v13  ;;  %4464 = vmatprep.mubr.msk.f32.mxu0 %vm1044_vm2, %v2175_v29  ;;  %1880 = vperm.xlu0 %4616, %v1676_v7   ;;  %v7855_v15 = vld [vmem:[#allocation8_spill] sm:$0xff] }
 0x24d   : > { %v1488_v21 = vpop.f32.mrf.mxu1  ;;  %2575 = vmatmul.mubr.f32.gmra.mxu0 %v2174_v35 }
 0x24e   : > { %7850 = vst [vmem:[#allocation92_spill] sm:$0xff] %v5926_v47  ;;  %7851 = vst [vmem:[#allocation93_spill] sm:$0xff] %v5929_v50  ;;  %v2177_v3 = vmul.f32 %v5929_v50, %v5929_v50  ;;  %v1677_v40 = vmul.f32 0.0051020407, %v1488_v21  ;;  %v2176_v27 = vmul.f32 %v5926_v47, %v5926_v47  ;;  %v7857_v21 = vld [vmem:[#allocation9_spill] sm:$0xff]  ;;  %v7861_v50 = vld [vmem:[#allocation12_spill] sm:$0xff] }
 0x24f   : > { %v1731_v25 = vpop.permute.xlu0 %1730  ;;  %v1490_v59 = vpop.f32.mrf.mxu1  ;;  %v6461_v47 = vld [vmem:[%s6266_s8 + $0xa8] sm:$0xff] }
 0x250   : > { %v5937_v52 = vsub.f32 %v5433_v56, %v1731_v25  ;;  %v5940_v54 = vsub.f32 %v7853_v17, %v1731_v25  ;;  %4465 = vmatprep.mubr.msk.f32.mxu0 %vm1044_vm2, %v2177_v3  ;;  %1885 = vperm.xlu1 %4617, %v1677_v40  }
 0x251   : > { %v1493_v11 = vpop.f32.mrf.mxu1  ;;  %2580 = vmatmul.mubr.f32.gmra.mxu0 %v2176_v27 }
 0x252   : > { %7852 = vst [vmem:[#allocation94_spill] sm:$0xff] %v5937_v52  ;;  %7854 = vst [vmem:[#allocation6_spill] sm:$0xff] %v5940_v54  ;;  %v2179_v23 = vmul.f32 %v5940_v54, %v5940_v54  ;;  %v1678_v29 = vmul.f32 0.0051020407, %v1493_v11  ;;  %v2178_v7 = vmul.f32 %v5937_v52, %v5937_v52  ;;  %v6480_v52 = vld [vmem:[%s6266_s8 + $0xb8] sm:$0xff] }
 0x253   : > { %v1736_v35 = vpop.permute.xlu1 %1735  ;;  %v1495_v13 = vpop.f32.mrf.mxu1 }
 0x254   : > { %v5948_v56 = vsub.f32 %v7855_v15, %v1736_v35  ;;  %v5951_v25 = vsub.f32 %v7857_v21, %v1736_v35  ;;  %4466 = vmatprep.mubr.msk.f32.mxu0 %vm1044_vm2, %v2179_v23  ;;  %1890 = vperm.xlu0 %4616, %v1678_v29   ;;  %v7859_v13 = vld [vmem:[#allocation11_spill] sm:$0xff] }
 0x255   : > { %v1498_v3 = vpop.f32.mrf.mxu1  ;;  %2585 = vmatmul.mubr.f32.gmra.mxu0 %v2178_v7 }
 0x256   : > { %7856 = vst [vmem:[#allocation8_spill] sm:$0xff] %v5948_v56  ;;  %7858 = vst [vmem:[#allocation9_spill] sm:$0xff] %v5951_v25  ;;  %v2181_v40 = vmul.f32 %v5951_v25, %v5951_v25  ;;  %v1679_v27 = vmul.f32 0.0051020407, %v1498_v3  ;;  %v2180_v59 = vmul.f32 %v5948_v56, %v5948_v56  ;;  %v7863_v25 = vld [vmem:[#allocation14_spill] sm:$0xff]  ;;  %v7865_v56 = vld [vmem:[#allocation15_spill] sm:$0xff] }
 0x257   : > { %v1741_v17 = vpop.permute.xlu0 %1740  ;;  %v1500_v11 = vpop.f32.mrf.mxu1 }
 0x258   : > { %v5959_v15 = vsub.f32 %v7859_v13, %v1741_v17  ;;  %v5962_v35 = vsub.f32 %v7861_v50, %v1741_v17  ;;  %4467 = vmatprep.mubr.msk.f32.mxu0 %vm1044_vm2, %v2181_v40  ;;  %1895 = vperm.xlu1 %4617, %v1679_v27  }
 0x259   : > { %v1503_v23 = vpop.f32.mrf.mxu1  ;;  %2590 = vmatmul.mubr.f32.gmra.mxu0 %v2180_v59 }
 0x25a   : > { %7860 = vst [vmem:[#allocation11_spill] sm:$0xff] %v5959_v15  ;;  %7862 = vst [vmem:[#allocation12_spill] sm:$0xff] %v5962_v35  ;;  %v2183_v29 = vmul.f32 %v5962_v35, %v5962_v35  ;;  %v1680_v7 = vmul.f32 0.0051020407, %v1503_v23  ;;  %v2182_v21 = vmul.f32 %v5959_v15, %v5959_v15  ;;  %v7867_v35 = vld [vmem:[#allocation17_spill] sm:$0xff]  ;;  %v7869_v15 = vld [vmem:[#allocation18_spill] sm:$0xff] }
 0x25b   : > { %v1746_v3 = vpop.permute.xlu1 %1745  ;;  %v1505_v11 = vpop.f32.mrf.mxu1 }
 0x25c   : > { %v5970_v13 = vsub.f32 %v7863_v25, %v1746_v3  ;;  %v5973_v50 = vsub.f32 %v7865_v56, %v1746_v3  ;;  %4468 = vmatprep.mubr.msk.f32.mxu0 %vm1044_vm2, %v2183_v29  ;;  %1900 = vperm.xlu0 %4616, %v1680_v7  }
 0x25d   : > { %v1508_v40 = vpop.f32.mrf.mxu1  ;;  %2595 = vmatmul.mubr.f32.gmra.mxu0 %v2182_v21 }
 0x25e   : > { %7864 = vst [vmem:[#allocation14_spill] sm:$0xff] %v5970_v13  ;;  %7866 = vst [vmem:[#allocation15_spill] sm:$0xff] %v5973_v50  ;;  %v2185_v27 = vmul.f32 %v5973_v50, %v5973_v50  ;;  %v1681_v59 = vmul.f32 0.0051020407, %v1508_v40  ;;  %v2184_v17 = vmul.f32 %v5970_v13, %v5970_v13  ;;  %v7871_v50 = vld [vmem:[#allocation20_spill] sm:$0xff]  ;;  %v7873_v13 = vld [vmem:[#allocation22_spill] sm:$0xff] }
 0x25f   : > { %v1751_v23 = vpop.permute.xlu0 %1750  ;;  %v1510_v11 = vpop.f32.mrf.mxu1 }
 0x260   : > { %v5981_v25 = vsub.f32 %v7867_v35, %v1751_v23  ;;  %v5984_v56 = vsub.f32 %v7869_v15, %v1751_v23  ;;  %4469 = vmatprep.mubr.msk.f32.mxu0 %vm1044_vm2, %v2185_v27  ;;  %1905 = vperm.xlu1 %4617, %v1681_v59  }
 0x261   : > { %v1513_v29 = vpop.f32.mrf.mxu1  ;;  %2600 = vmatmul.mubr.f32.gmra.mxu0 %v2184_v17 }
 0x262   : > { %7868 = vst [vmem:[#allocation17_spill] sm:$0xff] %v5981_v25  ;;  %7870 = vst [vmem:[#allocation18_spill] sm:$0xff] %v5984_v56  ;;  %v2187_v7 = vmul.f32 %v5984_v56, %v5984_v56  ;;  %v1682_v21 = vmul.f32 0.0051020407, %v1513_v29  ;;  %v2186_v3 = vmul.f32 %v5981_v25, %v5981_v25  ;;  %v7875_v56 = vld [vmem:[#allocation24_spill] sm:$0xff]  ;;  %v7877_v25 = vld [vmem:[#allocation26_spill] sm:$0xff] }
 0x263   : > { %v1756_v40 = vpop.permute.xlu1 %1755  ;;  %v1515_v11 = vpop.f32.mrf.mxu1 }
 0x264   : > { %v5992_v35 = vsub.f32 %v7871_v50, %v1756_v40  ;;  %v5995_v15 = vsub.f32 %v7873_v13, %v1756_v40  ;;  %4470 = vmatprep.mubr.msk.f32.mxu0 %vm1044_vm2, %v2187_v7  ;;  %1910 = vperm.xlu0 %4616, %v1682_v21  }
 0x265   : > { %v1518_v27 = vpop.f32.mrf.mxu1  ;;  %2605 = vmatmul.mubr.f32.gmra.mxu0 %v2186_v3 }
 0x266   : > { %7872 = vst [vmem:[#allocation20_spill] sm:$0xff] %v5992_v35  ;;  %7874 = vst [vmem:[#allocation22_spill] sm:$0xff] %v5995_v15  ;;  %v2189_v59 = vmul.f32 %v5995_v15, %v5995_v15  ;;  %v1683_v17 = vmul.f32 0.0051020407, %v1518_v27  ;;  %v2188_v23 = vmul.f32 %v5992_v35, %v5992_v35  ;;  %v7879_v15 = vld [vmem:[#allocation28_spill] sm:$0xff]  ;;  %v7881_v35 = vld [vmem:[#allocation30_spill] sm:$0xff] }
 0x267   : > { %v1761_v29 = vpop.permute.xlu0 %1760  ;;  %v1520_v11 = vpop.f32.mrf.mxu1 }
 0x268   : > { %v6003_v50 = vsub.f32 %v7875_v56, %v1761_v29  ;;  %v6006_v13 = vsub.f32 %v7877_v25, %v1761_v29  ;;  %4471 = vmatprep.mubr.msk.f32.mxu0 %vm1044_vm2, %v2189_v59  ;;  %1915 = vperm.xlu1 %4617, %v1683_v17  }
 0x269   : > { %v1523_v7 = vpop.f32.mrf.mxu1  ;;  %2610 = vmatmul.mubr.f32.gmra.mxu0 %v2188_v23 }
 0x26a   : > { %7876 = vst [vmem:[#allocation24_spill] sm:$0xff] %v6003_v50  ;;  %7878 = vst [vmem:[#allocation26_spill] sm:$0xff] %v6006_v13  ;;  %v2191_v21 = vmul.f32 %v6006_v13, %v6006_v13  ;;  %v1684_v3 = vmul.f32 0.0051020407, %v1523_v7  ;;  %v2190_v40 = vmul.f32 %v6003_v50, %v6003_v50  ;;  %v7883_v13 = vld [vmem:[#allocation32_spill] sm:$0xff]  ;;  %v7885_v50 = vld [vmem:[#allocation34_spill] sm:$0xff] }
 0x26b   : > { %v1766_v27 = vpop.permute.xlu1 %1765  ;;  %v1525_v11 = vpop.f32.mrf.mxu1 }
 0x26c   : > { %v6014_v56 = vsub.f32 %v7879_v15, %v1766_v27  ;;  %v6017_v25 = vsub.f32 %v7881_v35, %v1766_v27  ;;  %4472 = vmatprep.mubr.msk.f32.mxu0 %vm1044_vm2, %v2191_v21  ;;  %1920 = vperm.xlu0 %4616, %v1684_v3  }
 0x26d   : > { %v1528_v59 = vpop.f32.mrf.mxu1  ;;  %2615 = vmatmul.mubr.f32.gmra.mxu0 %v2190_v40 }
 0x26e   : > { %7880 = vst [vmem:[#allocation28_spill] sm:$0xff] %v6014_v56  ;;  %7882 = vst [vmem:[#allocation30_spill] sm:$0xff] %v6017_v25  ;;  %v2193_v17 = vmul.f32 %v6017_v25, %v6017_v25  ;;  %v1685_v23 = vmul.f32 0.0051020407, %v1528_v59  ;;  %v2192_v29 = vmul.f32 %v6014_v56, %v6014_v56  ;;  %v7887_v25 = vld [vmem:[#allocation36_spill] sm:$0xff]  ;;  %v7889_v56 = vld [vmem:[#allocation38_spill] sm:$0xff] }
 0x26f   : > { %v1771_v7 = vpop.permute.xlu0 %1770  ;;  %v1530_v11 = vpop.f32.mrf.mxu1 }
 0x270   : > { %v6025_v15 = vsub.f32 %v7883_v13, %v1771_v7  ;;  %v6028_v35 = vsub.f32 %v7885_v50, %v1771_v7  ;;  %4473 = vmatprep.mubr.msk.f32.mxu0 %vm1044_vm2, %v2193_v17  ;;  %1925 = vperm.xlu1 %4617, %v1685_v23  }
 0x271   : > { %v1533_v21 = vpop.f32.mrf.mxu1  ;;  %2620 = vmatmul.mubr.f32.gmra.mxu0 %v2192_v29 }
 0x272   : > { %7884 = vst [vmem:[#allocation32_spill] sm:$0xff] %v6025_v15  ;;  %7886 = vst [vmem:[#allocation34_spill] sm:$0xff] %v6028_v35  ;;  %v2195_v3 = vmul.f32 %v6028_v35, %v6028_v35  ;;  %v1686_v40 = vmul.f32 0.0051020407, %v1533_v21  ;;  %v2194_v27 = vmul.f32 %v6025_v15, %v6025_v15  ;;  %v7891_v35 = vld [vmem:[#allocation40_spill] sm:$0xff]  ;;  %v7893_v15 = vld [vmem:[#allocation41_spill] sm:$0xff] }
 0x273   : > { %v1776_v59 = vpop.permute.xlu1 %1775  ;;  %v1535_v11 = vpop.f32.mrf.mxu1 }
 0x274   : > { %v6036_v13 = vsub.f32 %v7887_v25, %v1776_v59  ;;  %v6039_v50 = vsub.f32 %v7889_v56, %v1776_v59  ;;  %4474 = vmatprep.mubr.msk.f32.mxu0 %vm1044_vm2, %v2195_v3  ;;  %1930 = vperm.xlu0 %4616, %v1686_v40  }
 0x275   : > { %v1538_v17 = vpop.f32.mrf.mxu1  ;;  %2625 = vmatmul.mubr.f32.gmra.mxu0 %v2194_v27 }
 0x276   : > { %7888 = vst [vmem:[#allocation36_spill] sm:$0xff] %v6036_v13  ;;  %7890 = vst [vmem:[#allocation38_spill] sm:$0xff] %v6039_v50  ;;  %v2197_v23 = vmul.f32 %v6039_v50, %v6039_v50  ;;  %v1687_v29 = vmul.f32 0.0051020407, %v1538_v17  ;;  %v2196_v7 = vmul.f32 %v6036_v13, %v6036_v13  ;;  %v7895_v50 = vld [vmem:[#allocation43_spill] sm:$0xff]  ;;  %v7897_v13 = vld [vmem:[#allocation44_spill] sm:$0xff] }
 0x277   : > { %v1781_v21 = vpop.permute.xlu0 %1780  ;;  %v1540_v11 = vpop.f32.mrf.mxu1 }
 0x278   : > { %v6047_v25 = vsub.f32 %v7891_v35, %v1781_v21  ;;  %v6050_v56 = vsub.f32 %v7893_v15, %v1781_v21  ;;  %4475 = vmatprep.mubr.msk.f32.mxu0 %vm1044_vm2, %v2197_v23  ;;  %1935 = vperm.xlu1 %4617, %v1687_v29  }
 0x279   : > { %v1543_v3 = vpop.f32.mrf.mxu1  ;;  %2630 = vmatmul.mubr.f32.gmra.mxu0 %v2196_v7 }
 0x27a   : > { %7892 = vst [vmem:[#allocation40_spill] sm:$0xff] %v6047_v25  ;;  %7894 = vst [vmem:[#allocation41_spill] sm:$0xff] %v6050_v56  ;;  %v2199_v40 = vmul.f32 %v6050_v56, %v6050_v56  ;;  %v1688_v27 = vmul.f32 0.0051020407, %v1543_v3  ;;  %v2198_v59 = vmul.f32 %v6047_v25, %v6047_v25  ;;  %v7899_v56 = vld [vmem:[#allocation45_spill] sm:$0xff]  ;;  %v7901_v25 = vld [vmem:[#allocation46_spill] sm:$0xff] }
 0x27b   : > { %v1786_v17 = vpop.permute.xlu1 %1785  ;;  %v1545_v11 = vpop.f32.mrf.mxu1 }
 0x27c   : > { %v6058_v35 = vsub.f32 %v7895_v50, %v1786_v17  ;;  %v6061_v15 = vsub.f32 %v7897_v13, %v1786_v17  ;;  %4476 = vmatprep.mubr.msk.f32.mxu0 %vm1044_vm2, %v2199_v40  ;;  %1940 = vperm.xlu0 %4616, %v1688_v27  }
 0x27d   : > { %v1548_v23 = vpop.f32.mrf.mxu1  ;;  %2635 = vmatmul.mubr.f32.gmra.mxu0 %v2198_v59 }
 0x27e   : > { %7896 = vst [vmem:[#allocation43_spill] sm:$0xff] %v6058_v35  ;;  %7898 = vst [vmem:[#allocation44_spill] sm:$0xff] %v6061_v15  ;;  %v2201_v29 = vmul.f32 %v6061_v15, %v6061_v15  ;;  %v1689_v7 = vmul.f32 0.0051020407, %v1548_v23  ;;  %v2200_v21 = vmul.f32 %v6058_v35, %v6058_v35  ;;  %v7903_v15 = vld [vmem:[#allocation47_spill] sm:$0xff]  ;;  %v7905_v35 = vld [vmem:[#allocation48_spill] sm:$0xff] }
 0x27f   : > { %v1791_v3 = vpop.permute.xlu0 %1790  ;;  %v1550_v11 = vpop.f32.mrf.mxu1 }
 0x280   : > { %v6069_v50 = vsub.f32 %v7899_v56, %v1791_v3  ;;  %v6072_v13 = vsub.f32 %v7901_v25, %v1791_v3  ;;  %4477 = vmatprep.mubr.msk.f32.mxu0 %vm1044_vm2, %v2201_v29  ;;  %1945 = vperm.xlu1 %4617, %v1689_v7  }
 0x281   : > { %v1553_v40 = vpop.f32.mrf.mxu1  ;;  %2640 = vmatmul.mubr.f32.gmra.mxu0 %v2200_v21 }
 0x282   : > { %7900 = vst [vmem:[#allocation45_spill] sm:$0xff] %v6069_v50  ;;  %7902 = vst [vmem:[#allocation46_spill] sm:$0xff] %v6072_v13  ;;  %v2203_v27 = vmul.f32 %v6072_v13, %v6072_v13  ;;  %v1690_v59 = vmul.f32 0.0051020407, %v1553_v40  ;;  %v2202_v17 = vmul.f32 %v6069_v50, %v6069_v50  ;;  %v7907_v13 = vld [vmem:[#allocation49_spill] sm:$0xff]  ;;  %v7909_v50 = vld [vmem:[#allocation50_spill] sm:$0xff] }
 0x283   : > { %v1796_v23 = vpop.permute.xlu1 %1795  ;;  %v1555_v11 = vpop.f32.mrf.mxu1 }
 0x284   : > { %v6080_v56 = vsub.f32 %v7903_v15, %v1796_v23  ;;  %v6083_v25 = vsub.f32 %v7905_v35, %v1796_v23  ;;  %4478 = vmatprep.mubr.msk.f32.mxu0 %vm1044_vm2, %v2203_v27  ;;  %1950 = vperm.xlu0 %4616, %v1690_v59  }
 0x285   : > { %v1558_v29 = vpop.f32.mrf.mxu1  ;;  %2645 = vmatmul.mubr.f32.gmra.mxu0 %v2202_v17 }
 0x286   : > { %7904 = vst [vmem:[#allocation47_spill] sm:$0xff] %v6080_v56  ;;  %7906 = vst [vmem:[#allocation48_spill] sm:$0xff] %v6083_v25  ;;  %v2205_v7 = vmul.f32 %v6083_v25, %v6083_v25  ;;  %v1691_v21 = vmul.f32 0.0051020407, %v1558_v29  ;;  %v2204_v3 = vmul.f32 %v6080_v56, %v6080_v56  ;;  %v7911_v25 = vld [vmem:[#allocation51_spill] sm:$0xff]  ;;  %v7913_v56 = vld [vmem:[#allocation52_spill] sm:$0xff] }
 0x287   : > { %v1801_v40 = vpop.permute.xlu0 %1800  ;;  %v1560_v11 = vpop.f32.mrf.mxu1 }
 0x288   : > { %v6091_v15 = vsub.f32 %v7907_v13, %v1801_v40  ;;  %v6094_v35 = vsub.f32 %v7909_v50, %v1801_v40  ;;  %4479 = vmatprep.mubr.msk.f32.mxu0 %vm1044_vm2, %v2205_v7  ;;  %1955 = vperm.xlu1 %4617, %v1691_v21  }
 0x289   : > { %v1563_v27 = vpop.f32.mrf.mxu1  ;;  %2650 = vmatmul.mubr.f32.gmra.mxu0 %v2204_v3 }
 0x28a   : > { %7908 = vst [vmem:[#allocation49_spill] sm:$0xff] %v6091_v15  ;;  %7910 = vst [vmem:[#allocation50_spill] sm:$0xff] %v6094_v35  ;;  %v2207_v59 = vmul.f32 %v6094_v35, %v6094_v35  ;;  %v1692_v17 = vmul.f32 0.0051020407, %v1563_v27  ;;  %v2206_v23 = vmul.f32 %v6091_v15, %v6091_v15  ;;  %v7915_v35 = vld [vmem:[#allocation53_spill] sm:$0xff]  ;;  %v7917_v15 = vld [vmem:[#allocation54_spill] sm:$0xff] }
 0x28b   : > { %v1806_v29 = vpop.permute.xlu1 %1805  ;;  %v1565_v11 = vpop.f32.mrf.mxu1 }
 0x28c   : > { %v6102_v13 = vsub.f32 %v7911_v25, %v1806_v29  ;;  %v6105_v50 = vsub.f32 %v7913_v56, %v1806_v29  ;;  %4480 = vmatprep.mubr.msk.f32.mxu0 %vm1044_vm2, %v2207_v59  ;;  %1960 = vperm.xlu0 %4616, %v1692_v17  }
 0x28d   : > { %v1568_v7 = vpop.f32.mrf.mxu1  ;;  %2655 = vmatmul.mubr.f32.gmra.mxu0 %v2206_v23 }
 0x28e   : > { %7912 = vst [vmem:[#allocation51_spill] sm:$0xff] %v6102_v13  ;;  %7914 = vst [vmem:[#allocation52_spill] sm:$0xff] %v6105_v50  ;;  %v2209_v21 = vmul.f32 %v6105_v50, %v6105_v50  ;;  %v1693_v3 = vmul.f32 0.0051020407, %v1568_v7  ;;  %v2208_v40 = vmul.f32 %v6102_v13, %v6102_v13  ;;  %v7919_v50 = vld [vmem:[#allocation55_spill] sm:$0xff]  ;;  %v7921_v13 = vld [vmem:[#allocation56_spill] sm:$0xff] }
 0x28f   : > { %v1811_v27 = vpop.permute.xlu0 %1810  ;;  %v1570_v11 = vpop.f32.mrf.mxu1 }
 0x290   : > { %v6113_v25 = vsub.f32 %v7915_v35, %v1811_v27  ;;  %v6116_v56 = vsub.f32 %v7917_v15, %v1811_v27  ;;  %4481 = vmatprep.mubr.msk.f32.mxu0 %vm1044_vm2, %v2209_v21  ;;  %1965 = vperm.xlu1 %4617, %v1693_v3  }
 0x291   : > { %v1573_v59 = vpop.f32.mrf.mxu1  ;;  %2660 = vmatmul.mubr.f32.gmra.mxu0 %v2208_v40 }
 0x292   : > { %7916 = vst [vmem:[#allocation53_spill] sm:$0xff] %v6113_v25  ;;  %7918 = vst [vmem:[#allocation54_spill] sm:$0xff] %v6116_v56  ;;  %v2211_v17 = vmul.f32 %v6116_v56, %v6116_v56  ;;  %v1694_v23 = vmul.f32 0.0051020407, %v1573_v59  ;;  %v2210_v29 = vmul.f32 %v6113_v25, %v6113_v25  ;;  %v7923_v56 = vld [vmem:[#allocation57_spill] sm:$0xff]  ;;  %v7925_v25 = vld [vmem:[#allocation58_spill] sm:$0xff] }
 0x293   : > { %v1816_v7 = vpop.permute.xlu1 %1815  ;;  %v1575_v11 = vpop.f32.mrf.mxu1 }
 0x294   : > { %v6124_v35 = vsub.f32 %v7919_v50, %v1816_v7  ;;  %v6127_v15 = vsub.f32 %v7921_v13, %v1816_v7  ;;  %4482 = vmatprep.mubr.msk.f32.mxu0 %vm1044_vm2, %v2211_v17  ;;  %1970 = vperm.xlu0 %4616, %v1694_v23  }
 0x295   : > { %v1578_v21 = vpop.f32.mrf.mxu1  ;;  %2665 = vmatmul.mubr.f32.gmra.mxu0 %v2210_v29 }
 0x296   : > { %7920 = vst [vmem:[#allocation55_spill] sm:$0xff] %v6124_v35  ;;  %7922 = vst [vmem:[#allocation56_spill] sm:$0xff] %v6127_v15  ;;  %v2213_v3 = vmul.f32 %v6127_v15, %v6127_v15  ;;  %v1695_v40 = vmul.f32 0.0051020407, %v1578_v21  ;;  %v2212_v27 = vmul.f32 %v6124_v35, %v6124_v35  ;;  %v7927_v15 = vld [vmem:[#allocation59_spill] sm:$0xff]  ;;  %v7929_v35 = vld [vmem:[#allocation60_spill] sm:$0xff] }
 0x297   : > { %v1821_v59 = vpop.permute.xlu0 %1820  ;;  %v1580_v11 = vpop.f32.mrf.mxu1 }
 0x298   : > { %v6135_v50 = vsub.f32 %v7923_v56, %v1821_v59  ;;  %v6138_v13 = vsub.f32 %v7925_v25, %v1821_v59  ;;  %4483 = vmatprep.mubr.msk.f32.mxu0 %vm1044_vm2, %v2213_v3  ;;  %1975 = vperm.xlu1 %4617, %v1695_v40  }
 0x299   : > { %v1583_v17 = vpop.f32.mrf.mxu1  ;;  %2670 = vmatmul.mubr.f32.gmra.mxu0 %v2212_v27 }
 0x29a   : > { %7924 = vst [vmem:[#allocation57_spill] sm:$0xff] %v6135_v50  ;;  %7926 = vst [vmem:[#allocation58_spill] sm:$0xff] %v6138_v13  ;;  %v2214_v23 = vmul.f32 %v6135_v50, %v6135_v50  ;;  %v2215_v29 = vmul.f32 %v6138_v13, %v6138_v13  ;;  %v1696_v7 = vmul.f32 0.0051020407, %v1583_v17  ;;  %v7931_v13 = vld [vmem:[#allocation61_spill] sm:$0xff]  ;;  %v7933_v50 = vld [vmem:[#allocation62_spill] sm:$0xff] }
 0x29b   : > { %v1826_v21 = vpop.permute.xlu1 %1825  ;;  %v1585_v11 = vpop.f32.mrf.mxu1 }
 0x29c   : > { %v6146_v56 = vsub.f32 %v7927_v15, %v1826_v21  ;;  %v6149_v25 = vsub.f32 %v7929_v35, %v1826_v21  ;;  %4484 = vmatprep.mubr.msk.f32.mxu0 %vm1044_vm2, %v2215_v29  ;;  %1980 = vperm.xlu0 %4616, %v1696_v7  }
 0x29d   : > { %v1588_v3 = vpop.f32.mrf.mxu1  ;;  %2675 = vmatmul.mubr.f32.gmra.mxu0 %v2214_v23 }
 0x29e   : > { %7928 = vst [vmem:[#allocation59_spill] sm:$0xff] %v6146_v56  ;;  %7930 = vst [vmem:[#allocation60_spill] sm:$0xff] %v6149_v25  ;;  %v2216_v40 = vmul.f32 %v6146_v56, %v6146_v56  ;;  %v2217_v27 = vmul.f32 %v6149_v25, %v6149_v25  ;;  %v1697_v59 = vmul.f32 0.0051020407, %v1588_v3  ;;  %v7935_v25 = vld [vmem:[#allocation63_spill] sm:$0xff]  ;;  %v7937_v56 = vld [vmem:[#allocation64_spill] sm:$0xff] }
 0x29f   : > { %v1831_v17 = vpop.permute.xlu0 %1830  ;;  %v1590_v11 = vpop.f32.mrf.mxu1 }
 0x2a0   : > { %v6157_v15 = vsub.f32 %v7931_v13, %v1831_v17  ;;  %v6160_v35 = vsub.f32 %v7933_v50, %v1831_v17  ;;  %4485 = vmatprep.mubr.msk.f32.mxu0 %vm1044_vm2, %v2217_v27  ;;  %1985 = vperm.xlu1 %4617, %v1697_v59  }
 0x2a1   : > { %v1593_v29 = vpop.f32.mrf.mxu1  ;;  %2680 = vmatmul.mubr.f32.gmra.mxu0 %v2216_v40 }
 0x2a2   : > { %7932 = vst [vmem:[#allocation61_spill] sm:$0xff] %v6157_v15  ;;  %7934 = vst [vmem:[#allocation62_spill] sm:$0xff] %v6160_v35  ;;  %v2218_v23 = vmul.f32 %v6157_v15, %v6157_v15  ;;  %v2219_v7 = vmul.f32 %v6160_v35, %v6160_v35  ;;  %v1698_v21 = vmul.f32 0.0051020407, %v1593_v29  ;;  %v7939_v35 = vld [vmem:[#allocation65_spill] sm:$0xff]  ;;  %v7941_v15 = vld [vmem:[#allocation66_spill] sm:$0xff] }
 0x2a3   : > { %v1836_v3 = vpop.permute.xlu1 %1835  ;;  %v1595_v11 = vpop.f32.mrf.mxu1 }
 0x2a4   : > { %v6168_v13 = vsub.f32 %v7935_v25, %v1836_v3  ;;  %v6171_v50 = vsub.f32 %v7937_v56, %v1836_v3  ;;  %4486 = vmatprep.mubr.msk.f32.mxu0 %vm1044_vm2, %v2219_v7  ;;  %1990 = vperm.xlu0 %4616, %v1698_v21  }
 0x2a5   : > { %v1598_v27 = vpop.f32.mrf.mxu1  ;;  %2685 = vmatmul.mubr.f32.gmra.mxu0 %v2218_v23 }
 0x2a6   : > { %7936 = vst [vmem:[#allocation63_spill] sm:$0xff] %v6168_v13  ;;  %7938 = vst [vmem:[#allocation64_spill] sm:$0xff] %v6171_v50  ;;  %v2220_v40 = vmul.f32 %v6168_v13, %v6168_v13  ;;  %v2221_v59 = vmul.f32 %v6171_v50, %v6171_v50  ;;  %v1699_v17 = vmul.f32 0.0051020407, %v1598_v27  ;;  %v7943_v50 = vld [vmem:[#allocation67_spill] sm:$0xff]  ;;  %v7945_v13 = vld [vmem:[#allocation68_spill] sm:$0xff] }
 0x2a7   : > { %v1841_v29 = vpop.permute.xlu0 %1840  ;;  %v1600_v11 = vpop.f32.mrf.mxu1 }
 0x2a8   : > { %v6179_v25 = vsub.f32 %v7939_v35, %v1841_v29  ;;  %v6182_v56 = vsub.f32 %v7941_v15, %v1841_v29  ;;  %4487 = vmatprep.mubr.msk.f32.mxu0 %vm1044_vm2, %v2221_v59  ;;  %1995 = vperm.xlu1 %4617, %v1699_v17  }
 0x2a9   : > { %v1603_v7 = vpop.f32.mrf.mxu1  ;;  %2690 = vmatmul.mubr.f32.gmra.mxu0 %v2220_v40 }
 0x2aa   : > { %7940 = vst [vmem:[#allocation65_spill] sm:$0xff] %v6179_v25  ;;  %7942 = vst [vmem:[#allocation66_spill] sm:$0xff] %v6182_v56  ;;  %v2222_v23 = vmul.f32 %v6179_v25, %v6179_v25  ;;  %v2223_v21 = vmul.f32 %v6182_v56, %v6182_v56  ;;  %v1700_v3 = vmul.f32 0.0051020407, %v1603_v7  ;;  %v7947_v56 = vld [vmem:[#allocation69_spill] sm:$0xff]  ;;  %v7949_v25 = vld [vmem:[#allocation70_spill] sm:$0xff] }
 0x2ab   : > { %v1846_v27 = vpop.permute.xlu1 %1845  ;;  %v1605_v11 = vpop.f32.mrf.mxu1 }
 0x2ac   : > { %v6190_v35 = vsub.f32 %v7943_v50, %v1846_v27  ;;  %v6193_v15 = vsub.f32 %v7945_v13, %v1846_v27  ;;  %4488 = vmatprep.mubr.msk.f32.mxu0 %vm1044_vm2, %v2223_v21  ;;  %2000 = vperm.xlu0 %4616, %v1700_v3  }
 0x2ad   : > { %v1608_v59 = vpop.f32.mrf.mxu1  ;;  %2695 = vmatmul.mubr.f32.gmra.mxu0 %v2222_v23 }
 0x2ae   : > { %7944 = vst [vmem:[#allocation67_spill] sm:$0xff] %v6190_v35  ;;  %7946 = vst [vmem:[#allocation68_spill] sm:$0xff] %v6193_v15  ;;  %v2224_v40 = vmul.f32 %v6190_v35, %v6190_v35  ;;  %v2225_v17 = vmul.f32 %v6193_v15, %v6193_v15  ;;  %v1701_v29 = vmul.f32 0.0051020407, %v1608_v59  ;;  %v7951_v15 = vld [vmem:[#allocation71_spill] sm:$0xff]  ;;  %v7953_v35 = vld [vmem:[#allocation72_spill] sm:$0xff] }
 0x2af   : > { %v1851_v7 = vpop.permute.xlu0 %1850  ;;  %v1610_v11 = vpop.f32.mrf.mxu1 }
 0x2b0   : > { %v6201_v50 = vsub.f32 %v7947_v56, %v1851_v7  ;;  %v6204_v13 = vsub.f32 %v7949_v25, %v1851_v7  ;;  %4489 = vmatprep.mubr.msk.f32.mxu0 %vm1044_vm2, %v2225_v17  ;;  %2005 = vperm.xlu1 %4617, %v1701_v29  }
 0x2b1   : > { %v1613_v21 = vpop.f32.mrf.mxu1  ;;  %2700 = vmatmul.mubr.f32.gmra.mxu0 %v2224_v40 }
 0x2b2   : > { %7948 = vst [vmem:[#allocation69_spill] sm:$0xff] %v6201_v50  ;;  %7950 = vst [vmem:[#allocation70_spill] sm:$0xff] %v6204_v13  ;;  %v2226_v23 = vmul.f32 %v6201_v50, %v6201_v50  ;;  %v2227_v3 = vmul.f32 %v6204_v13, %v6204_v13  ;;  %v1702_v27 = vmul.f32 0.0051020407, %v1613_v21  ;;  %v7955_v13 = vld [vmem:[#allocation73_spill] sm:$0xff]  ;;  %v7957_v50 = vld [vmem:[#allocation74_spill] sm:$0xff] }
 0x2b3   : > { %v1856_v59 = vpop.permute.xlu1 %1855  ;;  %v1615_v11 = vpop.f32.mrf.mxu1 }
 0x2b4   : > { %v6212_v56 = vsub.f32 %v7951_v15, %v1856_v59  ;;  %v6215_v25 = vsub.f32 %v7953_v35, %v1856_v59  ;;  %4490 = vmatprep.mubr.msk.f32.mxu0 %vm1044_vm2, %v2227_v3  ;;  %2010 = vperm.xlu0 %4616, %v1702_v27  }
 0x2b5   : > { %v1618_v17 = vpop.f32.mrf.mxu1  ;;  %2705 = vmatmul.mubr.f32.gmra.mxu0 %v2226_v23 }
 0x2b6   : > { %7952 = vst [vmem:[#allocation71_spill] sm:$0xff] %v6212_v56  ;;  %7954 = vst [vmem:[#allocation72_spill] sm:$0xff] %v6215_v25  ;;  %v2228_v40 = vmul.f32 %v6212_v56, %v6212_v56  ;;  %v2229_v29 = vmul.f32 %v6215_v25, %v6215_v25  ;;  %v1703_v7 = vmul.f32 0.0051020407, %v1618_v17  ;;  %v7960_v25 = vld [vmem:[#allocation75_spill] sm:$0xff] }
 0x2b7   : > { %v1861_v21 = vpop.permute.xlu0 %1860  ;;  %v1620_v11 = vpop.f32.mrf.mxu1 }
 0x2b8   : > { %v6223_v15 = vsub.f32 %v7955_v13, %v1861_v21  ;;  %v6226_v35 = vsub.f32 %v7957_v50, %v1861_v21  ;;  %4491 = vmatprep.mubr.msk.f32.mxu0 %vm1044_vm2, %v2229_v29  ;;  %2015 = vperm.xlu1 %4617, %v1703_v7  }
 0x2b9   : > { %v1623_v3 = vpop.f32.mrf.mxu1  ;;  %2710 = vmatmul.mubr.f32.gmra.mxu0 %v2228_v40 }
 0x2ba   : > { %7956 = vst [vmem:[#allocation73_spill] sm:$0xff] %v6223_v15  ;;  %7958 = vst [vmem:[#allocation74_spill] sm:$0xff] %v6226_v35  ;;  %v2230_v23 = vmul.f32 %v6223_v15, %v6223_v15  ;;  %v2231_v27 = vmul.f32 %v6226_v35, %v6226_v35  ;;  %v1704_v59 = vmul.f32 0.0051020407, %v1623_v3  ;;  %v6423_v35 = vld [vmem:[%s6266_s8 + $0x88] sm:$0xff]  ;;  %v6442_v15 = vld [vmem:[%s6266_s8 + $0x98] sm:$0xff] }
 0x2bb   : > { %v1866_v17 = vpop.permute.xlu1 %1865  ;;  %v1625_v11 = vpop.f32.mrf.mxu1 }
 0x2bc   : > { %v6234_v13 = vsub.f32 %v5739_v37, %v1866_v17  ;;  %v6237_v50 = vsub.f32 %v7960_v25, %v1866_v17  ;;  %4492 = vmatprep.mubr.msk.f32.mxu0 %vm1044_vm2, %v2231_v27  ;;  %2020 = vperm.xlu0 %4616, %v1704_v59   ;;  %v7963_v25 = vld [vmem:[#allocation76_spill] sm:$0xff] }
 0x2bd   : > { %v1628_v40 = vpop.f32.mrf.mxu1  ;;  %2715 = vmatmul.mubr.f32.gmra.mxu0 %v2230_v23 }
 0x2be   : > { %7959 = vst [vmem:[#allocation95_spill] sm:$0xff] %v6234_v13  ;;  %7961 = vst [vmem:[#allocation75_spill] sm:$0xff] %v6237_v50  ;;  %v2232_v29 = vmul.f32 %v6234_v13, %v6234_v13  ;;  %v2233_v7 = vmul.f32 %v6237_v50, %v6237_v50  ;;  %v1705_v21 = vmul.f32 0.0051020407, %v1628_v40  ;;  %v6404_v13 = vld [vmem:[%s6266_s8 + $0x78] sm:$0xff] }
 0x2bf   : > { %v1871_v3 = vpop.permute.xlu0 %1870  ;;  %v1630_v11 = vpop.f32.mrf.mxu1 }
 0x2c0   : > { %v6245_v37 = vsub.f32 %v5748_v32, %v1871_v3  ;;  %v6248_v17 = vsub.f32 %v7963_v25, %v1871_v3  ;;  %4493 = vmatprep.mubr.msk.f32.mxu0 %vm1044_vm2, %v2233_v7  ;;  %2025 = vperm.xlu1 %4617, %v1705_v21   ;;  %v7966_v3 = vld [vmem:[#allocation77_spill] sm:$0xff] }
 0x2c1   : > { %v1633_v27 = vpop.f32.mrf.mxu1  ;;  %2720 = vmatmul.mubr.f32.gmra.mxu0 %v2232_v29 }
 0x2c2   : > { %7962 = vst [vmem:[#allocation96_spill] sm:$0xff] %v6245_v37  ;;  %7964 = vst [vmem:[#allocation76_spill] sm:$0xff] %v6248_v17  ;;  %v2234_v23 = vmul.f32 %v6245_v37, %v6245_v37  ;;  %v2235_v59 = vmul.f32 %v6248_v17, %v6248_v17  ;;  %v1706_v40 = vmul.f32 0.0051020407, %v1633_v27  ;;  %v6366_v17 = vld [vmem:[%s6266_s8 + $0x58] sm:$0xff]  ;;  %v6385_v37 = vld [vmem:[%s6266_s8 + $0x68] sm:$0xff] }
 0x2c3   : > { %v1876_v11 = vpop.permute.xlu1 %1875  ;;  %v1635_v50 = vpop.f32.mrf.mxu1 }
 0x2c4   : > { %v6257_v32 = vsub.f32 %v5757_v30, %v1876_v11  ;;  %v6260_v25 = vsub.f32 %v7966_v3, %v1876_v11  ;;  %4494 = vmatprep.mubr.msk.f32.mxu0 %vm1044_vm2, %v2235_v59  ;;  %2030 = vperm.xlu0 %4616, %v1706_v40   ;;  %v6273_v59 = vld [vmem:[%s6266_s8] sm:$0xff] }
 0x2c5   : > { %v1638_v29 = vpop.f32.mrf.mxu1  ;;  %2725 = vmatmul.mubr.f32.gmra.mxu0 %v2234_v23  ;;  %v7969_v11 = vld [vmem:[#allocation2_spill] sm:$0xff]  ;;  %v7657_v23 = vmov 1  }
 0x2c6   : > { %7965 = vst [vmem:[#allocation97_spill] sm:$0xff] %v6257_v32  ;;  %7967 = vst [vmem:[#allocation77_spill] sm:$0xff] %v6260_v25  ;;  %v2236_v50 = vmul.f32 %v6257_v32, %v6257_v32  ;;  %v2237_v30 = vmul.f32 %v6260_v25, %v6260_v25  ;;  %v1707_v7 = vmul.f32 0.0051020407, %v1638_v29  ;;  %v6328_v25 = vld [vmem:[%s6266_s8 + $0x38] sm:$0xff]  ;;  %v6347_v32 = vld [vmem:[%s6266_s8 + $0x48] sm:$0xff] }
 0x2c7   : > { %v1881_v21 = vpop.permute.xlu0 %1880  ;;  %v1640_v27 = vpop.f32.mrf.mxu1 }
 0x2c8   : > { %v6276_v40 = vsub.f32 %v5381_v39, %v1881_v21  ;;  %v6279_v3 = vsub.f32 %v7969_v11, %v1881_v21  ;;  %4495 = vmatprep.mubr.msk.f32.mxu0 %vm1044_vm2, %v2237_v30  ;;  %4618 = vset.pattern.permute.xlu0 %v7657_v23  ;;  %v6289_v21 = vld [vmem:[%s6266_s8 + $0x18] sm:$0xff]  ;;  %v6292_v11 = vld [vmem:[%s6266_s8 + $0x8] sm:$0xff] }
 0x2c9   : > { %2035 = vperm.xlu1 %4617, %v1707_v7   ;;  %2730 = vmatmul.mubr.f32.gmra.mxu0 %v2236_v50  ;;  %v7972_v7 = vld [vmem:[#allocation3_spill] sm:$0xff] }
 0x2ca   : > { %7968 = vst [vmem:[#allocation98_spill] sm:$0xff] %v6276_v40  ;;  %7970 = vst [vmem:[#allocation2_spill] sm:$0xff] %v6279_v3  ;;  %v2238_v29 = vmul.f32 %v6276_v40, %v6276_v40  ;;  %v2239_v27 = vmul.f32 %v6279_v3, %v6279_v3  ;;  %3689 = vperm.xlu0 %4618, %v6273_v59  }
 0x2cb   : > { %v1886_v39 = vpop.permute.xlu1 %1885 }
 0x2cc   : > { %v6295_v30 = vsub.f32 %v5392_v44, %v1886_v39  ;;  %v6298_v50 = vsub.f32 %v7972_v7, %v1886_v39  ;;  %4496 = vmatprep.mubr.msk.f32.mxu0 %vm1044_vm2, %v2239_v27  ;;  %v6309_v39 = vld [vmem:[%s6266_s8 + $0x28] sm:$0xff]  ;;  %v6312_v7 = vld [vmem:[%s6266_s8 + $0x10] sm:$0xff] }
 0x2cd   : > { %4619 = vset.pattern.permute.xlu1 %v7657_v23  ;;  %2735 = vmatmul.mubr.f32.gmra.mxu0 %v2238_v29  ;;  %v7975_v29 = vld [vmem:[#allocation4_spill] sm:$0xff] }
 0x2ce   : > { %7971 = vst [vmem:[#allocation99_spill] sm:$0xff] %v6295_v30  ;;  %7973 = vst [vmem:[#allocation3_spill] sm:$0xff] %v6298_v50  ;;  %v2240_v3 = vmul.f32 %v6295_v30, %v6295_v30  ;;  %v2241_v40 = vmul.f32 %v6298_v50, %v6298_v50  ;;  %3704 = vperm.xlu0 %4618, %v6289_v21   ;;  %3694 = vperm.xlu1 %4619, %v6292_v11  }
 0x2cf   : > { %v1891_v44 = vpop.permute.xlu0 %1890 }
 0x2d0   : > { %v6315_v27 = vsub.f32 %v5406_v49, %v1891_v44  ;;  %v6318_v23 = vsub.f32 %v7975_v29, %v1891_v44  ;;  %4497 = vmatprep.mubr.msk.f32.mxu0 %vm1044_vm2, %v2241_v40  ;;  %v6331_v44 = vld [vmem:[%s6266_s8 + $0x20] sm:$0xff] }
 0x2d1   : > { %2740 = vmatmul.mubr.f32.gmra.mxu0 %v2240_v3  ;;  %v7978_v3 = vld [vmem:[#allocation5_spill] sm:$0xff] }
 0x2d2   : > { %7974 = vst [vmem:[#allocation100_spill] sm:$0xff] %v6315_v27  ;;  %7976 = vst [vmem:[#allocation4_spill] sm:$0xff] %v6318_v23  ;;  %v2242_v50 = vmul.f32 %v6315_v27, %v6315_v27  ;;  %v2243_v30 = vmul.f32 %v6318_v23, %v6318_v23  ;;  %3714 = vperm.xlu0 %4618, %v6309_v39   ;;  %3699 = vperm.xlu1 %4619, %v6312_v7  }
 0x2d3   : > { %v1896_v49 = vpop.permute.xlu1 %1895 }
 0x2d4   : > { %v6334_v40 = vsub.f32 %v5421_v53, %v1896_v49  ;;  %v6337_v29 = vsub.f32 %v7978_v3, %v1896_v49  ;;  %4498 = vmatprep.mubr.msk.f32.mxu0 %vm1044_vm2, %v2243_v30  ;;  %v6350_v49 = vld [vmem:[%s6266_s8 + $0x30] sm:$0xff] }
 0x2d5   : > { %2745 = vmatmul.mubr.f32.gmra.mxu0 %v2242_v50  ;;  %v7981_v50 = vld [vmem:[#allocation7_spill] sm:$0xff] }
 0x2d6   : > { %7977 = vst [vmem:[#allocation101_spill] sm:$0xff] %v6334_v40  ;;  %7979 = vst [vmem:[#allocation5_spill] sm:$0xff] %v6337_v29  ;;  %v2244_v23 = vmul.f32 %v6334_v40, %v6334_v40  ;;  %v2245_v27 = vmul.f32 %v6337_v29, %v6337_v29  ;;  %3724 = vperm.xlu0 %4618, %v6328_v25   ;;  %3709 = vperm.xlu1 %4619, %v6331_v44  }
 0x2d7   : > { %v1901_v53 = vpop.permute.xlu0 %1900 }
 0x2d8   : > { %v6353_v30 = vsub.f32 %v5436_v57, %v1901_v53  ;;  %v6356_v3 = vsub.f32 %v7981_v50, %v1901_v53  ;;  %4499 = vmatprep.mubr.msk.f32.mxu0 %vm1044_vm2, %v2245_v27  ;;  %v6369_v53 = vld [vmem:[%s6266_s8 + $0x40] sm:$0xff] }
 0x2d9   : > { %2750 = vmatmul.mubr.f32.gmra.mxu0 %v2244_v23  ;;  %v7984_v23 = vld [vmem:[#allocation10_spill] sm:$0xff] }
 0x2da   : > { %7980 = vst [vmem:[#allocation102_spill] sm:$0xff] %v6353_v30  ;;  %7982 = vst [vmem:[#allocation7_spill] sm:$0xff] %v6356_v3  ;;  %v2246_v29 = vmul.f32 %v6353_v30, %v6353_v30  ;;  %v2247_v40 = vmul.f32 %v6356_v3, %v6356_v3  ;;  %3734 = vperm.xlu0 %4618, %v6347_v32   ;;  %3719 = vperm.xlu1 %4619, %v6350_v49  }
 0x2db   : > { %v1906_v57 = vpop.permute.xlu1 %1905 }
 0x2dc   : > { %v6372_v27 = vsub.f32 %v5451_v61, %v1906_v57  ;;  %v6375_v50 = vsub.f32 %v7984_v23, %v1906_v57  ;;  %4500 = vmatprep.mubr.msk.f32.mxu0 %vm1044_vm2, %v2247_v40  ;;  %v6388_v57 = vld [vmem:[%s6266_s8 + $0x50] sm:$0xff] }
 0x2dd   : > { %2755 = vmatmul.mubr.f32.gmra.mxu0 %v2246_v29  ;;  %v7987_v29 = vld [vmem:[#allocation13_spill] sm:$0xff] }
 0x2de   : > { %7983 = vst [vmem:[#allocation103_spill] sm:$0xff] %v6372_v27  ;;  %7985 = vst [vmem:[#allocation10_spill] sm:$0xff] %v6375_v50  ;;  %v2248_v3 = vmul.f32 %v6372_v27, %v6372_v27  ;;  %v2249_v30 = vmul.f32 %v6375_v50, %v6375_v50  ;;  %3744 = vperm.xlu0 %4618, %v6366_v17   ;;  %3729 = vperm.xlu1 %4619, %v6369_v53  }
 0x2df   : > { %v1911_v61 = vpop.permute.xlu0 %1910 }
 0x2e0   : > { %v6391_v40 = vsub.f32 %v5466_v1, %v1911_v61  ;;  %v6394_v23 = vsub.f32 %v7987_v29, %v1911_v61  ;;  %4501 = vmatprep.mubr.msk.f32.mxu0 %vm1044_vm2, %v2249_v30  ;;  %v6407_v61 = vld [vmem:[%s6266_s8 + $0x60] sm:$0xff] }
 0x2e1   : > { %2760 = vmatmul.mubr.f32.gmra.mxu0 %v2248_v3  ;;  %v7990_v3 = vld [vmem:[#allocation16_spill] sm:$0xff] }
 0x2e2   : > { %7986 = vst [vmem:[#allocation104_spill] sm:$0xff] %v6391_v40  ;;  %7988 = vst [vmem:[#allocation13_spill] sm:$0xff] %v6394_v23  ;;  %v2250_v50 = vmul.f32 %v6391_v40, %v6391_v40  ;;  %v2251_v27 = vmul.f32 %v6394_v23, %v6394_v23  ;;  %3754 = vperm.xlu0 %4618, %v6385_v37   ;;  %3739 = vperm.xlu1 %4619, %v6388_v57  }
 0x2e3   : > { %v1916_v1 = vpop.permute.xlu1 %1915 }
 0x2e4   : > { %v6410_v30 = vsub.f32 %v5481_v5, %v1916_v1  ;;  %v6413_v29 = vsub.f32 %v7990_v3, %v1916_v1  ;;  %4502 = vmatprep.mubr.msk.f32.mxu0 %vm1044_vm2, %v2251_v27  ;;  %v6426_v1 = vld [vmem:[%s6266_s8 + $0x70] sm:$0xff] }
 0x2e5   : > { %2765 = vmatmul.mubr.f32.gmra.mxu0 %v2250_v50  ;;  %v7993_v50 = vld [vmem:[#allocation19_spill] sm:$0xff] }
 0x2e6   : > { %7989 = vst [vmem:[#allocation105_spill] sm:$0xff] %v6410_v30  ;;  %7991 = vst [vmem:[#allocation16_spill] sm:$0xff] %v6413_v29  ;;  %v2252_v23 = vmul.f32 %v6410_v30, %v6410_v30  ;;  %v2253_v40 = vmul.f32 %v6413_v29, %v6413_v29  ;;  %3764 = vperm.xlu0 %4618, %v6404_v13   ;;  %3749 = vperm.xlu1 %4619, %v6407_v61  }
 0x2e7   : > { %v1921_v5 = vpop.permute.xlu0 %1920 }
 0x2e8   : > { %v6429_v27 = vsub.f32 %v5496_v9, %v1921_v5  ;;  %v6432_v3 = vsub.f32 %v7993_v50, %v1921_v5  ;;  %4503 = vmatprep.mubr.msk.f32.mxu0 %vm1044_vm2, %v2253_v40  ;;  %v6445_v5 = vld [vmem:[%s6266_s8 + $0x80] sm:$0xff]  ;;  %v7995_v50 = vld [vmem:[#allocation21_spill] sm:$0xff] }
 0x2e9   : > { %2770 = vmatmul.mubr.f32.gmra.mxu0 %v2252_v23  ;;  %v7997_v23 = vld [vmem:[#allocation23_spill] sm:$0xff] }
 0x2ea   : > { %7992 = vst [vmem:[#allocation106_spill] sm:$0xff] %v6429_v27  ;;  %7994 = vst [vmem:[#allocation19_spill] sm:$0xff] %v6432_v3  ;;  %v2254_v29 = vmul.f32 %v6429_v27, %v6429_v27  ;;  %v2255_v30 = vmul.f32 %v6432_v3, %v6432_v3  ;;  %3774 = vperm.xlu0 %4618, %v6423_v35   ;;  %3759 = vperm.xlu1 %4619, %v6426_v1  }
 0x2eb   : > { %v1926_v9 = vpop.permute.xlu1 %1925 }
 0x2ec   : > { %v6448_v40 = vsub.f32 %v7995_v50, %v1926_v9  ;;  %v6451_v56 = vsub.f32 %v7997_v23, %v1926_v9  ;;  %4504 = vmatprep.mubr.msk.f32.mxu0 %vm1044_vm2, %v2255_v30  ;;  %v6464_v9 = vld [vmem:[%s6266_s8 + $0x90] sm:$0xff]  ;;  %v7999_v23 = vld [vmem:[#allocation25_spill] sm:$0xff] }
 0x2ed   : > { %2775 = vmatmul.mubr.f32.gmra.mxu0 %v2254_v29  ;;  %v8001_v29 = vld [vmem:[#allocation27_spill] sm:$0xff] }
 0x2ee   : > { %7996 = vst [vmem:[#allocation21_spill] sm:$0xff] %v6448_v40  ;;  %7998 = vst [vmem:[#allocation23_spill] sm:$0xff] %v6451_v56  ;;  %v2256_v3 = vmul.f32 %v6448_v40, %v6448_v40  ;;  %v2257_v27 = vmul.f32 %v6451_v56, %v6451_v56  ;;  %3784 = vperm.xlu0 %4618, %v6442_v15   ;;  %3769 = vperm.xlu1 %4619, %v6445_v5  }
 0x2ef   : > { %v1931_v50 = vpop.permute.xlu0 %1930 }
 0x2f0   : > { %v6467_v30 = vsub.f32 %v7999_v23, %v1931_v50  ;;  %v6470_v54 = vsub.f32 %v8001_v29, %v1931_v50  ;;  %4505 = vmatprep.mubr.msk.f32.mxu0 %vm1044_vm2, %v2257_v27  ;;  %v6483_v50 = vld [vmem:[%s6266_s8 + $0xa0] sm:$0xff]  ;;  %v8003_v29 = vld [vmem:[#allocation29_spill] sm:$0xff] }
 0x2f1   : > { %2780 = vmatmul.mubr.f32.gmra.mxu0 %v2256_v3  ;;  %v8005_v3 = vld [vmem:[#allocation31_spill] sm:$0xff] }
 0x2f2   : > { %8000 = vst [vmem:[#allocation25_spill] sm:$0xff] %v6467_v30  ;;  %8002 = vst [vmem:[#allocation27_spill] sm:$0xff] %v6470_v54  ;;  %v2258_v56 = vmul.f32 %v6467_v30, %v6467_v30  ;;  %v2259_v40 = vmul.f32 %v6470_v54, %v6470_v54  ;;  %3794 = vperm.xlu0 %4618, %v6461_v47   ;;  %3779 = vperm.xlu1 %4619, %v6464_v9  }
 0x2f3   : > { %v1936_v23 = vpop.permute.xlu1 %1935 }
 0x2f4   : > { %v6486_v27 = vsub.f32 %v8003_v29, %v1936_v23  ;;  %v6489_v38 = vsub.f32 %v8005_v3, %v1936_v23  ;;  %4506 = vmatprep.mubr.msk.f32.mxu0 %vm1044_vm2, %v2259_v40  ;;  %v6502_v23 = vld [vmem:[%s6266_s8 + $0xb0] sm:$0xff]  ;;  %v8007_v3 = vld [vmem:[#allocation33_spill] sm:$0xff] }
 0x2f5   : > { %2785 = vmatmul.mubr.f32.gmra.mxu0 %v2258_v56  ;;  %v8009_v56 = vld [vmem:[#allocation35_spill] sm:$0xff] }
 0x2f6   : > { %8004 = vst [vmem:[#allocation29_spill] sm:$0xff] %v6486_v27  ;;  %8006 = vst [vmem:[#allocation31_spill] sm:$0xff] %v6489_v38  ;;  %v2260_v54 = vmul.f32 %v6486_v27, %v6486_v27  ;;  %v2261_v30 = vmul.f32 %v6489_v38, %v6489_v38  ;;  %3804 = vperm.xlu0 %4618, %v6480_v52   ;;  %3789 = vperm.xlu1 %4619, %v6483_v50  }
 0x2f7   : > { %v1941_v29 = vpop.permute.xlu0 %1940 }
 0x2f8   : > { %v6505_v40 = vsub.f32 %v8007_v3, %v1941_v29  ;;  %v6508_v45 = vsub.f32 %v8009_v56, %v1941_v29  ;;  %4507 = vmatprep.mubr.msk.f32.mxu0 %vm1044_vm2, %v2261_v30  ;;  %v6521_v29 = vld [vmem:[%s6266_s8 + $0xc0] sm:$0xff]  ;;  %v8012_v56 = vld [vmem:[#allocation37_spill] sm:$0xff] }
 0x2f9   : > { %2790 = vmatmul.mubr.f32.gmra.mxu0 %v2260_v54  ;;  %v8014_v54 = vld [vmem:[#allocation39_spill] sm:$0xff] }
 0x2fa   : > { %8008 = vst [vmem:[#allocation33_spill] sm:$0xff] %v6505_v40  ;;  %8010 = vst [vmem:[#allocation35_spill] sm:$0xff] %v6508_v45  ;;  %v2262_v38 = vmul.f32 %v6505_v40, %v6505_v40  ;;  %v2263_v27 = vmul.f32 %v6508_v45, %v6508_v45  ;;  %3814 = vperm.xlu0 %4618, %v6499_v63   ;;  %3799 = vperm.xlu1 %4619, %v6502_v23  }
 0x2fb   : > { %v1946_v3 = vpop.permute.xlu1 %1945 }
 0x2fc   : > { %v6524_v30 = vsub.f32 %v8012_v56, %v1946_v3  ;;  %v6527_v19 = vsub.f32 %v8014_v54, %v1946_v3  ;;  %4508 = vmatprep.mubr.msk.f32.mxu0 %vm1044_vm2, %v2263_v27  ;;  %v6540_v3 = vld [vmem:[%s6266_s8 + $0xd0] sm:$0xff] }
 0x2fd   : > { %2795 = vmatmul.mubr.f32.gmra.mxu0 %v2262_v38  ;;  %v8018_v38 = vld [vmem:[#allocation42_spill] sm:$0xff] }
 0x2fe   : > { %8013 = vst [vmem:[#allocation37_spill] sm:$0xff] %v6524_v30  ;;  %8015 = vst [vmem:[#allocation39_spill] sm:$0xff] %v6527_v19  ;;  %v2264_v45 = vmul.f32 %v6524_v30, %v6524_v30  ;;  %v2265_v40 = vmul.f32 %v6527_v19, %v6527_v19  ;;  %3824 = vperm.xlu0 %4618, %v6518_v42   ;;  %3809 = vperm.xlu1 %4619, %v6521_v29   ;;  %v6556_v42 = vld [vmem:[%s6266_s8 + $0xf8] sm:$0xff] }
 0x2ff   : > { %v1951_v56 = vpop.permute.xlu0 %1950  ;;  %8020 = vst [vmem:[#allocation110_spill] sm:$0xff] %v6556_v42 }
 0x300   : > { %v6543_v27 = vsub.f32 %v5585_v33, %v1951_v56  ;;  %v6546_v54 = vsub.f32 %v8018_v38, %v1951_v56  ;;  %4509 = vmatprep.mubr.msk.f32.mxu0 %vm1044_vm2, %v2265_v40  ;;  %v6559_v56 = vld [vmem:[%s6266_s8 + $0xe0] sm:$0xff] }
 0x301   : > { %2800 = vmatmul.mubr.f32.gmra.mxu0 %v2264_v45 }
 0x302   : > { %8017 = vst [vmem:[#allocation109_spill] sm:$0xff] %v6543_v27  ;;  %8019 = vst [vmem:[#allocation42_spill] sm:$0xff] %v6546_v54  ;;  %v2266_v19 = vmul.f32 %v6543_v27, %v6543_v27  ;;  %v2267_v30 = vmul.f32 %v6546_v54, %v6546_v54  ;;  %3834 = vperm.xlu0 %4618, %v6537_v31   ;;  %3819 = vperm.xlu1 %4619, %v6540_v3   ;;  %v6578_v31 = vld [vmem:[%s6266_s8 + $0xf0] sm:$0xff] }
 0x303   : > { %v1956_v33 = vpop.permute.xlu1 %1955 }
 0x304   : > { %v6562_v40 = vsub.f32 %v5598_v36, %v1956_v33  ;;  %v6565_v45 = vsub.f32 %v5607_v28, %v1956_v33  ;;  %4510 = vmatprep.mubr.msk.f32.mxu0 %vm1044_vm2, %v2267_v30  ;;  %v3126_v33 = vld [vmem:[%s6266_s8 + $0x108] sm:$0xff] }
 0x305   : > { %v6568_v38 = vpop.f32.mrf.mxu0  ;;  %2805 = vmatmul.mubr.f32.gmra.mxu0 %v2266_v19 }
 0x306   : > { %8021 = vst [vmem:[#allocation111_spill] sm:$0xff] %v6562_v40  ;;  %8022 = vst [vmem:[#allocation112_spill] sm:$0xff] %v6565_v45  ;;  %v2268_v54 = vmul.f32 %v6562_v40, %v6562_v40  ;;  %v2269_v27 = vmul.f32 %v6565_v45, %v6565_v45  ;;  %3844 = vperm.xlu0 %4618, %v6556_v42   ;;  %3829 = vperm.xlu1 %4619, %v6559_v56  }
 0x307   : > { %v2568_v36 = vpop.f32.mrf.mxu0  ;;  %v1961_v28 = vpop.permute.xlu0 %1960 }
 0x308   : > { %v6581_v30 = vsub.f32 %v5616_v26, %v1961_v28  ;;  %v6584_v19 = vsub.f32 %v5627_v24, %v1961_v28  ;;  %4511 = vmatprep.mubr.msk.f32.mxu0 %vm1044_vm2, %v2269_v27  ;;  %v3128_v24 = vld [vmem:[%s6266_s8 + $0x118] sm:$0xff]  ;;  %v6596_v28 = vld [vmem:[%s6266_s8 + $0x100] sm:$0xff] }
 0x309   : > { %v6587_v45 = vpop.f32.mrf.mxu0  ;;  %2810 = vmatmul.mubr.f32.gmra.mxu0 %v2268_v54 }
 0x30a   : > { %8023 = vst [vmem:[#allocation113_spill] sm:$0xff] %v6581_v30  ;;  %8024 = vst [vmem:[#allocation114_spill] sm:$0xff] %v6584_v19  ;;  %v2270_v40 = vmul.f32 %v6581_v30, %v6581_v30  ;;  %v2271_v36 = vmul.f32 %v6584_v19, %v6584_v19  ;;  %3854 = vperm.xlu0 %4618, %v3126_v33   ;;  %3839 = vperm.xlu1 %4619, %v6578_v31  }
 0x30b   : > { %v2573_v26 = vpop.f32.mrf.mxu0  ;;  %v1966_v42 = vpop.permute.xlu1 %1965 }
 0x30c   : > { %v6599_v27 = vsub.f32 %v5636_v48, %v1966_v42  ;;  %v6602_v54 = vsub.f32 %v5645_v20, %v1966_v42  ;;  %4512 = vmatprep.mubr.msk.f32.mxu0 %vm1044_vm2, %v2271_v36  ;;  %v3130_v20 = vld [vmem:[%s6266_s8 + $0x128] sm:$0xff]  ;;  %v6614_v42 = vld [vmem:[%s6266_s8 + $0x110] sm:$0xff] }
 0x30d   : > { %v6605_v30 = vpop.f32.mrf.mxu0  ;;  %2815 = vmatmul.mubr.f32.gmra.mxu0 %v2270_v40 }
 0x30e   : > { %8025 = vst [vmem:[#allocation115_spill] sm:$0xff] %v6599_v27  ;;  %8026 = vst [vmem:[#allocation116_spill] sm:$0xff] %v6602_v54  ;;  %v2272_v33 = vmul.f32 %v6599_v27, %v6599_v27  ;;  %v2273_v26 = vmul.f32 %v6602_v54, %v6602_v54  ;;  %3864 = vperm.xlu0 %4618, %v3128_v24   ;;  %3849 = vperm.xlu1 %4619, %v6596_v28  }
 0x30f   : > { %v2578_v48 = vpop.f32.mrf.mxu0  ;;  %v1971_v19 = vpop.permute.xlu0 %1970 }
 0x310   : > { %v6617_v36 = vsub.f32 %v5654_v18, %v1971_v19  ;;  %v6620_v40 = vsub.f32 %v5663_v16, %v1971_v19  ;;  %4513 = vmatprep.mubr.msk.f32.mxu0 %vm1044_vm2, %v2273_v26  ;;  %v3132_v16 = vld [vmem:[%s6266_s8 + $0x138] sm:$0xff]  ;;  %v6632_v19 = vld [vmem:[%s6266_s8 + $0x120] sm:$0xff] }
 0x311   : > { %v6623_v27 = vpop.f32.mrf.mxu0  ;;  %2820 = vmatmul.mubr.f32.gmra.mxu0 %v2272_v33 }
 0x312   : > { %8027 = vst [vmem:[#allocation117_spill] sm:$0xff] %v6617_v36  ;;  %8028 = vst [vmem:[#allocation118_spill] sm:$0xff] %v6620_v40  ;;  %v2274_v24 = vmul.f32 %v6617_v36, %v6617_v36  ;;  %v2275_v48 = vmul.f32 %v6620_v40, %v6620_v40  ;;  %3874 = vperm.xlu0 %4618, %v3130_v20   ;;  %3859 = vperm.xlu1 %4619, %v6614_v42  }
 0x313   : > { %v2583_v18 = vpop.f32.mrf.mxu0  ;;  %v1976_v54 = vpop.permute.xlu1 %1975 }
 0x314   : > { %v6635_v26 = vsub.f32 %v5672_v14, %v1976_v54  ;;  %v6638_v33 = vsub.f32 %v5681_v12, %v1976_v54  ;;  %4514 = vmatprep.mubr.msk.f32.mxu0 %vm1044_vm2, %v2275_v48  ;;  %v3134_v12 = vld [vmem:[%s6266_s8 + $0x148] sm:$0xff]  ;;  %v6650_v54 = vld [vmem:[%s6266_s8 + $0x130] sm:$0xff] }
 0x315   : > { %v6641_v36 = vpop.f32.mrf.mxu0  ;;  %2825 = vmatmul.mubr.f32.gmra.mxu0 %v2274_v24  ;;  %8031 = vst [vmem:[#allocation121_spill] sm:$0xff] %v6650_v54 }
 0x316   : > { %8029 = vst [vmem:[#allocation119_spill] sm:$0xff] %v6635_v26  ;;  %8030 = vst [vmem:[#allocation120_spill] sm:$0xff] %v6638_v33  ;;  %v2276_v20 = vmul.f32 %v6635_v26, %v6635_v26  ;;  %v2277_v18 = vmul.f32 %v6638_v33, %v6638_v33  ;;  %3884 = vperm.xlu0 %4618, %v3132_v16   ;;  %3869 = vperm.xlu1 %4619, %v6632_v19  }
 0x317   : > { %v2588_v14 = vpop.f32.mrf.mxu0  ;;  %v1981_v40 = vpop.permute.xlu0 %1980 }
 0x318   : > { %v6653_v48 = vsub.f32 %v5690_v10, %v1981_v40  ;;  %v6656_v24 = vsub.f32 %v5699_v8, %v1981_v40  ;;  %4515 = vmatprep.mubr.msk.f32.mxu0 %vm1044_vm2, %v2277_v18  ;;  %v3136_v8 = vld [vmem:[%s6266_s8 + $0x158] sm:$0xff]  ;;  %v3133_v40 = vld [vmem:[%s6266_s8 + $0x140] sm:$0xff] }
 0x319   : > { %v6659_v26 = vpop.f32.mrf.mxu0  ;;  %2830 = vmatmul.mubr.f32.gmra.mxu0 %v2276_v20 }
 0x31a   : > { %8032 = vst [vmem:[#allocation122_spill] sm:$0xff] %v6653_v48  ;;  %8033 = vst [vmem:[#allocation123_spill] sm:$0xff] %v6656_v24  ;;  %v2278_v16 = vmul.f32 %v6653_v48, %v6653_v48  ;;  %v2279_v14 = vmul.f32 %v6656_v24, %v6656_v24  ;;  %3894 = vperm.xlu0 %4618, %v3134_v12   ;;  %3879 = vperm.xlu1 %4619, %v6650_v54   ;;  %v3138_v54 = vld [vmem:[%s6266_s8 + $0x168] sm:$0xff] }
 0x31b   : > { %v2593_v10 = vpop.f32.mrf.mxu0  ;;  %v1986_v33 = vpop.permute.xlu1 %1985 }
 0x31c   : > { %v6669_v18 = vsub.f32 %v5708_v6, %v1986_v33  ;;  %v6672_v20 = vsub.f32 %v5717_v4, %v1986_v33  ;;  %4516 = vmatprep.mubr.msk.f32.mxu0 %vm1044_vm2, %v2279_v14  ;;  %v3135_v4 = vld [vmem:[%s6266_s8 + $0x150] sm:$0xff] }
 0x31d   : > { %v6675_v48 = vpop.f32.mrf.mxu0  ;;  %2835 = vmatmul.mubr.f32.gmra.mxu0 %v2278_v16 }
 0x31e   : > { %8034 = vst [vmem:[#allocation124_spill] sm:$0xff] %v6669_v18  ;;  %8035 = vst [vmem:[#allocation125_spill] sm:$0xff] %v6672_v20  ;;  %v2280_v12 = vmul.f32 %v6669_v18, %v6669_v18  ;;  %v2281_v10 = vmul.f32 %v6672_v20, %v6672_v20  ;;  %3904 = vperm.xlu0 %4618, %v3136_v8   ;;  %3889 = vperm.xlu1 %4619, %v3133_v40   ;;  %v3140_v20 = vld [vmem:[%s6266_s8 + $0x178] sm:$0xff] }
 0x31f   : > { %v2598_v24 = vpop.f32.mrf.mxu0  ;;  %v1991_v6 = vpop.permute.xlu0 %1990 }
 0x320   : > { %v6684_v33 = vsub.f32 %v5726_v2, %v1991_v6  ;;  %v6687_v14 = vsub.f32 %v5735_v0, %v1991_v6  ;;  %4517 = vmatprep.mubr.msk.f32.mxu0 %vm1044_vm2, %v2281_v10  ;;  %v3137_v0 = vld [vmem:[%s6266_s8 + $0x160] sm:$0xff] }
 0x321   : > { %v6690_v16 = vpop.f32.mrf.mxu0  ;;  %2840 = vmatmul.mubr.f32.gmra.mxu0 %v2280_v12 }
 0x322   : > { %8036 = vst [vmem:[#allocation126_spill] sm:$0xff] %v6684_v33  ;;  %8037 = vst [vmem:[#allocation127_spill] sm:$0xff] %v6687_v14  ;;  %v2282_v8 = vmul.f32 %v6684_v33, %v6684_v33  ;;  %v2283_v24 = vmul.f32 %v6687_v14, %v6687_v14  ;;  %3914 = vperm.xlu0 %4618, %v3138_v54   ;;  %3899 = vperm.xlu1 %4619, %v3135_v4   ;;  %v3142_v14 = vld [vmem:[%s6266_s8 + $0x188] sm:$0xff] }
 0x323   : > { %v2603_v40 = vpop.f32.mrf.mxu0  ;;  %v1996_v2 = vpop.permute.xlu1 %1995 }
 0x324   : > { %v6699_v6 = vsub.f32 %v5744_v62, %v1996_v2  ;;  %v6702_v10 = vsub.f32 %v5753_v60, %v1996_v2  ;;  %4518 = vmatprep.mubr.msk.f32.mxu0 %vm1044_vm2, %v2283_v24  ;;  %v3139_v60 = vld [vmem:[%s6266_s8 + $0x170] sm:$0xff] }
 0x325   : > { %v6705_v12 = vpop.f32.mrf.mxu0  ;;  %2845 = vmatmul.mubr.f32.gmra.mxu0 %v2282_v8 }
 0x326   : > { %8038 = vst [vmem:[#allocation128_spill] sm:$0xff] %v6699_v6  ;;  %8039 = vst [vmem:[#allocation129_spill] sm:$0xff] %v6702_v10  ;;  %v2284_v54 = vmul.f32 %v6699_v6, %v6699_v6  ;;  %v2285_v4 = vmul.f32 %v6702_v10, %v6702_v10  ;;  %3924 = vperm.xlu0 %4618, %v3140_v20   ;;  %3909 = vperm.xlu1 %4619, %v3137_v0   ;;  %v3144_v10 = vld [vmem:[%s6266_s8 + $0x198] sm:$0xff] }
 0x327   : > { %v2608_v40 = vpop.f32.mrf.mxu0  ;;  %v2001_v62 = vpop.permute.xlu0 %2000 }
 0x328   : > { %v6714_v2 = vsub.f32 %v5762_v58, %v2001_v62  ;;  %v6717_v24 = vsub.f32 %v5769_v22, %v2001_v62  ;;  %4519 = vmatprep.mubr.msk.f32.mxu0 %vm1044_vm2, %v2285_v4  ;;  %v3141_v22 = vld [vmem:[%s6266_s8 + $0x180] sm:$0xff] }
 0x329   : > { %v6720_v8 = vpop.f32.mrf.mxu0  ;;  %2850 = vmatmul.mubr.f32.gmra.mxu0 %v2284_v54 }
 0x32a   : > { %8040 = vst [vmem:[#allocation130_spill] sm:$0xff] %v6714_v2  ;;  %8041 = vst [vmem:[#allocation131_spill] sm:$0xff] %v6717_v24  ;;  %v2286_v20 = vmul.f32 %v6714_v2, %v6714_v2  ;;  %v2287_v0 = vmul.f32 %v6717_v24, %v6717_v24  ;;  %3934 = vperm.xlu0 %4618, %v3142_v14   ;;  %3919 = vperm.xlu1 %4619, %v3139_v60   ;;  %v3146_v24 = vld [vmem:[%s6266_s8 + $0x1a8] sm:$0xff] }
 0x32b   : > { %v2613_v40 = vpop.f32.mrf.mxu0  ;;  %v2006_v58 = vpop.permute.xlu1 %2005  ;;  %v8050_v2 = vld [vmem:[#allocation79_spill] sm:$0xff] }
 0x32c   : > { %v6729_v62 = vsub.f32 %v5774_v34, %v2006_v58  ;;  %v6732_v4 = vsub.f32 %v5779_v43, %v2006_v58  ;;  %4520 = vmatprep.mubr.msk.f32.mxu0 %vm1044_vm2, %v2287_v0  ;;  %v3143_v43 = vld [vmem:[%s6266_s8 + $0x190] sm:$0xff] }
 0x32d   : > { %v6735_v54 = vpop.f32.mrf.mxu0  ;;  %2855 = vmatmul.mubr.f32.gmra.mxu0 %v2286_v20  ;;  %v2895_v20 = vmul.f32 0.0051020407, %v6568_v38 }
 0x32e   : > { %8042 = vst [vmem:[#allocation132_spill] sm:$0xff] %v6729_v62  ;;  %8043 = vst [vmem:[#allocation133_spill] sm:$0xff] %v6732_v4  ;;  %v2288_v14 = vmul.f32 %v6729_v62, %v6729_v62  ;;  %v2289_v60 = vmul.f32 %v6732_v4, %v6732_v4  ;;  %3944 = vperm.xlu0 %4618, %v3144_v10   ;;  %3929 = vperm.xlu1 %4619, %v3141_v22   ;;  %v3148_v4 = vld [vmem:[%s6266_s8 + $0x1b8] sm:$0xff] }
 0x32f   : > { %v2618_v40 = vpop.f32.mrf.mxu0  ;;  %v2011_v34 = vpop.permute.xlu0 %2010 }
 0x330   : > { %v6744_v58 = vsub.f32 %v5784_v41, %v2011_v34  ;;  %v6747_v0 = vsub.f32 %v5789_v46, %v2011_v34  ;;  %4521 = vmatprep.mubr.msk.f32.mxu0 %vm1044_vm2, %v2289_v60  ;;  %v3145_v46 = vld [vmem:[%s6266_s8 + $0x1a0] sm:$0xff]  ;;  %v2896_v60 = vmul.f32 0.0051020407, %v6587_v45  ;;  %v2961_v34 = vadd.f32 0.001, %v2895_v20 }
 0x331   : > { %v6751_v62 = vpop.f32.mrf.mxu0  ;;  %2860 = vmatmul.mubr.f32.gmra.mxu0 %v2288_v14 }
 0x332   : > { %8044 = vst [vmem:[#allocation134_spill] sm:$0xff] %v6744_v58  ;;  %8045 = vst [vmem:[#allocation135_spill] sm:$0xff] %v6747_v0  ;;  %v2290_v10 = vmul.f32 %v6744_v58, %v6744_v58  ;;  %v2291_v22 = vmul.f32 %v6747_v0, %v6747_v0  ;;  %3954 = vperm.xlu0 %4618, %v3146_v24   ;;  %3939 = vperm.xlu1 %4619, %v3143_v43   ;;  %v2897_v24 = vmul.f32 0.0051020407, %v6605_v30  ;;  %v3150_v0 = vld [vmem:[%s6266_s8 + $0x1c8] sm:$0xff]  ;;  %v8048_v58 = vld [vmem:[#allocation78_spill] sm:$0xff] }
 0x333   : > { %v2623_v41 = vpop.f32.mrf.mxu0  ;;  %v2016_v40 = vpop.permute.xlu1 %2015  ;;  %v2962_v20 = vadd.f32 0.001, %v2896_v60  ;;  %4624 = vrsqrt.f32 %v2961_v34  ;;  %v3152_v34 = vld [vmem:[%s6266_s8 + $0x1d8] sm:$0xff] }
 0x334   : > { %v6761_v38 = vsub.f32 %v5794_v51, %v2016_v40  ;;  %v6764_v14 = vsub.f32 %v5799_v55, %v2016_v40  ;;  %4522 = vmatprep.mubr.msk.f32.mxu0 %vm1044_vm2, %v2291_v22  ;;  %v2898_v51 = vmul.f32 0.0051020407, %v6623_v27  ;;  %v3147_v22 = vld [vmem:[%s6266_s8 + $0x1b0] sm:$0xff] }
 0x335   : > { %v6768_v43 = vpop.f32.mrf.mxu0  ;;  %2865 = vmatmul.mubr.f32.gmra.mxu0 %v2290_v10  ;;  %4626 = vrsqrt.f32 %v2962_v20 }
 0x336   : > { %8046 = vst [vmem:[#allocation136_spill] sm:$0xff] %v6761_v38  ;;  %8047 = vst [vmem:[#allocation137_spill] sm:$0xff] %v6764_v14  ;;  %v2292_v41 = vmul.f32 %v6761_v38, %v6761_v38  ;;  %v2293_v45 = vmul.f32 %v6764_v14, %v6764_v14  ;;  %3964 = vperm.xlu0 %4618, %v3148_v4   ;;  %3949 = vperm.xlu1 %4619, %v3145_v46   ;;  %v2963_v4 = vadd.f32 0.001, %v2897_v24  ;;  %v3149_v24 = vld [vmem:[%s6266_s8 + $0x1c0] sm:$0xff]  ;;  %v8052_v14 = vld [vmem:[#allocation80_spill] sm:$0xff] }
 0x337   : > { %v2628_v55 = vpop.f32.mrf.mxu0  ;;  %v2021_v40 = vpop.permute.xlu0 %2020  ;;  %v2899_v46 = vmul.f32 0.0051020407, %v6641_v36  ;;  %v2901_v36 = vmul.f32 0.0051020407, %v6675_v48 }
 0x338   : > { %v6778_v30 = vsub.f32 %v8048_v58, %v2021_v40  ;;  %v6781_v10 = vsub.f32 %v8050_v2, %v2021_v40  ;;  %4523 = vmatprep.mubr.msk.f32.mxu0 %vm1044_vm2, %v2293_v45  ;;  %v2964_v2 = vadd.f32 0.001, %v2898_v51  ;;  %v2900_v55 = vmul.f32 0.0051020407, %v6659_v26 }
 0x339   : > { %v6785_v27 = vpop.f32.mrf.mxu0  ;;  %2870 = vmatmul.mubr.f32.gmra.mxu0 %v2292_v41  ;;  %4628 = vrsqrt.f32 %v2963_v4  ;;  %v2967_v4 = vadd.f32 0.001, %v2901_v36  ;;  %v3156_v36 = vld [vmem:[%s6266_s8 + $0x1f8] sm:$0xff] }
 0x33a   : > { %8049 = vst [vmem:[#allocation78_spill] sm:$0xff] %v6778_v30  ;;  %8051 = vst [vmem:[#allocation79_spill] sm:$0xff] %v6781_v10  ;;  %v2294_v60 = vmul.f32 %v6778_v30, %v6778_v30  ;;  %v2295_v58 = vmul.f32 %v6781_v10, %v6781_v10  ;;  %3974 = vperm.xlu0 %4618, %v3150_v0   ;;  %3959 = vperm.xlu1 %4619, %v3147_v22   ;;  %v8054_v30 = vld [vmem:[#allocation81_spill] sm:$0xff]  ;;  %v2965_v0 = vadd.f32 0.001, %v2899_v46 }
 0x33b   : > { %v2633_v40 = vpop.f32.mrf.mxu0  ;;  %v2026_v45 = vpop.permute.xlu1 %2025  ;;  %4630 = vrsqrt.f32 %v2964_v2  ;;  %v2902_v46 = vmul.f32 0.0051020407, %v6690_v16  ;;  %v2903_v2 = vmul.f32 0.0051020407, %v6705_v12 }
 0x33c   : > { %v6796_v41 = vsub.f32 %v8052_v14, %v2026_v45  ;;  %v6799_v38 = vsub.f32 %v8054_v30, %v2026_v45  ;;  %4524 = vmatprep.mubr.msk.f32.mxu0 %vm1044_vm2, %v2295_v58  ;;  %v2966_v14 = vadd.f32 0.001, %v2900_v55  ;;  %v3154_v30 = vld [vmem:[%s6266_s8 + $0x1e8] sm:$0xff]  ;;  %v3151_v40 = vld [vmem:[%s6266_s8 + $0x1d0] sm:$0xff]  ;;  %4632 = vrsqrt.f32 %v2965_v0 }
 0x33d   : > { %v6802_v26 = vpop.f32.mrf.mxu0  ;;  %2875 = vmatmul.mubr.f32.gmra.mxu0 %v2294_v60  ;;  %v8056_v60 = vld [vmem:[#allocation82_spill] sm:$0xff]  ;;  %v8058_v45 = vld [vmem:[#allocation83_spill] sm:$0xff]  ;;  %v2904_v0 = vmul.f32 0.0051020407, %v6720_v8 }
 0x33e   : > { %8053 = vst [vmem:[#allocation80_spill] sm:$0xff] %v6796_v41  ;;  %8055 = vst [vmem:[#allocation81_spill] sm:$0xff] %v6799_v38  ;;  %v2296_v51 = vmul.f32 %v6796_v41, %v6796_v41  ;;  %v2297_v48 = vmul.f32 %v6799_v38, %v6799_v38  ;;  %3984 = vperm.xlu0 %4618, %v3152_v34   ;;  %3969 = vperm.xlu1 %4619, %v3149_v24   ;;  %4634 = vrsqrt.f32 %v2966_v14 }
 0x33f   : > { %v2638_v22 = vpop.f32.mrf.mxu0  ;;  %v2031_v20 = vpop.permute.xlu0 %2030  ;;  %4636 = vrsqrt.f32 %v2967_v4 }
 0x340   : > { %v6812_v58 = vsub.f32 %v8056_v60, %v2031_v20  ;;  %v6815_v41 = vsub.f32 %v8058_v45, %v2031_v20  ;;  %4525 = vmatprep.mubr.msk.f32.mxu0 %vm1044_vm2, %v2297_v48  ;;  %v3153_v22 = vld [vmem:[%s6266_s8 + $0x1e0] sm:$0xff]  ;;  %v2968_v48 = vadd.f32 0.001, %v2902_v46  ;;  %v2905_v20 = vmul.f32 0.0051020407, %v6735_v54  ;;  %v8060_v60 = vld [vmem:[#allocation84_spill] sm:$0xff]  ;;  %v4625_v4 = vpop.eup %4624 }
 0x341   : > { %v6819_v55 = vpop.f32.mrf.mxu0  ;;  %2880 = vmatmul.mubr.f32.gmra.mxu0 %v2296_v51  ;;  %v2969_v51 = vadd.f32 0.001, %v2903_v2  ;;  %v3155_v2 = vld [vmem:[%s6266_s8 + $0x1f0] sm:$0xff] }
 0x342   : > { %8057 = vst [vmem:[#allocation82_spill] sm:$0xff] %v6812_v58  ;;  %8059 = vst [vmem:[#allocation83_spill] sm:$0xff] %v6815_v41  ;;  %v2298_v34 = vmul.f32 %v6812_v58, %v6812_v58  ;;  %v2299_v16 = vmul.f32 %v6815_v41, %v6815_v41  ;;  %3994 = vperm.xlu0 %4618, %v3154_v30   ;;  %3979 = vperm.xlu1 %4619, %v3151_v40   ;;  %v8062_v30 = vld [vmem:[#allocation85_spill] sm:$0xff]  ;;  %4638 = vrsqrt.f32 %v2968_v48 }
 0x343   : > { %v2643_v24 = vpop.f32.mrf.mxu0  ;;  %4640 = vrsqrt.f32 %v2969_v51 }
 0x344   : > { %v2036_v12 = vpop.permute.xlu1 %2035  ;;  %4526 = vmatprep.mubr.msk.f32.mxu0 %vm1044_vm2, %v2299_v16  ;;  %v2970_v16 = vadd.f32 0.001, %v2904_v0 }
 0x345   : > { %v6831_v45 = vsub.f32 %v8060_v60, %v2036_v12  ;;  %v6834_v40 = vsub.f32 %v8062_v30, %v2036_v12  ;;  %v6836_v14 = vpop.permute.xlu0 %3689  ;;  %v2646_v24 = vpop.f32.mrf.mxu0  ;;  %2885 = vmatmul.mubr.f32.gmra.mxu0 %v2298_v34  ;;  %v2906_v12 = vmul.f32 0.0051020407, %v6751_v62  ;;  %v2971_v30 = vadd.f32 0.001, %v2905_v20 }
 0x346   : > { %4004 = vperm.xlu0 %4618, %v3156_v36   ;;  %3989 = vperm.xlu1 %4619, %v3153_v22   ;;  %v4627_v60 = vpop.eup %4626  ;;  %v2907_v34 = vmul.f32 0.0051020407, %v6768_v43  ;;  %v3159_v22 = vmul.f32 %v4625_v4, %v6273_v59  ;;  %4642 = vrsqrt.f32 %v2970_v16  ;;  %v2908_v43 = vmul.f32 0.0051020407, %v6785_v27 }
 0x347   : > { %8061 = vst [vmem:[#allocation84_spill] sm:$0xff] %v6831_v45  ;;  %8063 = vst [vmem:[#allocation85_spill] sm:$0xff] %v6834_v40  ;;  %v2300_v8 = vmul.f32 %v6831_v45, %v6831_v45  ;;  %v2301_v46 = vmul.f32 %v6834_v40, %v6834_v40  ;;  %v2648_v54 = vpop.f32.mrf.mxu0  ;;  %v4629_v58 = vpop.eup %4628  ;;  %v8064_v40 = vmov 0   ;;  %v2972_v48 = vadd.f32 0.001, %v2906_v12 }
 0x348   : > { %v4631_v62 = vpop.eup %4630  ;;  %v3160_v51 = vmul.f32 %v4627_v60, %v6292_v11  ;;  %4644 = vrsqrt.f32 %v2971_v30  ;;  %v2973_v20 = vadd.f32 0.001, %v2907_v34  ;;  %v2974_v16 = vadd.f32 0.001, %v2908_v43 }
 0x349   : > { %v6845_v41 = vpop.permute.xlu0 %3704  ;;  %4527 = vmatprep.mubr.msk.f32.mxu1 %vm1044_vm2, %v2301_v46  ;;  %v6848_v36 = vpop.permute.xlu1 %3694  ;;  %v2909_v46 = vmul.f32 0.0051020407, %v6802_v26  ;;  %4646 = vrsqrt.f32 %v2972_v48  ;;  %v2910_v11 = vmul.f32 0.0051020407, %v6819_v55  ;;  %v3162_v26 = vmul.f32 %v4631_v62, %v6289_v21 }
 0x34a   : > { %v2651_v54 = vpop.f32.mrf.mxu0  ;;  %4620 = vset.pattern.permute.xlu0 %v8064_v40  ;;  %3999 = vperm.xlu1 %4619, %v3155_v2   ;;  %v3161_v2 = vmul.f32 %v4629_v58, %v6312_v7  ;;  %4648 = vrsqrt.f32 %v2973_v20  ;;  %v2911_v34 = vmul.f32 0.0051020407, %v2646_v24 }
 0x34b   : > { %2890 = vmatmul.mubr.f32.vlgmr.msra.gmra.mxu1 %v2300_v8  ;;  %3227 = vperm.xlu0 %4620, %v3159_v22   ;;  %v4633_v8 = vpop.eup %4632  ;;  %v2975_v30 = vadd.f32 0.001, %v2909_v46  ;;  %4650 = vrsqrt.f32 %v2974_v16  ;;  %v2976_v48 = vadd.f32 0.001, %v2910_v11  ;;  %v2912_v43 = vmul.f32 0.0051020407, %v2651_v54 }
 0x34c   : > { %v2653_v0 = vpop.f32.mrf.mxu0  ;;  %v4635_v27 = vpop.eup %4634  ;;  %v3163_v58 = vmul.f32 %v4633_v8, %v6331_v44  ;;  %v2977_v62 = vadd.f32 0.001, %v2911_v34 }
 0x34d   : > { %v6855_v59 = vpop.permute.xlu0 %3714  ;;  %v6857_v4 = vpop.permute.xlu1 %3699  ;;  %4652 = vrsqrt.f32 %v2975_v30  ;;  %v2978_v16 = vadd.f32 0.001, %v2912_v43 }
 0x34e   : > { %v2656_v22 = vpop.f32.mrf.mxu0  ;;  %4621 = vset.pattern.permute.xlu1 %v8064_v40  ;;  %v4637_v60 = vpop.eup %4636  ;;  %4654 = vrsqrt.f32 %v2976_v48 }
 0x34f   : > { %3237 = vperm.xlu0 %4620, %v3161_v2   ;;  %3232 = vperm.xlu1 %4621, %v3160_v51   ;;  %v3164_v51 = vmul.f32 %v4635_v27, %v6309_v39  ;;  %v4639_v21 = vpop.eup %4638  ;;  %v2913_v20 = vmul.f32 0.0051020407, %v2656_v22  ;;  %v3165_v2 = vmul.f32 %v4637_v60, %v6350_v49  ;;  %4656 = vrsqrt.f32 %v2977_v62 }
 0x350   : > { %v2658_v12 = vpop.f32.mrf.mxu0  ;;  %v4641_v44 = vpop.eup %4640  ;;  %v3166_v39 = vmul.f32 %v4639_v21, %v6328_v25  ;;  %4658 = vrsqrt.f32 %v2978_v16 }
 0x351   : > { %v6863_v0 = vpop.permute.xlu0 %3724  ;;  %v6865_v7 = vpop.permute.xlu1 %3709  ;;  %v2979_v12 = vadd.f32 0.001, %v2913_v20  ;;  %v3167_v49 = vmul.f32 %v4641_v44, %v6369_v53 }
 0x352   : > { %v2661_v40 = vpop.f32.mrf.mxu0 }
 0x353   : > { %3247 = vperm.xlu0 %4620, %v3163_v58   ;;  %3242 = vperm.xlu1 %4621, %v3162_v26   ;;  %v2914_v54 = vmul.f32 0.0051020407, %v2661_v40  ;;  %v4643_v27 = vpop.eup %4642  ;;  %4660 = vrsqrt.f32 %v2979_v12 }
 0x354   : > { %v2663_v55 = vpop.f32.mrf.mxu0  ;;  %v3168_v62 = vmul.f32 %v4643_v27, %v6347_v32 }
 0x355   : > { %v6869_v24 = vpop.permute.xlu0 %3734  ;;  %v6871_v46 = vpop.permute.xlu1 %3719  ;;  %v2980_v58 = vadd.f32 0.001, %v2914_v54 }
 0x356   : > { %v2666_v8 = vpop.f32.mrf.mxu0  ;;  %v4645_v60 = vpop.eup %4644 }
 0x357   : > { %3257 = vperm.xlu0 %4620, %v3165_v2   ;;  %3252 = vperm.xlu1 %4621, %v3164_v51   ;;  %v2915_v22 = vmul.f32 0.0051020407, %v2666_v8  ;;  %v4647_v43 = vpop.eup %4646  ;;  %v3169_v21 = vmul.f32 %v4645_v60, %v6388_v57  ;;  %4662 = vrsqrt.f32 %v2980_v58 }
 0x358   : > { %v2668_v11 = vpop.f32.mrf.mxu0  ;;  %v4649_v53 = vpop.eup %4648  ;;  %v3170_v57 = vmul.f32 %v4647_v43, %v6366_v17 }
 0x359   : > { %v6875_v26 = vpop.permute.xlu0 %3744  ;;  %v6877_v30 = vpop.permute.xlu1 %3729  ;;  %v2981_v25 = vadd.f32 0.001, %v2915_v22  ;;  %v3171_v12 = vmul.f32 %v4649_v53, %v6407_v61 }
 0x35a   : > { %v2671_v34 = vpop.f32.mrf.mxu0  ;;  %v4651_v16 = vpop.eup %4650 }
 0x35b   : > { %3267 = vperm.xlu0 %4620, %v3167_v49   ;;  %3262 = vperm.xlu1 %4621, %v3166_v39   ;;  %v2916_v40 = vmul.f32 0.0051020407, %v2671_v34  ;;  %4664 = vrsqrt.f32 %v2981_v25  ;;  %v4653_v32 = vpop.eup %4652  ;;  %v3172_v61 = vmul.f32 %v4651_v16, %v6385_v37 }
 0x35c   : > { %v2673_v48 = vpop.f32.mrf.mxu0  ;;  %v4655_v60 = vpop.eup %4654 }
 0x35d   : > { %v6880_v55 = vpop.permute.xlu0 %3754  ;;  %v6882_v51 = vpop.permute.xlu1 %3739  ;;  %v2982_v44 = vadd.f32 0.001, %v2916_v40  ;;  %v3173_v48 = vmul.f32 %v4653_v32, %v6426_v1 }
 0x35e   : > { %v2676_v20 = vpop.f32.mrf.mxu0  ;;  %v4657_v25 = vpop.eup %4656 }
 0x35f   : > { %v2917_v2 = vmul.f32 0.0051020407, %v2676_v20  ;;  %3277 = vperm.xlu0 %4620, %v3169_v21   ;;  %3272 = vperm.xlu1 %4621, %v3168_v62   ;;  %4666 = vrsqrt.f32 %v2982_v44  ;;  %v4659_v62 = vpop.eup %4658  ;;  %v3175_v44 = vmul.f32 %v4657_v25, %v6445_v5 }
 0x360   : > { %v2678_v8 = vpop.f32.mrf.mxu0  ;;  %v4661_v1 = vpop.eup %4660 }
 0x361   : > { %v2983_v54 = vadd.f32 0.001, %v2917_v2  ;;  %v6886_v11 = vpop.permute.xlu0 %3764  ;;  %v6888_v39 = vpop.permute.xlu1 %3749  ;;  %v3174_v8 = vmul.f32 %v4655_v60, %v6404_v13 }
 0x362   : > { %v2681_v27 = vpop.f32.mrf.mxu0 }
 0x363   : > { %v2918_v22 = vmul.f32 0.0051020407, %v2681_v27  ;;  %3287 = vperm.xlu0 %4620, %v3171_v12   ;;  %3282 = vperm.xlu1 %4621, %v3170_v57   ;;  %4668 = vrsqrt.f32 %v2983_v54 }
 0x364   : > { %v2683_v49 = vpop.f32.mrf.mxu0  ;;  %v4663_v12 = vpop.eup %4662 }
 0x365   : > { %v2984_v34 = vadd.f32 0.001, %v2918_v22  ;;  %v6892_v58 = vpop.permute.xlu0 %3774  ;;  %v6894_v40 = vpop.permute.xlu1 %3759  ;;  %v3177_v22 = vmul.f32 %v4661_v1, %v6464_v9  ;;  %v3176_v49 = vmul.f32 %v4659_v62, %v6423_v35 }
 0x366   : > { %v2686_v17 = vpop.f32.mrf.mxu0 }
 0x367   : > { %v2919_v43 = vmul.f32 0.0051020407, %v2686_v17  ;;  %3297 = vperm.xlu0 %4620, %v3173_v48   ;;  %3292 = vperm.xlu1 %4621, %v3172_v61   ;;  %4670 = vrsqrt.f32 %v2984_v34 }
 0x368   : > { %v2688_v21 = vpop.f32.mrf.mxu0  ;;  %v4665_v5 = vpop.eup %4664 }
 0x369   : > { %v2985_v53 = vadd.f32 0.001, %v2919_v43  ;;  %v6898_v20 = vpop.permute.xlu0 %3784  ;;  %v6900_v2 = vpop.permute.xlu1 %3769  ;;  %v3179_v43 = vmul.f32 %v4665_v5, %v6483_v50  ;;  %v3178_v21 = vmul.f32 %v4663_v12, %v6442_v15 }
 0x36a   : > { %v2691_v54 = vpop.f32.mrf.mxu0 }
 0x36b   : > { %4672 = vrsqrt.f32 %v2985_v53  ;;  %v2920_v37 = vmul.f32 0.0051020407, %v2691_v54  ;;  %3307 = vperm.xlu0 %4620, %v3175_v44   ;;  %3302 = vperm.xlu1 %4621, %v3174_v8  }
 0x36c   : > { %v2693_v16 = vpop.f32.mrf.mxu0  ;;  %v4667_v48 = vpop.eup %4666 }
 0x36d   : > { %v2986_v57 = vadd.f32 0.001, %v2920_v37  ;;  %v6904_v32 = vpop.permute.xlu0 %3794  ;;  %v6906_v27 = vpop.permute.xlu1 %3779  ;;  %v3180_v37 = vmul.f32 %v4667_v48, %v6461_v47 }
 0x36e   : > { %v2696_v34 = vpop.f32.mrf.mxu0 }
 0x36f   : > { %4674 = vrsqrt.f32 %v2986_v57  ;;  %v2921_v13 = vmul.f32 0.0051020407, %v2696_v34  ;;  %3317 = vperm.xlu0 %4620, %v3177_v22   ;;  %3312 = vperm.xlu1 %4621, %v3176_v49  }
 0x370   : > { %v2698_v60 = vpop.f32.mrf.mxu0  ;;  %v4669_v9 = vpop.eup %4668 }
 0x371   : > { %v2987_v61 = vadd.f32 0.001, %v2921_v13  ;;  %v6910_v25 = vpop.permute.xlu0 %3804  ;;  %v6912_v17 = vpop.permute.xlu1 %3789  ;;  %v3181_v54 = vmul.f32 %v4669_v9, %v6502_v23 }
 0x372   : > { %v2701_v53 = vpop.f32.mrf.mxu0 }
 0x373   : > { %4676 = vrsqrt.f32 %v2987_v61  ;;  %v2922_v35 = vmul.f32 0.0051020407, %v2701_v53  ;;  %3327 = vperm.xlu0 %4620, %v3179_v43   ;;  %3322 = vperm.xlu1 %4621, %v3178_v21  }
 0x374   : > { %v2703_v62 = vpop.f32.mrf.mxu0  ;;  %v4671_v16 = vpop.eup %4670 }
 0x375   : > { %v2988_v44 = vadd.f32 0.001, %v2922_v35  ;;  %v6916_v8 = vpop.permute.xlu0 %3814  ;;  %v6918_v1 = vpop.permute.xlu1 %3799  ;;  %v3182_v13 = vmul.f32 %v4671_v16, %v6480_v52 }
 0x376   : > { %v2706_v50 = vpop.f32.mrf.mxu0 }
 0x377   : > { %4678 = vrsqrt.f32 %v2988_v44  ;;  %v2923_v15 = vmul.f32 0.0051020407, %v2706_v50  ;;  %3337 = vperm.xlu0 %4620, %v3181_v54   ;;  %3332 = vperm.xlu1 %4621, %v3180_v37  }
 0x378   : > { %v4673_v12 = vpop.eup %4672  ;;  %v2708_v57 = vpop.f32.mrf.mxu0 }
 0x379   : > { %v2989_v22 = vadd.f32 0.001, %v2923_v15  ;;  %v6922_v49 = vpop.permute.xlu0 %3824  ;;  %v6924_v5 = vpop.permute.xlu1 %3809  ;;  %v3183_v34 = vmul.f32 %v4673_v12, %v6521_v29 }
 0x37a   : > { %v2711_v23 = vpop.f32.mrf.mxu0 }
 0x37b   : > { %4680 = vrsqrt.f32 %v2989_v22  ;;  %v2924_v47 = vmul.f32 0.0051020407, %v2711_v23  ;;  %3347 = vperm.xlu0 %4620, %v3183_v34   ;;  %3342 = vperm.xlu1 %4621, %v3182_v13   ;;  %v8065_v34 = vld [vmem:[#allocation107_spill] sm:$0xff] }
 0x37c   : > { %v4675_v60 = vpop.eup %4674  ;;  %v2713_v48 = vpop.f32.mrf.mxu0 }
 0x37d   : > { %v2990_v61 = vadd.f32 0.001, %v2924_v47  ;;  %v6928_v43 = vpop.permute.xlu0 %3834  ;;  %v6930_v21 = vpop.permute.xlu1 %3819  ;;  %v3184_v9 = vmul.f32 %v4675_v60, %v6499_v63 }
 0x37e   : > { %v2716_v53 = vpop.f32.mrf.mxu0 }
 0x37f   : > { %4682 = vrsqrt.f32 %v2990_v61  ;;  %v2925_v35 = vmul.f32 0.0051020407, %v2716_v53  ;;  %3352 = vperm.xlu1 %4621, %v3184_v9  }
 0x380   : > { %v4677_v29 = vpop.eup %4676  ;;  %v2718_v52 = vpop.f32.mrf.mxu0 }
 0x381   : > { %v2991_v62 = vadd.f32 0.001, %v2925_v35  ;;  %v6933_v44 = vpop.permute.xlu0 %3844  ;;  %v6935_v54 = vpop.permute.xlu1 %3829  ;;  %v3185_v37 = vmul.f32 %v4677_v29, %v6540_v3 }
 0x382   : > { %v2721_v16 = vpop.f32.mrf.mxu0 }
 0x383   : > { %4684 = vrsqrt.f32 %v2991_v62  ;;  %v2926_v50 = vmul.f32 0.0051020407, %v2721_v16  ;;  %3357 = vperm.xlu0 %4620, %v3185_v37  }
 0x384   : > { %v4679_v15 = vpop.eup %4678  ;;  %v2723_v12 = vpop.f32.mrf.mxu0 }
 0x385   : > { %v2992_v63 = vadd.f32 0.001, %v2926_v50  ;;  %v6938_v57 = vpop.permute.xlu0 %3854  ;;  %v6940_v22 = vpop.permute.xlu1 %3839  ;;  %v3186_v13 = vmul.f32 %v4679_v15, %v8065_v34  ;;  %v8066_v15 = vld [vmem:[#allocation108_spill] sm:$0xff] }
 0x386   : > { %v2726_v23 = vpop.f32.mrf.mxu0 }
 0x387   : > { %4686 = vrsqrt.f32 %v2992_v63  ;;  %v2927_v47 = vmul.f32 0.0051020407, %v2726_v23  ;;  %3362 = vperm.xlu1 %4621, %v3186_v13  }
 0x388   : > { %v4681_v60 = vpop.eup %4680  ;;  %v2728_v48 = vpop.f32.mrf.mxu0 }
 0x389   : > { %v2993_v3 = vadd.f32 0.001, %v2927_v47  ;;  %v6943_v61 = vpop.permute.xlu0 %3864  ;;  %v6945_v9 = vpop.permute.xlu1 %3849  ;;  %v3187_v53 = vmul.f32 %v4681_v60, %v6559_v56 }
 0x38a   : > { %v2731_v35 = vpop.f32.mrf.mxu0 }
 0x38b   : > { %4688 = vrsqrt.f32 %v2993_v3  ;;  %v2928_v29 = vmul.f32 0.0051020407, %v2731_v35  ;;  %3367 = vperm.xlu0 %4620, %v3187_v53  }
 0x38c   : > { %v4683_v52 = vpop.eup %4682  ;;  %v2733_v62 = vpop.f32.mrf.mxu0 }
 0x38d   : > { %v2994_v37 = vadd.f32 0.001, %v2928_v29  ;;  %v6948_v16 = vpop.permute.xlu0 %3874  ;;  %v6950_v50 = vpop.permute.xlu1 %3859  ;;  %v3188_v12 = vmul.f32 %v4683_v52, %v8066_v15  ;;  %v8067_v15 = vld [vmem:[#allocation110_spill] sm:$0xff] }
 0x38e   : > { %v2736_v63 = vpop.f32.mrf.mxu0 }
 0x38f   : > { %4690 = vrsqrt.f32 %v2994_v37  ;;  %v2929_v34 = vmul.f32 0.0051020407, %v2736_v63  ;;  %3372 = vperm.xlu1 %4621, %v3188_v12  }
 0x390   : > { %v4685_v13 = vpop.eup %4684  ;;  %v2738_v23 = vpop.f32.mrf.mxu0 }
 0x391   : > { %v2995_v56 = vadd.f32 0.001, %v2929_v34  ;;  %v6953_v47 = vpop.permute.xlu0 %3884  ;;  %v6955_v60 = vpop.permute.xlu1 %3869  ;;  %v3189_v48 = vmul.f32 %v4685_v13, %v6578_v31 }
 0x392   : > { %v2741_v3 = vpop.f32.mrf.mxu0 }
 0x393   : > { %4692 = vrsqrt.f32 %v2995_v56  ;;  %v2930_v53 = vmul.f32 0.0051020407, %v2741_v3  ;;  %3377 = vperm.xlu0 %4620, %v3189_v48  }
 0x394   : > { %v4687_v35 = vpop.eup %4686  ;;  %v2743_v29 = vpop.f32.mrf.mxu0 }
 0x395   : > { %v2996_v52 = vadd.f32 0.001, %v2930_v53  ;;  %v6958_v62 = vpop.permute.xlu0 %3894  ;;  %v6960_v37 = vpop.permute.xlu1 %3879  ;;  %v3190_v12 = vmul.f32 %v4687_v35, %v8067_v15 }
 0x396   : > { %v2746_v63 = vpop.f32.mrf.mxu0 }
 0x397   : > { %4694 = vrsqrt.f32 %v2996_v52  ;;  %v2931_v34 = vmul.f32 0.0051020407, %v2746_v63  ;;  %3382 = vperm.xlu1 %4621, %v3190_v12   ;;  %v4756_v63 = vld [vmem:[%s6266_s8 + $0x108] sm:$0xff] }
 0x398   : > { %v4689_v23 = vpop.eup %4688  ;;  %v2748_v31 = vpop.f32.mrf.mxu0 }
 0x399   : > { %v2997_v13 = vadd.f32 0.001, %v2931_v34  ;;  %v6963_v56 = vpop.permute.xlu0 %3904  ;;  %v6965_v48 = vpop.permute.xlu1 %3889  ;;  %v3191_v3 = vmul.f32 %v4689_v23, %v6596_v28 }
 0x39a   : > { %v2751_v53 = vpop.f32.mrf.mxu0 }
 0x39b   : > { %4696 = vrsqrt.f32 %v2997_v13  ;;  %v2932_v29 = vmul.f32 0.0051020407, %v2751_v53  ;;  %3387 = vperm.xlu0 %4620, %v3191_v3  }
 0x39c   : > { %v4691_v45 = vpop.eup %4690  ;;  %v2753_v35 = vpop.f32.mrf.mxu0 }
 0x39d   : > { %v2998_v15 = vadd.f32 0.001, %v2932_v29  ;;  %v6968_v52 = vpop.permute.xlu0 %3914  ;;  %v6970_v12 = vpop.permute.xlu1 %3899  ;;  %v3192_v31 = vmul.f32 %v4756_v63, %v4691_v45 }
 0x39e   : > { %v2756_v34 = vpop.f32.mrf.mxu0 }
 0x39f   : > { %4698 = vrsqrt.f32 %v2998_v15  ;;  %v2933_v38 = vmul.f32 0.0051020407, %v2756_v34  ;;  %3392 = vperm.xlu1 %4621, %v3192_v31   ;;  %v4757_v34 = vld [vmem:[%s6266_s8 + $0x118] sm:$0xff] }
 0x3a0   : > { %v4693_v10 = vpop.eup %4692  ;;  %v2758_v28 = vpop.f32.mrf.mxu0 }
 0x3a1   : > { %v2999_v23 = vadd.f32 0.001, %v2933_v38  ;;  %v6973_v13 = vpop.permute.xlu0 %3924  ;;  %v6975_v3 = vpop.permute.xlu1 %3909  ;;  %v3193_v53 = vmul.f32 %v4693_v10, %v6614_v42 }
 0x3a2   : > { %8068 = vst [vmem:[#allocation107_spill] sm:$0xff] %v6973_v13  ;;  %v2761_v29 = vpop.f32.mrf.mxu0 }
 0x3a3   : > { %4700 = vrsqrt.f32 %v2999_v23  ;;  %v2934_v35 = vmul.f32 0.0051020407, %v2761_v29  ;;  %3397 = vperm.xlu0 %4620, %v3193_v53  }
 0x3a4   : > { %v4695_v6 = vpop.eup %4694  ;;  %v2763_v45 = vpop.f32.mrf.mxu0 }
 0x3a5   : > { %v3000_v63 = vadd.f32 0.001, %v2934_v35  ;;  %v6978_v15 = vpop.permute.xlu0 %3934  ;;  %v6980_v31 = vpop.permute.xlu1 %3919  ;;  %v3194_v28 = vmul.f32 %v4757_v34, %v4695_v6 }
 0x3a6   : > { %8069 = vst [vmem:[#allocation108_spill] sm:$0xff] %v6978_v15  ;;  %8070 = vst [vmem:[#allocation110_spill] sm:$0xff] %v6980_v31  ;;  %v2766_v38 = vpop.f32.mrf.mxu0 }
 0x3a7   : > { %4702 = vrsqrt.f32 %v3000_v63  ;;  %v2935_v33 = vmul.f32 0.0051020407, %v2766_v38  ;;  %3402 = vperm.xlu1 %4621, %v3194_v28   ;;  %v4758_v38 = vld [vmem:[%s6266_s8 + $0x128] sm:$0xff] }
 0x3a8   : > { %v4697_v18 = vpop.eup %4696  ;;  %v2768_v42 = vpop.f32.mrf.mxu0 }
 0x3a9   : > { %v3001_v10 = vadd.f32 0.001, %v2935_v33  ;;  %v6983_v23 = vpop.permute.xlu0 %3944  ;;  %v6985_v53 = vpop.permute.xlu1 %3929  ;;  %v3195_v29 = vmul.f32 %v4697_v18, %v6632_v19 }
 0x3aa   : > { %8071 = vst [vmem:[#allocation138_spill] sm:$0xff] %v6983_v23  ;;  %8072 = vst [vmem:[#allocation139_spill] sm:$0xff] %v6985_v53  ;;  %v2771_v35 = vpop.f32.mrf.mxu0 }
 0x3ab   : > { %4704 = vrsqrt.f32 %v3001_v10  ;;  %v2936_v45 = vmul.f32 0.0051020407, %v2771_v35  ;;  %3407 = vperm.xlu0 %4620, %v3195_v29   ;;  %v8077_v35 = vld [vmem:[#allocation121_spill] sm:$0xff] }
 0x3ac   : > { %v4699_v15 = vpop.eup %4698  ;;  %v2773_v6 = vpop.f32.mrf.mxu0 }
 0x3ad   : > { %v3002_v34 = vadd.f32 0.001, %v2936_v45  ;;  %v6988_v63 = vpop.permute.xlu0 %3954  ;;  %v6990_v28 = vpop.permute.xlu1 %3939  ;;  %v3196_v42 = vmul.f32 %v4758_v38, %v4699_v15 }
 0x3ae   : > { %8073 = vst [vmem:[#allocation140_spill] sm:$0xff] %v6988_v63  ;;  %8074 = vst [vmem:[#allocation141_spill] sm:$0xff] %v6990_v28  ;;  %v2776_v33 = vpop.f32.mrf.mxu0 }
 0x3af   : > { %4706 = vrsqrt.f32 %v3002_v34  ;;  %v2937_v23 = vmul.f32 0.0051020407, %v2776_v33  ;;  %3412 = vperm.xlu1 %4621, %v3196_v42   ;;  %v4759_v33 = vld [vmem:[%s6266_s8 + $0x138] sm:$0xff] }
 0x3b0   : > { %v4701_v53 = vpop.eup %4700  ;;  %v2778_v19 = vpop.f32.mrf.mxu0 }
 0x3b1   : > { %v3003_v18 = vadd.f32 0.001, %v2937_v23  ;;  %v6993_v10 = vpop.permute.xlu0 %3964  ;;  %v6995_v29 = vpop.permute.xlu1 %3949  ;;  %v3197_v45 = vmul.f32 %v4701_v53, %v8077_v35 }
 0x3b2   : > { %8075 = vst [vmem:[#allocation142_spill] sm:$0xff] %v6993_v10  ;;  %8076 = vst [vmem:[#allocation143_spill] sm:$0xff] %v6995_v29  ;;  %v2781_v6 = vpop.f32.mrf.mxu0 }
 0x3b3   : > { %4708 = vrsqrt.f32 %v3003_v18  ;;  %v2938_v63 = vmul.f32 0.0051020407, %v2781_v6  ;;  %3417 = vperm.xlu0 %4620, %v3197_v45   ;;  %v4760_v6 = vld [vmem:[%s6266_s8 + $0x140] sm:$0xff] }
 0x3b4   : > { %v4703_v28 = vpop.eup %4702  ;;  %v2783_v15 = vpop.f32.mrf.mxu0 }
 0x3b5   : > { %v3004_v34 = vadd.f32 0.001, %v2938_v63  ;;  %v6998_v38 = vpop.permute.xlu0 %3974  ;;  %v7000_v42 = vpop.permute.xlu1 %3959  ;;  %v3198_v23 = vmul.f32 %v4759_v33, %v4703_v28 }
 0x3b6   : > { %8078 = vst [vmem:[#allocation121_spill] sm:$0xff] %v6998_v38  ;;  %8079 = vst [vmem:[#allocation144_spill] sm:$0xff] %v7000_v42  ;;  %v2786_v19 = vpop.f32.mrf.mxu0 }
 0x3b7   : > { %4710 = vrsqrt.f32 %v3004_v34  ;;  %v2939_v10 = vmul.f32 0.0051020407, %v2786_v19  ;;  %3422 = vperm.xlu1 %4621, %v3198_v23   ;;  %v4761_v19 = vld [vmem:[%s6266_s8 + $0x148] sm:$0xff] }
 0x3b8   : > { %v4705_v29 = vpop.eup %4704  ;;  %v2788_v53 = vpop.f32.mrf.mxu0 }
 0x3b9   : > { %v3005_v18 = vadd.f32 0.001, %v2939_v10  ;;  %v7003_v35 = vpop.permute.xlu0 %3984  ;;  %v7005_v45 = vpop.permute.xlu1 %3969  ;;  %v3199_v63 = vmul.f32 %v4760_v6, %v4705_v29 }
 0x3ba   : > { %8080 = vst [vmem:[#allocation145_spill] sm:$0xff] %v7003_v35  ;;  %8081 = vst [vmem:[#allocation146_spill] sm:$0xff] %v7005_v45  ;;  %v2791_v15 = vpop.f32.mrf.mxu0 }
 0x3bb   : > { %4712 = vrsqrt.f32 %v3005_v18  ;;  %v2940_v38 = vmul.f32 0.0051020407, %v2791_v15  ;;  %3427 = vperm.xlu0 %4620, %v3199_v63  }
 0x3bc   : > { %v4707_v42 = vpop.eup %4706  ;;  %v2793_v28 = vpop.f32.mrf.mxu0 }
 0x3bd   : > { %v3006_v34 = vadd.f32 0.001, %v2940_v38  ;;  %v7008_v33 = vpop.permute.xlu0 %3994  ;;  %v7010_v23 = vpop.permute.xlu1 %3979  ;;  %v3200_v10 = vmul.f32 %v4761_v19, %v4707_v42  ;;  %v4762_v28 = vld [vmem:[%s6266_s8 + $0x150] sm:$0xff] }
 0x3be   : > { %8082 = vst [vmem:[#allocation147_spill] sm:$0xff] %v7008_v33  ;;  %8083 = vst [vmem:[#allocation148_spill] sm:$0xff] %v7010_v23  ;;  %v2796_v53 = vpop.f32.mrf.mxu0 }
 0x3bf   : > { %4714 = vrsqrt.f32 %v3006_v34  ;;  %v2941_v35 = vmul.f32 0.0051020407, %v2796_v53  ;;  %3432 = vperm.xlu1 %4621, %v3200_v10   ;;  %v4763_v10 = vld [vmem:[%s6266_s8 + $0x158] sm:$0xff] }
 0x3c0   : > { %v4709_v29 = vpop.eup %4708  ;;  %v2798_v6 = vpop.f32.mrf.mxu0 }
 0x3c1   : > { %v3007_v18 = vadd.f32 0.001, %v2941_v35  ;;  %v7013_v15 = vpop.permute.xlu0 %4004  ;;  %v7015_v63 = vpop.permute.xlu1 %3989  ;;  %v3201_v38 = vmul.f32 %v4762_v28, %v4709_v29  ;;  %v8088_v29 = vld [vmem:[#allocation87_spill] sm:$0xff] }
 0x3c2   : > { %8084 = vst [vmem:[#allocation149_spill] sm:$0xff] %v7013_v15  ;;  %8085 = vst [vmem:[#allocation150_spill] sm:$0xff] %v7015_v63  ;;  %v2801_v45 = vpop.f32.mrf.mxu0  ;;  %v8087_v63 = vld [vmem:[#allocation86_spill] sm:$0xff] }
 0x3c3   : > { %4716 = vrsqrt.f32 %v3007_v18  ;;  %v2942_v33 = vmul.f32 0.0051020407, %v2801_v45  ;;  %3437 = vperm.xlu0 %4620, %v3201_v38  }
 0x3c4   : > { %v4711_v42 = vpop.eup %4710  ;;  %v2803_v19 = vpop.f32.mrf.mxu0 }
 0x3c5   : > { %v3008_v34 = vadd.f32 0.001, %v2942_v33  ;;  %v7018_v53 = vpop.permute.xlu1 %3999  ;;  %v3202_v6 = vmul.f32 %v4763_v10, %v4711_v42  ;;  %v4764_v19 = vld [vmem:[%s6266_s8 + $0x160] sm:$0xff] }
 0x3c6   : > { %8086 = vst [vmem:[#allocation151_spill] sm:$0xff] %v7018_v53  ;;  %v2806_v35 = vpop.f32.mrf.mxu0  ;;  %v3228_v23 = vpop.permute.xlu0 %3227 }
 0x3c7   : > { %4718 = vrsqrt.f32 %v3008_v34  ;;  %v2943_v15 = vmul.f32 0.0051020407, %v2806_v35  ;;  %v3555_v13 = vmul.f32 %v3228_v23, %v8087_v63  ;;  %v3556_v28 = vmul.f32 %v3228_v23, %v8088_v29  ;;  %3442 = vperm.xlu1 %4621, %v3202_v6   ;;  %v8089_v6 = vld [vmem:[#allocation90_spill] sm:$0xff]  ;;  %v8090_v29 = vld [vmem:[#allocation91_spill] sm:$0xff] }
 0x3c8   : > { %v4713_v45 = vpop.eup %4712  ;;  %v2808_v33 = vpop.f32.mrf.mxu0 }
 0x3c9   : > { %v3009_v18 = vadd.f32 0.001, %v2943_v15  ;;  %v4017_v38 = vadd.f32 %v6836_v14, %v3555_v13  ;;  %v4018_v42 = vadd.f32 %v6836_v14, %v3556_v28  ;;  %v3203_v63 = vmul.f32 %v4764_v19, %v4713_v45  ;;  %v8091_v14 = vld [vmem:[#allocation88_spill] sm:$0xff]  ;;  %v8092_v28 = vld [vmem:[#allocation89_spill] sm:$0xff] }
 0x3ca   : > { %v2811_v34 = vpop.f32.mrf.mxu0  ;;  %v3238_v23 = vpop.permute.xlu0 %3237 }
 0x3cb   : > { %4720 = vrsqrt.f32 %v3009_v18  ;;  %4149 = vst [vmem:[%s7028_s11] sm:$0xff] %v4017_v38  ;;  %4150 = vst.msk [vmem:[%s7028_s11 + $0x8] sm:$0xff] %vm1044_vm2, %v4018_v42  ;;  %v2944_v10 = vmul.f32 0.0051020407, %v2811_v34  ;;  %v3559_v35 = vmul.f32 %v3238_v23, %v8089_v6  ;;  %v3560_v53 = vmul.f32 %v3238_v23, %v8090_v29  ;;  %v3233_v33 = vpop.permute.xlu1 %3232  ;;  %3447 = vperm.xlu0 %4620, %v3203_v63   ;;  %v4765_v42 = vld [vmem:[%s6266_s8 + $0x168] sm:$0xff] }
 0x3cc   : > { %v4715_v13 = vpop.eup %4714  ;;  %v3557_v15 = vmul.f32 %v3233_v33, %v8091_v14  ;;  %v3558_v45 = vmul.f32 %v3233_v33, %v8092_v28  ;;  %v2813_v19 = vpop.f32.mrf.mxu0  ;;  %v8093_v33 = vld [vmem:[#allocation94_spill] sm:$0xff] }
 0x3cd   : > { %v3010_v31 = vadd.f32 0.001, %v2944_v10  ;;  %v4021_v18 = vadd.f32 %v6857_v4, %v3559_v35  ;;  %v4022_v38 = vadd.f32 %v6857_v4, %v3560_v53  ;;  %v3204_v34 = vmul.f32 %v4765_v42, %v4715_v13  ;;  %v8094_v14 = vld [vmem:[#allocation6_spill] sm:$0xff]  ;;  %v4766_v42 = vld [vmem:[%s6266_s8 + $0x170] sm:$0xff] }
 0x3ce   : > { %v4019_v23 = vadd.f32 %v6848_v36, %v3557_v15  ;;  %v4020_v63 = vadd.f32 %v6848_v36, %v3558_v45  ;;  %v2816_v6 = vpop.f32.mrf.mxu0  ;;  %v3248_v29 = vpop.permute.xlu0 %3247  ;;  %v8095_v36 = vld [vmem:[#allocation92_spill] sm:$0xff] }
 0x3cf   : > { %4722 = vrsqrt.f32 %v3010_v31  ;;  %4153 = vst [vmem:[%s7028_s11 + $0x20] sm:$0xff] %v4021_v18  ;;  %4154 = vst.msk [vmem:[%s7028_s11 + $0x28] sm:$0xff] %vm1044_vm2, %v4022_v38  ;;  %v2945_v10 = vmul.f32 0.0051020407, %v2816_v6  ;;  %v3563_v35 = vmul.f32 %v3248_v29, %v8093_v33  ;;  %v3564_v4 = vmul.f32 %v3248_v29, %v8094_v14  ;;  %v3243_v53 = vpop.permute.xlu1 %3242  ;;  %3452 = vperm.xlu1 %4621, %v3204_v34   ;;  %v8096_v31 = vld [vmem:[#allocation93_spill] sm:$0xff]  ;;  %v8097_v33 = vld [vmem:[#allocation11_spill] sm:$0xff] }
 0x3d0   : > { %v4717_v28 = vpop.eup %4716  ;;  %4151 = vst [vmem:[%s7028_s11 + $0x10] sm:$0xff] %v4019_v23  ;;  %4152 = vst.msk [vmem:[%s7028_s11 + $0x18] sm:$0xff] %vm1044_vm2, %v4020_v63  ;;  %v3561_v13 = vmul.f32 %v3243_v53, %v8095_v36  ;;  %v3562_v15 = vmul.f32 %v3243_v53, %v8096_v31  ;;  %v2818_v45 = vpop.f32.mrf.mxu0  ;;  %v8098_v14 = vld [vmem:[#allocation12_spill] sm:$0xff]  ;;  %v8100_v36 = vld [vmem:[#allocation9_spill] sm:$0xff] }
 0x3d1   : > { %v3011_v19 = vadd.f32 0.001, %v2945_v10  ;;  %v4025_v18 = vadd.f32 %v6865_v7, %v3563_v35  ;;  %v4026_v38 = vadd.f32 %v6865_v7, %v3564_v4  ;;  %v3205_v34 = vmul.f32 %v4766_v42, %v4717_v28 }
 0x3d2   : > { %v4023_v6 = vadd.f32 %v6845_v41, %v3561_v13  ;;  %v4024_v23 = vadd.f32 %v6845_v41, %v3562_v15  ;;  %v2821_v29 = vpop.f32.mrf.mxu0  ;;  %v3258_v63 = vpop.permute.xlu0 %3257  ;;  %v8099_v41 = vld [vmem:[#allocation8_spill] sm:$0xff] }
 0x3d3   : > { %4724 = vrsqrt.f32 %v3011_v19  ;;  %4157 = vst [vmem:[%s7028_s11 + $0x40] sm:$0xff] %v4025_v18  ;;  %4158 = vst.msk [vmem:[%s7028_s11 + $0x48] sm:$0xff] %vm1044_vm2, %v4026_v38  ;;  %v2946_v10 = vmul.f32 0.0051020407, %v2821_v29  ;;  %v3567_v35 = vmul.f32 %v3258_v63, %v8097_v33  ;;  %v3568_v7 = vmul.f32 %v3258_v63, %v8098_v14  ;;  %v3253_v4 = vpop.permute.xlu1 %3252  ;;  %3457 = vperm.xlu0 %4620, %v3205_v34   ;;  %v4767_v18 = vld [vmem:[%s6266_s8 + $0x178] sm:$0xff]  ;;  %v8102_v33 = vld [vmem:[#allocation18_spill] sm:$0xff] }
 0x3d4   : > { %v4719_v53 = vpop.eup %4718  ;;  %4155 = vst [vmem:[%s7028_s11 + $0x30] sm:$0xff] %v4023_v6  ;;  %4156 = vst.msk [vmem:[%s7028_s11 + $0x38] sm:$0xff] %vm1044_vm2, %v4024_v23  ;;  %v3565_v28 = vmul.f32 %v3253_v4, %v8099_v41  ;;  %v3566_v13 = vmul.f32 %v3253_v4, %v8100_v36  ;;  %v2823_v31 = vpop.f32.mrf.mxu0  ;;  %v8101_v63 = vld [vmem:[#allocation17_spill] sm:$0xff]  ;;  %v8104_v4 = vld [vmem:[#allocation15_spill] sm:$0xff] }
 0x3d5   : > { %v3012_v15 = vadd.f32 0.001, %v2946_v10  ;;  %v4029_v45 = vadd.f32 %v6871_v46, %v3567_v35  ;;  %v4030_v19 = vadd.f32 %v6871_v46, %v3568_v7  ;;  %v3206_v38 = vmul.f32 %v4767_v18, %v4719_v53  ;;  %v4768_v31 = vld [vmem:[%s6266_s8 + $0x180] sm:$0xff] }
 0x3d6   : > { %v4027_v42 = vadd.f32 %v6855_v59, %v3565_v28  ;;  %v4028_v34 = vadd.f32 %v6855_v59, %v3566_v13  ;;  %v2826_v6 = vpop.f32.mrf.mxu0  ;;  %v3268_v23 = vpop.permute.xlu0 %3267  ;;  %v8103_v59 = vld [vmem:[#allocation14_spill] sm:$0xff] }
 0x3d7   : > { %4726 = vrsqrt.f32 %v3012_v15  ;;  %4161 = vst [vmem:[%s7028_s11 + $0x60] sm:$0xff] %v4029_v45  ;;  %4162 = vst.msk [vmem:[%s7028_s11 + $0x68] sm:$0xff] %vm1044_vm2, %v4030_v19  ;;  %v2947_v29 = vmul.f32 0.0051020407, %v2826_v6  ;;  %v3571_v10 = vmul.f32 %v3268_v23, %v8101_v63  ;;  %v3572_v46 = vmul.f32 %v3268_v23, %v8102_v33  ;;  %v3263_v35 = vpop.permute.xlu1 %3262  ;;  %3462 = vperm.xlu1 %4621, %v3206_v38   ;;  %v8106_v23 = vld [vmem:[#allocation26_spill] sm:$0xff] }
 0x3d8   : > { %v4721_v14 = vpop.eup %4720  ;;  %4159 = vst [vmem:[%s7028_s11 + $0x50] sm:$0xff] %v4027_v42  ;;  %4160 = vst.msk [vmem:[%s7028_s11 + $0x58] sm:$0xff] %vm1044_vm2, %v4028_v34  ;;  %v3569_v7 = vmul.f32 %v3263_v35, %v8103_v59  ;;  %v3570_v53 = vmul.f32 %v3263_v35, %v8104_v4  ;;  %v2828_v41 = vpop.f32.mrf.mxu0  ;;  %v8105_v34 = vld [vmem:[#allocation24_spill] sm:$0xff]  ;;  %v8108_v33 = vld [vmem:[#allocation22_spill] sm:$0xff] }
 0x3d9   : > { %v3013_v28 = vadd.f32 0.001, %v2947_v29  ;;  %v4033_v36 = vadd.f32 %v6877_v30, %v3571_v10  ;;  %v4034_v13 = vadd.f32 %v6877_v30, %v3572_v46  ;;  %v3207_v15 = vmul.f32 %v4768_v31, %v4721_v14  ;;  %v4769_v4 = vld [vmem:[%s6266_s8 + $0x188] sm:$0xff] }
 0x3da   : > { %v4031_v45 = vadd.f32 %v6863_v0, %v3569_v7  ;;  %v4032_v19 = vadd.f32 %v6863_v0, %v3570_v53  ;;  %v2831_v18 = vpop.f32.mrf.mxu0  ;;  %v3278_v38 = vpop.permute.xlu0 %3277  ;;  %v8107_v0 = vld [vmem:[#allocation20_spill] sm:$0xff] }
 0x3db   : > { %4728 = vrsqrt.f32 %v3013_v28  ;;  %4165 = vst [vmem:[%s7028_s11 + $0x80] sm:$0xff] %v4033_v36  ;;  %4166 = vst.msk [vmem:[%s7028_s11 + $0x88] sm:$0xff] %vm1044_vm2, %v4034_v13  ;;  %v2948_v42 = vmul.f32 0.0051020407, %v2831_v18  ;;  %v3575_v6 = vmul.f32 %v3278_v38, %v8105_v34  ;;  %v3576_v30 = vmul.f32 %v3278_v38, %v8106_v23  ;;  %v3273_v29 = vpop.permute.xlu1 %3272  ;;  %3467 = vperm.xlu0 %4620, %v3207_v15   ;;  %v8109_v15 = vld [vmem:[#allocation32_spill] sm:$0xff]  ;;  %v8112_v34 = vld [vmem:[#allocation30_spill] sm:$0xff] }
 0x3dc   : > { %v4723_v63 = vpop.eup %4722  ;;  %4163 = vst [vmem:[%s7028_s11 + $0x70] sm:$0xff] %v4031_v45  ;;  %4164 = vst.msk [vmem:[%s7028_s11 + $0x78] sm:$0xff] %vm1044_vm2, %v4032_v19  ;;  %v3573_v10 = vmul.f32 %v3273_v29, %v8107_v0  ;;  %v3574_v46 = vmul.f32 %v3273_v29, %v8108_v33  ;;  %v2833_v35 = vpop.f32.mrf.mxu0  ;;  %v8110_v19 = vld [vmem:[#allocation34_spill] sm:$0xff]  ;;  %v4770_v0 = vld [vmem:[%s6266_s8 + $0x190] sm:$0xff] }
 0x3dd   : > { %v3014_v14 = vadd.f32 0.001, %v2948_v42  ;;  %v4037_v59 = vadd.f32 %v6882_v51, %v3575_v6  ;;  %v4038_v7 = vadd.f32 %v6882_v51, %v3576_v30  ;;  %v3208_v53 = vmul.f32 %v4769_v4, %v4723_v63 }
 0x3de   : > { %v4035_v41 = vadd.f32 %v6869_v24, %v3573_v10  ;;  %v4036_v28 = vadd.f32 %v6869_v24, %v3574_v46  ;;  %v2836_v36 = vpop.f32.mrf.mxu0  ;;  %v3288_v13 = vpop.permute.xlu0 %3287  ;;  %v8111_v24 = vld [vmem:[#allocation28_spill] sm:$0xff] }
 0x3df   : > { %4730 = vrsqrt.f32 %v3014_v14  ;;  %4169 = vst [vmem:[%s7028_s11 + $0xa0] sm:$0xff] %v4037_v59  ;;  %4170 = vst.msk [vmem:[%s7028_s11 + $0xa8] sm:$0xff] %vm1044_vm2, %v4038_v7  ;;  %v2949_v31 = vmul.f32 0.0051020407, %v2836_v36  ;;  %v3579_v45 = vmul.f32 %v3288_v13, %v8109_v15  ;;  %v3580_v51 = vmul.f32 %v3288_v13, %v8110_v19  ;;  %v3283_v18 = vpop.permute.xlu1 %3282  ;;  %3472 = vperm.xlu1 %4621, %v3208_v53   ;;  %v8113_v7 = vld [vmem:[#allocation40_spill] sm:$0xff]  ;;  %v8114_v53 = vld [vmem:[#allocation41_spill] sm:$0xff] }
 0x3e0   : > { %v4725_v38 = vpop.eup %4724  ;;  %4167 = vst [vmem:[%s7028_s11 + $0x90] sm:$0xff] %v4035_v41  ;;  %4168 = vst.msk [vmem:[%s7028_s11 + $0x98] sm:$0xff] %vm1044_vm2, %v4036_v28  ;;  %v3577_v42 = vmul.f32 %v3283_v18, %v8111_v24  ;;  %v3578_v6 = vmul.f32 %v3283_v18, %v8112_v34  ;;  %v2838_v23 = vpop.f32.mrf.mxu0  ;;  %v8116_v13 = vld [vmem:[#allocation38_spill] sm:$0xff]  ;;  %v4771_v18 = vld [vmem:[%s6266_s8 + $0x198] sm:$0xff] }
 0x3e1   : > { %v3015_v30 = vadd.f32 0.001, %v2949_v31  ;;  %v4041_v29 = vadd.f32 %v6888_v39, %v3579_v45  ;;  %v4042_v63 = vadd.f32 %v6888_v39, %v3580_v51  ;;  %v3209_v10 = vmul.f32 %v4770_v0, %v4725_v38 }
 0x3e2   : > { %v4039_v33 = vadd.f32 %v6875_v26, %v3577_v42  ;;  %v4040_v46 = vadd.f32 %v6875_v26, %v3578_v6  ;;  %v2841_v35 = vpop.f32.mrf.mxu0  ;;  %v3298_v14 = vpop.permute.xlu0 %3297  ;;  %v8115_v26 = vld [vmem:[#allocation36_spill] sm:$0xff] }
 0x3e3   : > { %4732 = vrsqrt.f32 %v3015_v30  ;;  %4173 = vst [vmem:[%s7028_s11 + $0xc0] sm:$0xff] %v4041_v29  ;;  %4174 = vst.msk [vmem:[%s7028_s11 + $0xc8] sm:$0xff] %vm1044_vm2, %v4042_v63  ;;  %v2950_v59 = vmul.f32 0.0051020407, %v2841_v35  ;;  %v3583_v4 = vmul.f32 %v3298_v14, %v8113_v7  ;;  %v3584_v39 = vmul.f32 %v3298_v14, %v8114_v53  ;;  %v3293_v41 = vpop.permute.xlu1 %3292  ;;  %3477 = vperm.xlu0 %4620, %v3209_v10   ;;  %v8117_v30 = vld [vmem:[#allocation45_spill] sm:$0xff]  ;;  %v8118_v63 = vld [vmem:[#allocation46_spill] sm:$0xff] }
 0x3e4   : > { %v4727_v28 = vpop.eup %4726  ;;  %4171 = vst [vmem:[%s7028_s11 + $0xb0] sm:$0xff] %v4039_v33  ;;  %4172 = vst.msk [vmem:[%s7028_s11 + $0xb8] sm:$0xff] %vm1044_vm2, %v4040_v46  ;;  %v3581_v36 = vmul.f32 %v3293_v41, %v8115_v26  ;;  %v3582_v31 = vmul.f32 %v3293_v41, %v8116_v13  ;;  %v2843_v15 = vpop.f32.mrf.mxu0  ;;  %v8120_v46 = vld [vmem:[#allocation44_spill] sm:$0xff]  ;;  %v4772_v53 = vld [vmem:[%s6266_s8 + $0x1a0] sm:$0xff] }
 0x3e5   : > { %v3016_v45 = vadd.f32 0.001, %v2950_v59  ;;  %v4045_v19 = vadd.f32 %v6894_v40, %v3583_v4  ;;  %v4046_v51 = vadd.f32 %v6894_v40, %v3584_v39  ;;  %v3210_v38 = vmul.f32 %v4771_v18, %v4727_v28 }
 0x3e6   : > { %v4043_v24 = vadd.f32 %v6880_v55, %v3581_v36  ;;  %v4044_v42 = vadd.f32 %v6880_v55, %v3582_v31  ;;  %v2846_v34 = vpop.f32.mrf.mxu0  ;;  %v3308_v6 = vpop.permute.xlu0 %3307  ;;  %v8119_v55 = vld [vmem:[#allocation43_spill] sm:$0xff]  ;;  %v8121_v31 = vld [vmem:[#allocation49_spill] sm:$0xff] }
 0x3e7   : > { %4734 = vrsqrt.f32 %v3016_v45  ;;  %4177 = vst [vmem:[%s7028_s11 + $0xe0] sm:$0xff] %v4045_v19  ;;  %4178 = vst.msk [vmem:[%s7028_s11 + $0xe8] sm:$0xff] %vm1044_vm2, %v4046_v51  ;;  %v2951_v23 = vmul.f32 0.0051020407, %v2846_v34  ;;  %v3587_v29 = vmul.f32 %v3308_v6, %v8117_v30  ;;  %v3588_v40 = vmul.f32 %v3308_v6, %v8118_v63  ;;  %v3303_v0 = vpop.permute.xlu1 %3302  ;;  %3482 = vperm.xlu1 %4621, %v3210_v38   ;;  %v8122_v45 = vld [vmem:[#allocation50_spill] sm:$0xff]  ;;  %v8124_v38 = vld [vmem:[#allocation48_spill] sm:$0xff] }
 0x3e8   : > { %v4729_v10 = vpop.eup %4728  ;;  %4175 = vst [vmem:[%s7028_s11 + $0xd0] sm:$0xff] %v4043_v24  ;;  %4176 = vst.msk [vmem:[%s7028_s11 + $0xd8] sm:$0xff] %vm1044_vm2, %v4044_v42  ;;  %v3585_v33 = vmul.f32 %v3303_v0, %v8119_v55  ;;  %v3586_v35 = vmul.f32 %v3303_v0, %v8120_v46  ;;  %v2848_v14 = vpop.f32.mrf.mxu0  ;;  %v4773_v30 = vld [vmem:[%s6266_s8 + $0x1a8] sm:$0xff] }
 0x3e9   : > { %v3017_v59 = vadd.f32 0.001, %v2951_v23  ;;  %v4049_v7 = vadd.f32 %v6900_v2, %v3587_v29  ;;  %v4050_v4 = vadd.f32 %v6900_v2, %v3588_v40  ;;  %v3211_v39 = vmul.f32 %v4772_v53, %v4729_v10 }
 0x3ea   : > { %v4047_v41 = vadd.f32 %v6886_v11, %v3585_v33  ;;  %v4048_v28 = vadd.f32 %v6886_v11, %v3586_v35  ;;  %v2851_v26 = vpop.f32.mrf.mxu0  ;;  %v3318_v36 = vpop.permute.xlu0 %3317  ;;  %v8123_v11 = vld [vmem:[#allocation47_spill] sm:$0xff]  ;;  %v8125_v33 = vld [vmem:[#allocation53_spill] sm:$0xff]  ;;  %v8126_v35 = vld [vmem:[#allocation54_spill] sm:$0xff] }
 0x3eb   : > { %4736 = vrsqrt.f32 %v3017_v59  ;;  %4181 = vst [vmem:[%s7028_s11 + $0x100] sm:$0xff] %v4049_v7  ;;  %4182 = vst.msk [vmem:[%s7028_s11 + $0x108] sm:$0xff] %vm1044_vm2, %v4050_v4  ;;  %v2952_v13 = vmul.f32 0.0051020407, %v2851_v26  ;;  %v3591_v15 = vmul.f32 %v3318_v36, %v8121_v31  ;;  %v3592_v2 = vmul.f32 %v3318_v36, %v8122_v45  ;;  %v3313_v19 = vpop.permute.xlu1 %3312  ;;  %3487 = vperm.xlu0 %4620, %v3211_v39   ;;  %v8128_v4 = vld [vmem:[#allocation52_spill] sm:$0xff] }
 0x3ec   : > { %v4731_v51 = vpop.eup %4730  ;;  %4179 = vst [vmem:[%s7028_s11 + $0xf0] sm:$0xff] %v4047_v41  ;;  %4180 = vst.msk [vmem:[%s7028_s11 + $0xf8] sm:$0xff] %vm1044_vm2, %v4048_v28  ;;  %v3589_v18 = vmul.f32 %v3313_v19, %v8123_v11  ;;  %v3590_v24 = vmul.f32 %v3313_v19, %v8124_v38  ;;  %v2853_v42 = vpop.f32.mrf.mxu0  ;;  %v4774_v36 = vld [vmem:[%s6266_s8 + $0x1b0] sm:$0xff] }
 0x3ed   : > { %v3018_v34 = vadd.f32 0.001, %v2952_v13  ;;  %v4053_v6 = vadd.f32 %v6906_v27, %v3591_v15  ;;  %v4054_v23 = vadd.f32 %v6906_v27, %v3592_v2  ;;  %v3212_v29 = vmul.f32 %v4773_v30, %v4731_v51  ;;  %v8129_v51 = vld [vmem:[#allocation57_spill] sm:$0xff] }
 0x3ee   : > { %v4051_v63 = vadd.f32 %v6892_v58, %v3589_v18  ;;  %v4052_v40 = vadd.f32 %v6892_v58, %v3590_v24  ;;  %v2856_v0 = vpop.f32.mrf.mxu0  ;;  %v3328_v10 = vpop.permute.xlu0 %3327  ;;  %v8127_v58 = vld [vmem:[#allocation51_spill] sm:$0xff]  ;;  %v8130_v18 = vld [vmem:[#allocation58_spill] sm:$0xff] }
 0x3ef   : > { %4738 = vrsqrt.f32 %v3018_v34  ;;  %4185 = vst [vmem:[%s7028_s11 + $0x120] sm:$0xff] %v4053_v6  ;;  %4186 = vst.msk [vmem:[%s7028_s11 + $0x128] sm:$0xff] %vm1044_vm2, %v4054_v23  ;;  %v2953_v55 = vmul.f32 0.0051020407, %v2856_v0  ;;  %v3595_v46 = vmul.f32 %v3328_v10, %v8125_v33  ;;  %v3596_v27 = vmul.f32 %v3328_v10, %v8126_v35  ;;  %v3323_v14 = vpop.permute.xlu1 %3322  ;;  %3492 = vperm.xlu1 %4621, %v3212_v29   ;;  %v8132_v34 = vld [vmem:[#allocation56_spill] sm:$0xff] }
 0x3f0   : > { %v4733_v59 = vpop.eup %4732  ;;  %4183 = vst [vmem:[%s7028_s11 + $0x110] sm:$0xff] %v4051_v63  ;;  %4184 = vst.msk [vmem:[%s7028_s11 + $0x118] sm:$0xff] %vm1044_vm2, %v4052_v40  ;;  %v3593_v7 = vmul.f32 %v3323_v14, %v8127_v58  ;;  %v3594_v53 = vmul.f32 %v3323_v14, %v8128_v4  ;;  %v2858_v39 = vpop.f32.mrf.mxu0  ;;  %v4775_v40 = vld [vmem:[%s6266_s8 + $0x1b8] sm:$0xff] }
 0x3f1   : > { %v3019_v41 = vadd.f32 0.001, %v2953_v55  ;;  %v4057_v28 = vadd.f32 %v6912_v17, %v3595_v46  ;;  %v4058_v26 = vadd.f32 %v6912_v17, %v3596_v27  ;;  %v3213_v13 = vmul.f32 %v4774_v36, %v4733_v59  ;;  %v8133_v27 = vld [vmem:[#allocation61_spill] sm:$0xff]  ;;  %v8134_v59 = vld [vmem:[#allocation62_spill] sm:$0xff] }
 0x3f2   : > { %v4055_v31 = vadd.f32 %v6898_v20, %v3593_v7  ;;  %v4056_v15 = vadd.f32 %v6898_v20, %v3594_v53  ;;  %v2861_v45 = vpop.f32.mrf.mxu0  ;;  %v3338_v2 = vpop.permute.xlu0 %3337  ;;  %v8131_v20 = vld [vmem:[#allocation55_spill] sm:$0xff]  ;;  %v8136_v53 = vld [vmem:[#allocation60_spill] sm:$0xff] }
 0x3f3   : > { %4740 = vrsqrt.f32 %v3019_v41  ;;  %4189 = vst [vmem:[%s7028_s11 + $0x140] sm:$0xff] %v4057_v28  ;;  %4190 = vst.msk [vmem:[%s7028_s11 + $0x148] sm:$0xff] %vm1044_vm2, %v4058_v26  ;;  %v2954_v19 = vmul.f32 0.0051020407, %v2861_v45  ;;  %v3599_v11 = vmul.f32 %v3338_v2, %v8129_v51  ;;  %v3600_v17 = vmul.f32 %v3338_v2, %v8130_v18  ;;  %v3333_v38 = vpop.permute.xlu1 %3332  ;;  %3497 = vperm.xlu0 %4620, %v3213_v13   ;;  %v4776_v13 = vld [vmem:[%s6266_s8 + $0x1c0] sm:$0xff] }
 0x3f4   : > { %v4735_v24 = vpop.eup %4734  ;;  %4187 = vst [vmem:[%s7028_s11 + $0x130] sm:$0xff] %v4055_v31  ;;  %4188 = vst.msk [vmem:[%s7028_s11 + $0x138] sm:$0xff] %vm1044_vm2, %v4056_v15  ;;  %v3597_v42 = vmul.f32 %v3333_v38, %v8131_v20  ;;  %v3598_v6 = vmul.f32 %v3333_v38, %v8132_v34  ;;  %v2863_v23 = vpop.f32.mrf.mxu0  ;;  %v4777_v20 = vld [vmem:[%s6266_s8 + $0x1c8] sm:$0xff] }
 0x3f5   : > { %v3020_v30 = vadd.f32 0.001, %v2954_v19  ;;  %v4061_v29 = vadd.f32 %v6918_v1, %v3599_v11  ;;  %v4062_v63 = vadd.f32 %v6918_v1, %v3600_v17  ;;  %v3214_v0 = vmul.f32 %v4775_v40, %v4735_v24  ;;  %v8138_v17 = vld [vmem:[#allocation64_spill] sm:$0xff] }
 0x3f6   : > { %v4059_v10 = vadd.f32 %v6904_v32, %v3597_v42  ;;  %v4060_v55 = vadd.f32 %v6904_v32, %v3598_v6  ;;  %v2866_v33 = vpop.f32.mrf.mxu0  ;;  %v3348_v46 = vpop.permute.xlu0 %3347  ;;  %v8135_v32 = vld [vmem:[#allocation59_spill] sm:$0xff] }
 0x3f7   : > { %4742 = vrsqrt.f32 %v3020_v30  ;;  %4193 = vst [vmem:[%s7028_s11 + $0x160] sm:$0xff] %v4061_v29  ;;  %4194 = vst.msk [vmem:[%s7028_s11 + $0x168] sm:$0xff] %vm1044_vm2, %v4062_v63  ;;  %v2955_v35 = vmul.f32 0.0051020407, %v2866_v33  ;;  %v3603_v14 = vmul.f32 %v3348_v46, %v8133_v27  ;;  %v3604_v1 = vmul.f32 %v3348_v46, %v8134_v59  ;;  %v3343_v58 = vpop.permute.xlu1 %3342  ;;  %3502 = vperm.xlu1 %4621, %v3214_v0   ;;  %v8139_v63 = vld [vmem:[#allocation65_spill] sm:$0xff]  ;;  %v8140_v0 = vld [vmem:[#allocation66_spill] sm:$0xff] }
 0x3f8   : > { %v4737_v7 = vpop.eup %4736  ;;  %4191 = vst [vmem:[%s7028_s11 + $0x150] sm:$0xff] %v4059_v10  ;;  %4192 = vst.msk [vmem:[%s7028_s11 + $0x158] sm:$0xff] %vm1044_vm2, %v4060_v55  ;;  %v3601_v4 = vmul.f32 %v3343_v58, %v8135_v32  ;;  %v3602_v39 = vmul.f32 %v3343_v58, %v8136_v53  ;;  %v2868_v41 = vpop.f32.mrf.mxu0  ;;  %v4778_v27 = vld [vmem:[%s6266_s8 + $0x1d0] sm:$0xff] }
 0x3f9   : > { %v3021_v28 = vadd.f32 0.001, %v2955_v35  ;;  %v4065_v26 = vadd.f32 %v6924_v5, %v3603_v14  ;;  %v4066_v36 = vadd.f32 %v6924_v5, %v3604_v1  ;;  %v3215_v31 = vmul.f32 %v4776_v13, %v4737_v7  ;;  %v8137_v5 = vld [vmem:[#allocation63_spill] sm:$0xff] }
 0x3fa   : > { %v4063_v15 = vadd.f32 %v6910_v25, %v3601_v4  ;;  %v4064_v45 = vadd.f32 %v6910_v25, %v3602_v39  ;;  %v2871_v2 = vpop.f32.mrf.mxu0  ;;  %v8141_v7 = vld [vmem:[#allocation67_spill] sm:$0xff]  ;;  %v8142_v4 = vld [vmem:[#allocation68_spill] sm:$0xff] }
 0x3fb   : > { %4744 = vrsqrt.f32 %v3021_v28  ;;  %4197 = vst [vmem:[%s7028_s11 + $0x180] sm:$0xff] %v4065_v26  ;;  %4198 = vst.msk [vmem:[%s7028_s11 + $0x188] sm:$0xff] %vm1044_vm2, %v4066_v36  ;;  %v2956_v19 = vmul.f32 0.0051020407, %v2871_v2  ;;  %v3353_v51 = vpop.permute.xlu1 %3352  ;;  %3507 = vperm.xlu0 %4620, %v3215_v31   ;;  %v4779_v36 = vld [vmem:[%s6266_s8 + $0x1d8] sm:$0xff] }
 0x3fc   : > { %v4739_v11 = vpop.eup %4738  ;;  %4195 = vst [vmem:[%s7028_s11 + $0x170] sm:$0xff] %v4063_v15  ;;  %4196 = vst.msk [vmem:[%s7028_s11 + $0x178] sm:$0xff] %vm1044_vm2, %v4064_v45  ;;  %v3605_v18 = vmul.f32 %v3353_v51, %v8137_v5  ;;  %v3606_v38 = vmul.f32 %v3353_v51, %v8138_v17  ;;  %v2873_v24 = vpop.f32.mrf.mxu0  ;;  %v8143_v2 = vld [vmem:[#allocation69_spill] sm:$0xff]  ;;  %v8144_v51 = vld [vmem:[#allocation70_spill] sm:$0xff] }
 0x3fd   : > { %v3022_v25 = vadd.f32 0.001, %v2956_v19  ;;  %v3216_v42 = vmul.f32 %v4777_v20, %v4739_v11  ;;  %v4780_v24 = vld [vmem:[%s6266_s8 + $0x1e0] sm:$0xff] }
 0x3fe   : > { %v4067_v34 = vadd.f32 %v6916_v8, %v3605_v18  ;;  %v4068_v6 = vadd.f32 %v6916_v8, %v3606_v38  ;;  %v2876_v23 = vpop.f32.mrf.mxu0  ;;  %v3358_v30 = vpop.permute.xlu0 %3357 }
 0x3ff   : > { %4746 = vrsqrt.f32 %v3022_v25  ;;  %v2957_v29 = vmul.f32 0.0051020407, %v2876_v23  ;;  %v3607_v40 = vmul.f32 %v3358_v30, %v8139_v63  ;;  %v3608_v10 = vmul.f32 %v3358_v30, %v8140_v0  ;;  %3512 = vperm.xlu1 %4621, %v3216_v42   ;;  %v8145_v42 = vld [vmem:[#allocation71_spill] sm:$0xff] }
 0x400   : > { %v4741_v55 = vpop.eup %4740  ;;  %4199 = vst [vmem:[%s7028_s11 + $0x190] sm:$0xff] %v4067_v34  ;;  %4200 = vst.msk [vmem:[%s7028_s11 + $0x198] sm:$0xff] %vm1044_vm2, %v4068_v6  ;;  %v2878_v33 = vpop.f32.mrf.mxu0  ;;  %v8146_v6 = vld [vmem:[#allocation72_spill] sm:$0xff] }
 0x401   : > { %v3023_v46 = vadd.f32 0.001, %v2957_v29  ;;  %v4069_v35 = vadd.f32 %v6930_v21, %v3607_v40  ;;  %v4070_v8 = vadd.f32 %v6930_v21, %v3608_v10  ;;  %v3217_v14 = vmul.f32 %v4778_v27, %v4741_v55  ;;  %v4781_v10 = vld [vmem:[%s6266_s8 + $0x1e8] sm:$0xff]  ;;  %v8148_v27 = vld [vmem:[#allocation74_spill] sm:$0xff] }
 0x402   : > { %v2881_v59 = vpop.f32.mrf.mxu0  ;;  %v3363_v1 = vpop.permute.xlu1 %3362 }
 0x403   : > { %4748 = vrsqrt.f32 %v3023_v46  ;;  %4201 = vst [vmem:[%s7028_s11 + $0x1a0] sm:$0xff] %v4069_v35  ;;  %4202 = vst.msk [vmem:[%s7028_s11 + $0x1a8] sm:$0xff] %vm1044_vm2, %v4070_v8  ;;  %v2958_v58 = vmul.f32 0.0051020407, %v2881_v59  ;;  %v3609_v32 = vmul.f32 %v3363_v1, %v8141_v7  ;;  %v3610_v53 = vmul.f32 %v3363_v1, %v8142_v4  ;;  %3517 = vperm.xlu0 %4620, %v3217_v14   ;;  %v8147_v35 = vld [vmem:[#allocation73_spill] sm:$0xff]  ;;  %v8149_v4 = vld [vmem:[#allocation95_spill] sm:$0xff] }
 0x404   : > { %v4743_v39 = vpop.eup %4742  ;;  %v2883_v41 = vpop.f32.mrf.mxu0 }
 0x405   : > { %v3024_v21 = vadd.f32 0.001, %v2958_v58  ;;  %v4071_v28 = vadd.f32 %v6922_v49, %v3609_v32  ;;  %v4072_v26 = vadd.f32 %v6922_v49, %v3610_v53  ;;  %v3218_v13 = vmul.f32 %v4779_v36, %v4743_v39  ;;  %v4782_v58 = vld [vmem:[%s6266_s8 + $0x1f0] sm:$0xff]  ;;  %v8150_v39 = vld [vmem:[#allocation75_spill] sm:$0xff] }
 0x406   : > { %v2886_v31 = vpop.f32.mrf.mxu0  ;;  %v3368_v15 = vpop.permute.xlu0 %3367 }
 0x407   : > { %4750 = vrsqrt.f32 %v3024_v21  ;;  %4203 = vst [vmem:[%s7028_s11 + $0x1b0] sm:$0xff] %v4071_v28  ;;  %4204 = vst.msk [vmem:[%s7028_s11 + $0x1b8] sm:$0xff] %vm1044_vm2, %v4072_v26  ;;  %v2959_v45 = vmul.f32 0.0051020407, %v2886_v31  ;;  %v3611_v19 = vmul.f32 %v3368_v15, %v8143_v2  ;;  %v3612_v11 = vmul.f32 %v3368_v15, %v8144_v51  ;;  %3522 = vperm.xlu1 %4621, %v3218_v13   ;;  %v3157_v31 = vld [vmem:[%s6266_s8 + $0x200] sm:$0xff]  ;;  %v8151_v15 = vld [vmem:[#allocation96_spill] sm:$0xff] }
 0x408   : > { %v4745_v5 = vpop.eup %4744  ;;  %v2888_v18 = vpop.f32.mrf.mxu0  ;;  %v8152_v2 = vld [vmem:[#allocation76_spill] sm:$0xff] }
 0x409   : > { %v3025_v49 = vadd.f32 0.001, %v2959_v45  ;;  %v4073_v17 = vadd.f32 %v6935_v54, %v3611_v19  ;;  %v4074_v38 = vadd.f32 %v6935_v54, %v3612_v11  ;;  %v3219_v25 = vmul.f32 %v4780_v24, %v4745_v5 }
 0x40a   : > { %v3373_v20 = vpop.permute.xlu1 %3372 }
 0x40b   : > { %4752 = vrsqrt.f32 %v3025_v49  ;;  %4205 = vst [vmem:[%s7028_s11 + $0x1c0] sm:$0xff] %v4073_v17  ;;  %4206 = vst.msk [vmem:[%s7028_s11 + $0x1c8] sm:$0xff] %vm1044_vm2, %v4074_v38  ;;  %v3613_v34 = vmul.f32 %v3373_v20, %v8145_v42  ;;  %v3614_v23 = vmul.f32 %v3373_v20, %v8146_v6  ;;  %v2891_v30 = vpop.f32.mrf.mxu1  ;;  %3527 = vperm.xlu0 %4620, %v3219_v25   ;;  %v8153_v49 = vld [vmem:[#allocation97_spill] sm:$0xff]  ;;  %v3158_v25 = vld [vmem:[%s6266_s8 + $0x208] sm:$0xff] }
 0x40c   : > { %v4747_v29 = vpop.eup %4746  ;;  %v2960_v63 = vmul.f32 0.0051020407, %v2891_v30  ;;  %v8154_v38 = vld [vmem:[#allocation77_spill] sm:$0xff] }
 0x40d   : > { %v4075_v54 = vadd.f32 %v6928_v43, %v3613_v34  ;;  %v4076_v40 = vadd.f32 %v6928_v43, %v3614_v23  ;;  %v2893_v0 = vpop.f32.mrf.mxu1  ;;  %v3220_v55 = vmul.f32 %v4781_v10, %v4747_v29  ;;  %v8155_v23 = vld [vmem:[#allocation98_spill] sm:$0xff]  ;;  %v8158_v10 = vld [vmem:[#allocation99_spill] sm:$0xff] }
 0x40e   : > { %v3026_v33 = vadd.f32 0.001, %v2960_v63  ;;  %v3378_v46 = vpop.permute.xlu0 %3377  ;;  %v8156_v29 = vld [vmem:[#allocation2_spill] sm:$0xff] }
 0x40f   : > { %4207 = vst [vmem:[%s7028_s11 + $0x1d0] sm:$0xff] %v4075_v54  ;;  %4208 = vst.msk [vmem:[%s7028_s11 + $0x1d8] sm:$0xff] %vm1044_vm2, %v4076_v40  ;;  %v3615_v8 = vmul.f32 %v3378_v46, %v8147_v35  ;;  %v3616_v14 = vmul.f32 %v3378_v46, %v8148_v27  ;;  %3532 = vperm.xlu1 %4621, %v3220_v55   ;;  %v8157_v54 = vmov 1  }
 0x410   : > { %v4749_v59 = vpop.eup %4748  ;;  %4754 = vrsqrt.f32 %v3026_v33  ;;  %v8159_v33 = vld [vmem:[#allocation3_spill] sm:$0xff] }
 0x411   : > { %v4077_v43 = vadd.f32 %v6940_v22, %v3615_v8  ;;  %v4078_v1 = vadd.f32 %v6940_v22, %v3616_v14  ;;  %v3221_v7 = vmul.f32 %v4782_v58, %v4749_v59  ;;  %v4783_v22 = vld [vmem:[%s6266_s8 + $0x1f8] sm:$0xff]  ;;  %v8161_v59 = vld [vmem:[#allocation4_spill] sm:$0xff] }
 0x412   : > { %v3383_v32 = vpop.permute.xlu1 %3382 }
 0x413   : > { %4209 = vst [vmem:[%s7028_s11 + $0x1e0] sm:$0xff] %v4077_v43  ;;  %4210 = vst.msk [vmem:[%s7028_s11 + $0x1e8] sm:$0xff] %vm1044_vm2, %v4078_v1  ;;  %v3617_v53 = vmul.f32 %v3383_v32, %v8149_v4  ;;  %v3618_v41 = vmul.f32 %v3383_v32, %v8150_v39  ;;  %3537 = vperm.xlu0 %4620, %v3221_v7   ;;  %v8163_v4 = vld [vmem:[#allocation5_spill] sm:$0xff] }
 0x414   : > { %v4751_v21 = vpop.eup %4750 }
 0x415   : > { %v4079_v28 = vadd.f32 %v6933_v44, %v3617_v53  ;;  %v4080_v26 = vadd.f32 %v6933_v44, %v3618_v41  ;;  %v3222_v36 = vmul.f32 %v4783_v22, %v4751_v21 }
 0x416   : > { %v3388_v13 = vpop.permute.xlu0 %3387 }
 0x417   : > { %4211 = vst [vmem:[%s7028_s11 + $0x1f0] sm:$0xff] %v4079_v28  ;;  %4212 = vst.msk [vmem:[%s7028_s11 + $0x1f8] sm:$0xff] %vm1044_vm2, %v4080_v26  ;;  %v3619_v45 = vmul.f32 %v3388_v13, %v8151_v15  ;;  %v3620_v19 = vmul.f32 %v3388_v13, %v8152_v2  ;;  %3542 = vperm.xlu1 %4621, %v3222_v36   ;;  %v8165_v26 = vld [vmem:[#allocation7_spill] sm:$0xff] }
 0x418   : > { %v4753_v51 = vpop.eup %4752 }
 0x419   : > { %v4081_v11 = vadd.f32 %v6945_v9, %v3619_v45  ;;  %v4082_v44 = vadd.f32 %v6945_v9, %v3620_v19  ;;  %v3223_v5 = vmul.f32 %v4753_v51, %v3157_v31  ;;  %v8167_v45 = vld [vmem:[#allocation10_spill] sm:$0xff] }
 0x41a   : > { %v3393_v18 = vpop.permute.xlu1 %3392 }
 0x41b   : > { %4213 = vst [vmem:[%s7028_s11 + $0x200] sm:$0xff] %v4081_v11  ;;  %4214 = vst.msk [vmem:[%s7028_s11 + $0x208] sm:$0xff] %vm1044_vm2, %v4082_v44  ;;  %v3621_v17 = vmul.f32 %v3393_v18, %v8153_v49  ;;  %v3622_v24 = vmul.f32 %v3393_v18, %v8154_v38  ;;  %3547 = vperm.xlu0 %4620, %v3223_v5   ;;  %v8169_v5 = vld [vmem:[#allocation13_spill] sm:$0xff] }
 0x41d   : > { %v4755_v20 = vpop.eup %4754  ;;  %v4083_v42 = vadd.f32 %v6938_v57, %v3621_v17  ;;  %v4084_v34 = vadd.f32 %v6938_v57, %v3622_v24 }
 0x41e   : > { %v3398_v6 = vpop.permute.xlu0 %3397  ;;  %v3224_v9 = vmul.f32 %v4755_v20, %v3158_v25 }
 0x41f   : > { %4215 = vst [vmem:[%s7028_s11 + $0x210] sm:$0xff] %v4083_v42  ;;  %4216 = vst.msk [vmem:[%s7028_s11 + $0x218] sm:$0xff] %vm1044_vm2, %v4084_v34  ;;  %v3623_v30 = vmul.f32 %v3398_v6, %v8155_v23  ;;  %v3624_v63 = vmul.f32 %v3398_v6, %v8156_v29  ;;  %4623 = vset.pattern.permute.xlu0 %v8157_v54  ;;  %v8173_v23 = vld [vmem:[#allocation19_spill] sm:$0xff] }
 0x420   : > { %3552 = vperm.xlu1 %4621, %v3224_v9   ;;  %4014 = vperm.xlu0 %4623, %v3158_v25   ;;  %v8171_v25 = vld [vmem:[#allocation16_spill] sm:$0xff] }
 0x421   : > { %v4085_v40 = vadd.f32 %v6950_v50, %v3623_v30  ;;  %v4086_v0 = vadd.f32 %v6950_v50, %v3624_v63  ;;  %v8160_v50 = vld [vmem:[#allocation100_spill] sm:$0xff] }
 0x422   : > { %v3403_v57 = vpop.permute.xlu1 %3402 }
 0x423   : > { %4217 = vst [vmem:[%s7028_s11 + $0x220] sm:$0xff] %v4085_v40  ;;  %4218 = vst.msk [vmem:[%s7028_s11 + $0x228] sm:$0xff] %vm1044_vm2, %v4086_v0  ;;  %v3625_v55 = vmul.f32 %v3403_v57, %v8158_v10  ;;  %v3626_v46 = vmul.f32 %v3403_v57, %v8159_v33  ;;  %v8175_v0 = vld [vmem:[#allocation23_spill] sm:$0xff] }
 0x424   : > { %4622 = vset.pattern.permute.xlu1 %v8157_v54 }
 0x425   : > { %v4087_v35 = vadd.f32 %v6943_v61, %v3625_v55  ;;  %v4088_v8 = vadd.f32 %v6943_v61, %v3626_v46  ;;  %4009 = vperm.xlu1 %4622, %v3157_v31   ;;  %v8162_v61 = vld [vmem:[#allocation101_spill] sm:$0xff] }
 0x426   : > { %v3408_v27 = vpop.permute.xlu0 %3407 }
 0x427   : > { %4219 = vst [vmem:[%s7028_s11 + $0x230] sm:$0xff] %v4087_v35  ;;  %4220 = vst.msk [vmem:[%s7028_s11 + $0x238] sm:$0xff] %vm1044_vm2, %v4088_v8  ;;  %v3627_v14 = vmul.f32 %v3408_v27, %v8160_v50  ;;  %v3628_v43 = vmul.f32 %v3408_v27, %v8161_v59  ;;  %v8177_v35 = vld [vmem:[#allocation27_spill] sm:$0xff] }
 0x429   : > { %v4089_v1 = vadd.f32 %v6955_v60, %v3627_v14  ;;  %v4090_v58 = vadd.f32 %v6955_v60, %v3628_v43  ;;  %v8164_v60 = vld [vmem:[#allocation102_spill] sm:$0xff]  ;;  %v8179_v43 = vld [vmem:[#allocation31_spill] sm:$0xff] }
 0x42a   : > { %v3413_v7 = vpop.permute.xlu1 %3412 }
 0x42b   : > { %4221 = vst [vmem:[%s7028_s11 + $0x240] sm:$0xff] %v4089_v1  ;;  %4222 = vst.msk [vmem:[%s7028_s11 + $0x248] sm:$0xff] %vm1044_vm2, %v4090_v58  ;;  %v3629_v32 = vmul.f32 %v3413_v7, %v8162_v61  ;;  %v3630_v53 = vmul.f32 %v3413_v7, %v8163_v4  ;;  %v8181_v4 = vld [vmem:[#allocation35_spill] sm:$0xff] }
 0x42d   : > { %v4091_v39 = vadd.f32 %v6948_v16, %v3629_v32  ;;  %v4092_v41 = vadd.f32 %v6948_v16, %v3630_v53  ;;  %v8166_v16 = vld [vmem:[#allocation103_spill] sm:$0xff] }
 0x42e   : > { %v3418_v21 = vpop.permute.xlu0 %3417 }
 0x42f   : > { %4223 = vst [vmem:[%s7028_s11 + $0x250] sm:$0xff] %v4091_v39  ;;  %4224 = vst.msk [vmem:[%s7028_s11 + $0x258] sm:$0xff] %vm1044_vm2, %v4092_v41  ;;  %v3631_v28 = vmul.f32 %v3418_v21, %v8164_v60  ;;  %v3632_v22 = vmul.f32 %v3418_v21, %v8165_v26  ;;  %v8182_v39 = vld [vmem:[#allocation110_spill] sm:$0xff]  ;;  %v8184_v26 = vld [vmem:[#allocation39_spill] sm:$0xff] }
 0x431   : > { %v4093_v36 = vadd.f32 %v6960_v37, %v3631_v28  ;;  %v4094_v13 = vadd.f32 %v6960_v37, %v3632_v22  ;;  %v8168_v37 = vld [vmem:[#allocation104_spill] sm:$0xff] }
 0x432   : > { %v3423_v31 = vpop.permute.xlu1 %3422 }
 0x433   : > { %4225 = vst [vmem:[%s7028_s11 + $0x260] sm:$0xff] %v4093_v36  ;;  %4226 = vst.msk [vmem:[%s7028_s11 + $0x268] sm:$0xff] %vm1044_vm2, %v4094_v13  ;;  %v3633_v15 = vmul.f32 %v3423_v31, %v8166_v16  ;;  %v3634_v2 = vmul.f32 %v3423_v31, %v8167_v45  ;;  %v8185_v36 = vld [vmem:[#allocation107_spill] sm:$0xff] }
 0x435   : > { %v4095_v19 = vadd.f32 %v6953_v47, %v3633_v15  ;;  %v4096_v51 = vadd.f32 %v6953_v47, %v3634_v2  ;;  %v8170_v47 = vld [vmem:[#allocation105_spill] sm:$0xff]  ;;  %v8187_v2 = vld [vmem:[#allocation42_spill] sm:$0xff] }
 0x436   : > { %v3428_v11 = vpop.permute.xlu0 %3427  ;;  %v8186_v15 = vld [vmem:[#allocation109_spill] sm:$0xff] }
 0x437   : > { %4227 = vst [vmem:[%s7028_s11 + $0x270] sm:$0xff] %v4095_v19  ;;  %4228 = vst.msk [vmem:[%s7028_s11 + $0x278] sm:$0xff] %vm1044_vm2, %v4096_v51  ;;  %v3635_v44 = vmul.f32 %v3428_v11, %v8168_v37  ;;  %v3636_v18 = vmul.f32 %v3428_v11, %v8169_v5  ;;  %v8188_v51 = vld [vmem:[#allocation139_spill] sm:$0xff] }
 0x438   : > { %v8189_v5 = vld [vmem:[#allocation111_spill] sm:$0xff] }
 0x439   : > { %v4097_v49 = vadd.f32 %v6965_v48, %v3635_v44  ;;  %v4098_v17 = vadd.f32 %v6965_v48, %v3636_v18  ;;  %v8172_v48 = vld [vmem:[#allocation106_spill] sm:$0xff] }
 0x43a   : > { %v3433_v38 = vpop.permute.xlu1 %3432 }
 0x43b   : > { %4229 = vst [vmem:[%s7028_s11 + $0x280] sm:$0xff] %v4097_v49  ;;  %4230 = vst.msk [vmem:[%s7028_s11 + $0x288] sm:$0xff] %vm1044_vm2, %v4098_v17  ;;  %v3637_v24 = vmul.f32 %v3433_v38, %v8170_v47  ;;  %v3638_v20 = vmul.f32 %v3433_v38, %v8171_v25  ;;  %v8190_v49 = vld [vmem:[#allocation112_spill] sm:$0xff] }
 0x43c   : > { %v8191_v38 = vld [vmem:[#allocation108_spill] sm:$0xff] }
 0x43d   : > { %v4099_v42 = vadd.f32 %v6958_v62, %v3637_v24  ;;  %v4100_v34 = vadd.f32 %v6958_v62, %v3638_v20  ;;  %v8174_v62 = vld [vmem:[#allocation21_spill] sm:$0xff] }
 0x43e   : > { %v3438_v6 = vpop.permute.xlu0 %3437  ;;  %v8192_v20 = vld [vmem:[#allocation113_spill] sm:$0xff] }
 0x43f   : > { %4231 = vst [vmem:[%s7028_s11 + $0x290] sm:$0xff] %v4099_v42  ;;  %4232 = vst.msk [vmem:[%s7028_s11 + $0x298] sm:$0xff] %vm1044_vm2, %v4100_v34  ;;  %v3639_v9 = vmul.f32 %v3438_v6, %v8172_v48  ;;  %v3640_v30 = vmul.f32 %v3438_v6, %v8173_v23  ;;  %v8193_v34 = vld [vmem:[#allocation114_spill] sm:$0xff]  ;;  %v8194_v48 = vld [vmem:[#allocation141_spill] sm:$0xff] }
 0x441   : > { %v4101_v29 = vadd.f32 %v6970_v12, %v3639_v9  ;;  %v4102_v63 = vadd.f32 %v6970_v12, %v3640_v30  ;;  %v8176_v12 = vld [vmem:[#allocation25_spill] sm:$0xff] }
 0x442   : > { %v3443_v54 = vpop.permute.xlu1 %3442 }
 0x443   : > { %4233 = vst [vmem:[%s7028_s11 + $0x2a0] sm:$0xff] %v4101_v29  ;;  %4234 = vst.msk [vmem:[%s7028_s11 + $0x2a8] sm:$0xff] %vm1044_vm2, %v4102_v63  ;;  %v3641_v40 = vmul.f32 %v3443_v54, %v8174_v62  ;;  %v3642_v57 = vmul.f32 %v3443_v54, %v8175_v0  ;;  %v8195_v29 = vld [vmem:[#allocation115_spill] sm:$0xff]  ;;  %v8196_v54 = vld [vmem:[#allocation116_spill] sm:$0xff] }
 0x445   : > { %v4103_v10 = vadd.f32 %v6963_v56, %v3641_v40  ;;  %v4104_v55 = vadd.f32 %v6963_v56, %v3642_v57  ;;  %v8178_v56 = vld [vmem:[#allocation29_spill] sm:$0xff]  ;;  %v8197_v40 = vld [vmem:[#allocation138_spill] sm:$0xff] }
 0x446   : > { %v3448_v33 = vpop.permute.xlu0 %3447 }
 0x447   : > { %4235 = vst [vmem:[%s7028_s11 + $0x2b0] sm:$0xff] %v4103_v10  ;;  %4236 = vst.msk [vmem:[%s7028_s11 + $0x2b8] sm:$0xff] %vm1044_vm2, %v4104_v55  ;;  %v3643_v46 = vmul.f32 %v3448_v33, %v8176_v12  ;;  %v3644_v8 = vmul.f32 %v3448_v33, %v8177_v35  ;;  %v8198_v55 = vld [vmem:[#allocation117_spill] sm:$0xff]  ;;  %v8199_v12 = vld [vmem:[#allocation118_spill] sm:$0xff] }
 0x448   : > { %v8200_v35 = vld [vmem:[#allocation143_spill] sm:$0xff] }
 0x449   : > { %v4105_v27 = vadd.f32 %v6975_v3, %v3643_v46  ;;  %v4106_v50 = vadd.f32 %v6975_v3, %v3644_v8  ;;  %v8180_v3 = vld [vmem:[#allocation33_spill] sm:$0xff] }
 0x44a   : > { %v3453_v14 = vpop.permute.xlu1 %3452 }
 0x44b   : > { %4237 = vst [vmem:[%s7028_s11 + $0x2c0] sm:$0xff] %v4105_v27  ;;  %4238 = vst.msk [vmem:[%s7028_s11 + $0x2c8] sm:$0xff] %vm1044_vm2, %v4106_v50  ;;  %v3645_v59 = vmul.f32 %v3453_v14, %v8178_v56  ;;  %v3646_v1 = vmul.f32 %v3453_v14, %v8179_v43  ;;  %v8201_v14 = vld [vmem:[#allocation119_spill] sm:$0xff] }
 0x44d   : > { %v4107_v58 = vadd.f32 %v6968_v52, %v3645_v59  ;;  %v4108_v7 = vadd.f32 %v6968_v52, %v3646_v1  ;;  %v8183_v52 = vld [vmem:[#allocation37_spill] sm:$0xff]  ;;  %v8202_v59 = vld [vmem:[#allocation120_spill] sm:$0xff] }
 0x44e   : > { %v3458_v61 = vpop.permute.xlu0 %3457  ;;  %v8203_v1 = vld [vmem:[#allocation140_spill] sm:$0xff] }
 0x44f   : > { %4239 = vst [vmem:[%s7028_s11 + $0x2d0] sm:$0xff] %v4107_v58  ;;  %4240 = vst.msk [vmem:[%s7028_s11 + $0x2d8] sm:$0xff] %vm1044_vm2, %v4108_v7  ;;  %v3647_v32 = vmul.f32 %v3458_v61, %v8180_v3  ;;  %v3648_v53 = vmul.f32 %v3458_v61, %v8181_v4  ;;  %v8204_v3 = vld [vmem:[#allocation122_spill] sm:$0xff]  ;;  %v8205_v4 = vld [vmem:[#allocation123_spill] sm:$0xff] }
 0x451   : > { %v4109_v41 = vadd.f32 %v8182_v39, %v3647_v32  ;;  %v4110_v21 = vadd.f32 %v8182_v39, %v3648_v53  ;;  %v8206_v39 = vld [vmem:[#allocation144_spill] sm:$0xff] }
 0x452   : > { %v3463_v60 = vpop.permute.xlu1 %3462 }
 0x453   : > { %4241 = vst [vmem:[%s7028_s11 + $0x2e0] sm:$0xff] %v4109_v41  ;;  %4242 = vst.msk [vmem:[%s7028_s11 + $0x2e8] sm:$0xff] %vm1044_vm2, %v4110_v21  ;;  %v3649_v28 = vmul.f32 %v3463_v60, %v8183_v52  ;;  %v3650_v22 = vmul.f32 %v3463_v60, %v8184_v26  ;;  %v8207_v52 = vld [vmem:[#allocation124_spill] sm:$0xff]  ;;  %v8208_v26 = vld [vmem:[#allocation125_spill] sm:$0xff] }
 0x455   : > { %v4111_v13 = vadd.f32 %v8185_v36, %v3649_v28  ;;  %v4112_v31 = vadd.f32 %v8185_v36, %v3650_v22  ;;  %v8209_v36 = vld [vmem:[#allocation142_spill] sm:$0xff] }
 0x456   : > { %v3468_v16 = vpop.permute.xlu0 %3467 }
 0x457   : > { %4243 = vst [vmem:[%s7028_s11 + $0x2f0] sm:$0xff] %v4111_v13  ;;  %4244 = vst.msk [vmem:[%s7028_s11 + $0x2f8] sm:$0xff] %vm1044_vm2, %v4112_v31  ;;  %v3651_v45 = vmul.f32 %v3468_v16, %v8186_v15  ;;  %v3652_v19 = vmul.f32 %v3468_v16, %v8187_v2  ;;  %v8210_v15 = vld [vmem:[#allocation126_spill] sm:$0xff]  ;;  %v8211_v2 = vld [vmem:[#allocation127_spill] sm:$0xff] }
 0x459   : > { %v4113_v11 = vadd.f32 %v8188_v51, %v3651_v45  ;;  %v4114_v37 = vadd.f32 %v8188_v51, %v3652_v19  ;;  %v8212_v51 = vld [vmem:[#allocation146_spill] sm:$0xff] }
 0x45a   : > { %v3473_v44 = vpop.permute.xlu1 %3472 }
 0x45b   : > { %4245 = vst [vmem:[%s7028_s11 + $0x300] sm:$0xff] %v4113_v11  ;;  %4246 = vst.msk [vmem:[%s7028_s11 + $0x308] sm:$0xff] %vm1044_vm2, %v4114_v37  ;;  %v3653_v18 = vmul.f32 %v3473_v44, %v8189_v5  ;;  %v3654_v17 = vmul.f32 %v3473_v44, %v8190_v49  ;;  %v8213_v5 = vld [vmem:[#allocation128_spill] sm:$0xff]  ;;  %v8214_v49 = vld [vmem:[#allocation129_spill] sm:$0xff] }
 0x45d   : > { %v4115_v47 = vadd.f32 %v8191_v38, %v3653_v18  ;;  %v4116_v24 = vadd.f32 %v8191_v38, %v3654_v17  ;;  %v8215_v38 = vld [vmem:[#allocation121_spill] sm:$0xff] }
 0x45e   : > { %v3478_v25 = vpop.permute.xlu0 %3477 }
 0x45f   : > { %4247 = vst [vmem:[%s7028_s11 + $0x310] sm:$0xff] %v4115_v47  ;;  %4248 = vst.msk [vmem:[%s7028_s11 + $0x318] sm:$0xff] %vm1044_vm2, %v4116_v24  ;;  %v3655_v42 = vmul.f32 %v3478_v25, %v8192_v20  ;;  %v3656_v6 = vmul.f32 %v3478_v25, %v8193_v34  ;;  %v8216_v20 = vld [vmem:[#allocation130_spill] sm:$0xff]  ;;  %v8217_v34 = vld [vmem:[#allocation131_spill] sm:$0xff] }
 0x461   : > { %v4117_v9 = vadd.f32 %v8194_v48, %v3655_v42  ;;  %v4118_v23 = vadd.f32 %v8194_v48, %v3656_v6  ;;  %v8218_v48 = vld [vmem:[#allocation148_spill] sm:$0xff] }
 0x462   : > { %v3483_v30 = vpop.permute.xlu1 %3482 }
 0x463   : > { %4249 = vst [vmem:[%s7028_s11 + $0x320] sm:$0xff] %v4117_v9  ;;  %4250 = vst.msk [vmem:[%s7028_s11 + $0x328] sm:$0xff] %vm1044_vm2, %v4118_v23  ;;  %v3657_v63 = vmul.f32 %v3483_v30, %v8195_v29  ;;  %v3658_v62 = vmul.f32 %v3483_v30, %v8196_v54  ;;  %v8219_v29 = vld [vmem:[#allocation132_spill] sm:$0xff]  ;;  %v8220_v54 = vld [vmem:[#allocation133_spill] sm:$0xff] }
 0x465   : > { %v4119_v0 = vadd.f32 %v8197_v40, %v3657_v63  ;;  %v4120_v57 = vadd.f32 %v8197_v40, %v3658_v62  ;;  %v8221_v40 = vld [vmem:[#allocation145_spill] sm:$0xff] }
 0x466   : > { %v3488_v10 = vpop.permute.xlu0 %3487 }
 0x467   : > { %4251 = vst [vmem:[%s7028_s11 + $0x330] sm:$0xff] %v4119_v0  ;;  %4252 = vst.msk [vmem:[%s7028_s11 + $0x338] sm:$0xff] %vm1044_vm2, %v4120_v57  ;;  %v3659_v33 = vmul.f32 %v3488_v10, %v8198_v55  ;;  %v3660_v46 = vmul.f32 %v3488_v10, %v8199_v12  ;;  %v8222_v55 = vld [vmem:[#allocation134_spill] sm:$0xff]  ;;  %v8223_v12 = vld [vmem:[#allocation135_spill] sm:$0xff] }
 0x469   : > { %v4121_v8 = vadd.f32 %v8200_v35, %v3659_v33  ;;  %v4122_v27 = vadd.f32 %v8200_v35, %v3660_v46  ;;  %v8224_v35 = vld [vmem:[#allocation150_spill] sm:$0xff] }
 0x46a   : > { %v3493_v50 = vpop.permute.xlu1 %3492 }
 0x46b   : > { %4253 = vst [vmem:[%s7028_s11 + $0x340] sm:$0xff] %v4121_v8  ;;  %4254 = vst.msk [vmem:[%s7028_s11 + $0x348] sm:$0xff] %vm1044_vm2, %v4122_v27  ;;  %v3661_v56 = vmul.f32 %v3493_v50, %v8201_v14  ;;  %v3662_v43 = vmul.f32 %v3493_v50, %v8202_v59  ;;  %v8225_v14 = vld [vmem:[#allocation136_spill] sm:$0xff]  ;;  %v8226_v59 = vld [vmem:[#allocation137_spill] sm:$0xff] }
 0x46d   : > { %v4123_v58 = vadd.f32 %v8203_v1, %v3661_v56  ;;  %v4124_v7 = vadd.f32 %v8203_v1, %v3662_v43  ;;  %v8227_v1 = vld [vmem:[#allocation147_spill] sm:$0xff] }
 0x46e   : > { %v3498_v61 = vpop.permute.xlu0 %3497 }
 0x46f   : > { %4255 = vst [vmem:[%s7028_s11 + $0x350] sm:$0xff] %v4123_v58  ;;  %4256 = vst.msk [vmem:[%s7028_s11 + $0x358] sm:$0xff] %vm1044_vm2, %v4124_v7  ;;  %v3663_v32 = vmul.f32 %v3498_v61, %v8204_v3  ;;  %v3664_v53 = vmul.f32 %v3498_v61, %v8205_v4  ;;  %v8228_v3 = vld [vmem:[#allocation78_spill] sm:$0xff]  ;;  %v8229_v4 = vld [vmem:[#allocation79_spill] sm:$0xff] }
 0x471   : > { %v4125_v41 = vadd.f32 %v8206_v39, %v3663_v32  ;;  %v4126_v21 = vadd.f32 %v8206_v39, %v3664_v53  ;;  %v8230_v39 = vld [vmem:[#allocation151_spill] sm:$0xff] }
 0x472   : > { %v3503_v60 = vpop.permute.xlu1 %3502 }
 0x473   : > { %4257 = vst [vmem:[%s7028_s11 + $0x360] sm:$0xff] %v4125_v41  ;;  %4258 = vst.msk [vmem:[%s7028_s11 + $0x368] sm:$0xff] %vm1044_vm2, %v4126_v21  ;;  %v3665_v28 = vmul.f32 %v3503_v60, %v8207_v52  ;;  %v3666_v22 = vmul.f32 %v3503_v60, %v8208_v26  ;;  %v8231_v52 = vld [vmem:[#allocation80_spill] sm:$0xff]  ;;  %v8232_v26 = vld [vmem:[#allocation81_spill] sm:$0xff] }
 0x475   : > { %v4127_v13 = vadd.f32 %v8209_v36, %v3665_v28  ;;  %v4128_v31 = vadd.f32 %v8209_v36, %v3666_v22  ;;  %v8233_v36 = vld [vmem:[#allocation149_spill] sm:$0xff] }
 0x476   : > { %v3508_v16 = vpop.permute.xlu0 %3507 }
 0x477   : > { %4259 = vst [vmem:[%s7028_s11 + $0x370] sm:$0xff] %v4127_v13  ;;  %4260 = vst.msk [vmem:[%s7028_s11 + $0x378] sm:$0xff] %vm1044_vm2, %v4128_v31  ;;  %v3667_v45 = vmul.f32 %v3508_v16, %v8210_v15  ;;  %v3668_v19 = vmul.f32 %v3508_v16, %v8211_v2  ;;  %v8234_v2 = vld [vmem:[#allocation84_spill] sm:$0xff] }
 0x479   : > { %v4129_v11 = vadd.f32 %v8212_v51, %v3667_v45  ;;  %v4130_v37 = vadd.f32 %v8212_v51, %v3668_v19  ;;  %v8235_v51 = vld [vmem:[#allocation85_spill] sm:$0xff] }
 0x47a   : > { %v3513_v44 = vpop.permute.xlu1 %3512 }
 0x47b   : > { %4261 = vst [vmem:[%s7028_s11 + $0x380] sm:$0xff] %v4129_v11  ;;  %4262 = vst.msk [vmem:[%s7028_s11 + $0x388] sm:$0xff] %vm1044_vm2, %v4130_v37  ;;  %v3669_v18 = vmul.f32 %v3513_v44, %v8213_v5  ;;  %v3670_v17 = vmul.f32 %v3513_v44, %v8214_v49  ;;  %v8236_v5 = vld [vmem:[#allocation82_spill] sm:$0xff]  ;;  %v8237_v49 = vld [vmem:[#allocation83_spill] sm:$0xff] }
 0x47d   : > { %v4131_v47 = vadd.f32 %v8215_v38, %v3669_v18  ;;  %v4132_v24 = vadd.f32 %v8215_v38, %v3670_v17 }
 0x47e   : > { %v3518_v25 = vpop.permute.xlu0 %3517 }
 0x47f   : > { %4263 = vst [vmem:[%s7028_s11 + $0x390] sm:$0xff] %v4131_v47  ;;  %4264 = vst.msk [vmem:[%s7028_s11 + $0x398] sm:$0xff] %vm1044_vm2, %v4132_v24  ;;  %v3671_v42 = vmul.f32 %v3518_v25, %v8216_v20  ;;  %v3672_v6 = vmul.f32 %v3518_v25, %v8217_v34 }
 0x481   : > { %v4133_v9 = vadd.f32 %v8218_v48, %v3671_v42  ;;  %v4134_v23 = vadd.f32 %v8218_v48, %v3672_v6 }
 0x482   : > { %v3523_v30 = vpop.permute.xlu1 %3522 }
 0x483   : > { %4265 = vst [vmem:[%s7028_s11 + $0x3a0] sm:$0xff] %v4133_v9  ;;  %4266 = vst.msk [vmem:[%s7028_s11 + $0x3a8] sm:$0xff] %vm1044_vm2, %v4134_v23  ;;  %v3673_v63 = vmul.f32 %v3523_v30, %v8219_v29  ;;  %v3674_v62 = vmul.f32 %v3523_v30, %v8220_v54 }
 0x485   : > { %v4135_v0 = vadd.f32 %v8221_v40, %v3673_v63  ;;  %v4136_v57 = vadd.f32 %v8221_v40, %v3674_v62 }
 0x486   : > { %v3528_v10 = vpop.permute.xlu0 %3527 }
 0x487   : > { %4267 = vst [vmem:[%s7028_s11 + $0x3b0] sm:$0xff] %v4135_v0  ;;  %4268 = vst.msk [vmem:[%s7028_s11 + $0x3b8] sm:$0xff] %vm1044_vm2, %v4136_v57  ;;  %v3675_v33 = vmul.f32 %v3528_v10, %v8222_v55  ;;  %v3676_v46 = vmul.f32 %v3528_v10, %v8223_v12 }
 0x489   : > { %v4137_v8 = vadd.f32 %v8224_v35, %v3675_v33  ;;  %v4138_v27 = vadd.f32 %v8224_v35, %v3676_v46 }
 0x48a   : > { %v3533_v50 = vpop.permute.xlu1 %3532 }
 0x48b   : > { %4269 = vst [vmem:[%s7028_s11 + $0x3c0] sm:$0xff] %v4137_v8  ;;  %4270 = vst.msk [vmem:[%s7028_s11 + $0x3c8] sm:$0xff] %vm1044_vm2, %v4138_v27  ;;  %v3677_v56 = vmul.f32 %v3533_v50, %v8225_v14  ;;  %v3678_v43 = vmul.f32 %v3533_v50, %v8226_v59 }
 0x48d   : > { %v4139_v58 = vadd.f32 %v8227_v1, %v3677_v56  ;;  %v4140_v7 = vadd.f32 %v8227_v1, %v3678_v43 }
 0x48e   : > { %v3538_v61 = vpop.permute.xlu0 %3537 }
 0x48f   : > { %4271 = vst [vmem:[%s7028_s11 + $0x3d0] sm:$0xff] %v4139_v58  ;;  %4272 = vst.msk [vmem:[%s7028_s11 + $0x3d8] sm:$0xff] %vm1044_vm2, %v4140_v7  ;;  %v3679_v32 = vmul.f32 %v3538_v61, %v8228_v3  ;;  %v3680_v53 = vmul.f32 %v3538_v61, %v8229_v4 }
 0x491   : > { %v4141_v41 = vadd.f32 %v8230_v39, %v3679_v32  ;;  %v4142_v21 = vadd.f32 %v8230_v39, %v3680_v53 }
 0x492   : > { %v3543_v60 = vpop.permute.xlu1 %3542 }
 0x493   : > { %4273 = vst [vmem:[%s7028_s11 + $0x3e0] sm:$0xff] %v4141_v41  ;;  %4274 = vst.msk [vmem:[%s7028_s11 + $0x3e8] sm:$0xff] %vm1044_vm2, %v4142_v21  ;;  %v3681_v28 = vmul.f32 %v3543_v60, %v8231_v52  ;;  %v3682_v22 = vmul.f32 %v3543_v60, %v8232_v26 }
 0x495   : > { %v4143_v13 = vadd.f32 %v8233_v36, %v3681_v28  ;;  %v4144_v31 = vadd.f32 %v8233_v36, %v3682_v22 }
 0x496   : > { %v3548_v16 = vpop.permute.xlu0 %3547 }
 0x497   : > { %4275 = vst [vmem:[%s7028_s11 + $0x3f0] sm:$0xff] %v4143_v13  ;;  %4276 = vst.msk [vmem:[%s7028_s11 + $0x3f8] sm:$0xff] %vm1044_vm2, %v4144_v31  ;;  %v3683_v18 = vmul.f32 %v3548_v16, %v8236_v5  ;;  %v3684_v17 = vmul.f32 %v3548_v16, %v8237_v49 }
 0x49b   : > { %v3553_v15 = vpop.permute.xlu1 %3552  ;;  %v4015_v45 = vpop.permute.xlu0 %4014 }
 0x49c   : > { %v3685_v19 = vmul.f32 %v3553_v15, %v8234_v2  ;;  %v3686_v11 = vmul.f32 %v3553_v15, %v8235_v51 }
 0x49e   : > { %v4147_v37 = vadd.f32 %v4015_v45, %v3685_v19  ;;  %v4148_v44 = vadd.f32 %v4015_v45, %v3686_v11 }
 0x4a0   : > { %4279 = vst [vmem:[%s7028_s11 + $0x410] sm:$0xff] %v4147_v37  ;;  %4280 = vst.msk [vmem:[%s7028_s11 + $0x418] sm:$0xff] %vm1044_vm2, %v4148_v44  ;;  %v4010_v38 = vpop.permute.xlu1 %4009 }
 0x4a1   : > { %v4145_v47 = vadd.f32 %v4010_v38, %v3683_v18  ;;  %v4146_v24 = vadd.f32 %v4010_v38, %v3684_v17 }
 0x4a3   : > { %4277 = vst [vmem:[%s7028_s11 + $0x400] sm:$0xff] %v4145_v47  ;;  %4278 = vst.msk [vmem:[%s7028_s11 + $0x408] sm:$0xff] %vm1044_vm2, %v4146_v24 }
 0x4a4 PF: > { %s14_s15 = sadd.s32 1, %s4790_s15  }
 0x4a5   : > { %p11_p4 = scmp.ge.s32.totalorder %s14_s15, 4  }
 0x4a7   :  { %13 = sbr.rel (!%p11_p4) target bundleno = 1 (0x1), region = 69 }

</bundles_post_ra>
